<compile_context>
chip_gen: v5e
topology: v5e:2x2
jax: 0.10.0
libtpu: 0.0.40
codegen_flags: <defaults>
</compile_context>

<pallas_src>
import functools

import jax
import jax.numpy as jnp
from jax.experimental import pallas as pl
from jax.experimental.pallas import tpu as pltpu

LANE = 128
VMEM_LIMIT = 48 * 1024 * 1024  # <= 64 MiB physical on v7x


def _round_up(x, m):
    return (x + m - 1) // m * m


def _pad_axis(a, target, axis):
    pad = target - a.shape[axis]
    if pad == 0:
        return a
    widths = [(0, 0)] * a.ndim
    widths[axis] = (0, pad)
    return jnp.pad(a, widths)


def _pick_tn(cout_p):
    """256-wide N tile on 256-wide-MXU chips (v6e/v7x), else 128 (v5e/v4)."""
    try:
        kind = jax.devices()[0].device_kind.lower()
    except Exception:  # pragma: no cover - defensive
        kind = ""
    wide_mxu = any(t in kind for t in ("v6", "v7", "7x"))
    return 256 if (wide_mxu and cout_p % 256 == 0) else LANE


# ---------------------------------------------------------------------------
# Pallas kernels
# ---------------------------------------------------------------------------
def _mm_bias_relu_kernel(x_ref, w_ref, bias_ref, o_ref):
    # x: (TM, K) bf16   w: (K, TN) bf16 (BN scale pre-folded)   bias: (1, TN) f32
    acc = jnp.dot(x_ref[...], w_ref[...], preferred_element_type=jnp.float32)
    o_ref[...] = jnp.maximum(acc + bias_ref[...], 0.0).astype(o_ref.dtype)


def _mm_bias_add_relu_kernel(x_ref, w_ref, bias_ref, res_ref, o_ref):
    acc = jnp.dot(x_ref[...], w_ref[...], preferred_element_type=jnp.float32)
    y = acc + bias_ref[...] + res_ref[...].astype(jnp.float32)
    o_ref[...] = jnp.maximum(y, 0.0).astype(o_ref.dtype)


def _conv3x3_bias_relu_kernel(x_ref, w_ref, bias_ref, o_ref, acc_ref):
    # x: (H+2, W+2, C) bf16 (zero halo)   w: (3, 3, C, TN) bf16 (scale folded)
    # bias: (1, TN) f32   o: (H*W, TN)    acc: (H*W, TN) f32 VMEM scratch
    hp2, wp2, c = x_ref.shape
    h, w = hp2 - 2, wp2 - 2
    acc_ref[...] = jnp.zeros_like(acc_ref)
    for kh in range(3):                       # 9 taps accumulated in-kernel:
        for kw in range(3):                   # no im2col HBM materialization.
            patch = x_ref[kh:kh + h, kw:kw + w, :].reshape(h * w, c)
            acc_ref[...] += jnp.dot(patch, w_ref[kh, kw],
                                    preferred_element_type=jnp.float32)
    o_ref[...] = jnp.maximum(acc_ref[...] + bias_ref[...], 0.0).astype(o_ref.dtype)


# ---------------------------------------------------------------------------
# pallas_call wrappers
# ---------------------------------------------------------------------------
def _fused_matmul_bias_act(x2d, w2d, bias, res2d, out_dtype, tm, tn):
    """y = relu(x2d @ w2d + bias [+ res2d]) tiled over (M, Cout)."""
    M, K = x2d.shape
    Cout = w2d.shape[1]
    grid = (M // tm, Cout // tn)   # j innermost: x block stays resident.

    in_specs = [
        pl.BlockSpec((tm, K), lambda i, j: (i, 0)),
        pl.BlockSpec((K, tn), lambda i, j: (0, j)),
        pl.BlockSpec((1, tn), lambda i, j: (0, j)),
    ]
    args = [x2d, w2d, bias]
    kernel = _mm_bias_relu_kernel
    if res2d is not None:
        in_specs.append(pl.BlockSpec((tm, tn), lambda i, j: (i, j)))
        args.append(res2d)
        kernel = _mm_bias_add_relu_kernel

    return pl.pallas_call(
        kernel,
        out_shape=jax.ShapeDtypeStruct((M, Cout), out_dtype),
        grid_spec=pltpu.PrefetchScalarGridSpec(
            num_scalar_prefetch=0,
            grid=grid,
            in_specs=in_specs,
            out_specs=pl.BlockSpec((tm, tn), lambda i, j: (i, j)),
        ),
        compiler_params=pltpu.CompilerParams(
            dimension_semantics=("parallel", "parallel"),
            vmem_limit_bytes=VMEM_LIMIT,
        ),
    )(*args)


def _conv3x3_bias_relu(x_pad, w_t, bias, out_dtype, tn):
    """3x3 stride-1 conv (+bias, ReLU) on spatially padded NHWC input."""
    N, hp2, wp2, C = x_pad.shape
    H, W = hp2 - 2, wp2 - 2
    HW = H * W
    Cout = w_t.shape[3]
    grid = (N, Cout // tn)   # j innermost: image block resident, weights stream

    return pl.pallas_call(
        _conv3x3_bias_relu_kernel,
        out_shape=jax.ShapeDtypeStruct((N, HW, Cout), out_dtype),
        grid_spec=pltpu.PrefetchScalarGridSpec(
            num_scalar_prefetch=0,
            grid=grid,
            in_specs=[
                pl.BlockSpec((None, hp2, wp2, C), lambda n, j: (n, 0, 0, 0)),
                pl.BlockSpec((3, 3, C, tn), lambda n, j: (0, 0, 0, j)),
                pl.BlockSpec((1, tn), lambda n, j: (0, j)),
            ],
            out_specs=pl.BlockSpec((None, HW, tn), lambda n, j: (n, 0, j)),
            scratch_shapes=[pltpu.VMEM((HW, tn), jnp.float32)],
        ),
        compiler_params=pltpu.CompilerParams(
            dimension_semantics=("parallel", "parallel"),
            vmem_limit_bytes=VMEM_LIMIT,
        ),
    )(x_pad, w_t, bias)


# ---------------------------------------------------------------------------
# Wrapper glue (plain JAX): layout, channel padding, BN folding
# ---------------------------------------------------------------------------
def _fold_bn(gamma, beta, mean, var, eps, cpad):
    scale = (gamma / jnp.sqrt(var + eps)).astype(jnp.float32)      # (Cout,)
    bias = (beta - mean * scale).astype(jnp.float32)
    bias = _pad_axis(bias, cpad, 0).reshape(1, cpad)               # (1, Cpad)
    return scale, bias


@functools.partial(jax.jit, static_argnames=("stride", "eps", "tm"))
def bottleneck_forward(x_nchw, params, *, stride=1, eps=1e-5, tm=512):
    """Forward pass of Bottleneck (downsample=None), NCHW in / NCHW out."""
    w1, w2, w3 = params["conv1_w"], params["conv2_w"], params["conv3_w"]
    N, Cin, H, W = x_nchw.shape
    planes = w1.shape[0]
    Cexp = w3.shape[0]
    if stride != 1 or Cin != Cexp:
        raise ValueError("only the downsample=None configuration "
                         "(stride=1, inplanes == planes*4) is supported")

    cin_p = _round_up(Cin, LANE)
    pln_p = _round_up(planes, LANE)
    cexp_p = _round_up(Cexp, LANE)
    tn1 = _pick_tn(pln_p)      # layers 1 & 2 out-channel tile
    tn3 = _pick_tn(cexp_p)     # layer 3 out-channel tile

    # One NCHW -> NHWC transpose + bf16 cast + lane padding for the block.
    # TODO(synk): keep NHWC lane-padded bf16 between Bottleneck blocks to pay
    #             this relayout once per network instead of once per block.
    x_nhwc = jnp.transpose(x_nchw, (0, 2, 3, 1)).astype(jnp.bfloat16)
    x_nhwc = _pad_axis(x_nhwc, cin_p, 3)

    M = N * H * W
    tm_eff = min(tm, _round_up(M, 8))
    n_j_min = min(pln_p // tn1, cexp_p // tn3)
    if M > 16 and -(-M // tm_eff) < 2 and n_j_min < 2:
        # Guarantee >=2 steps on a parallel axis so both v7x TCs get work.
        tm_eff = _round_up((M + 1) // 2, 8)
    Mp = _round_up(M, tm_eff)
    x2d = _pad_axis(x_nhwc.reshape(M, cin_p), Mp, 0)     # also the residual

    # ---- layer 1: 1x1 conv + BN + ReLU (channel matmul, scale in weights) ----
    s1, b1 = _fold_bn(params["bn1_g"], params["bn1_b"],
                      params["bn1_m"], params["bn1_v"], eps, pln_p)
    w1_2d = jnp.transpose(w1[:, :, 0, 0], (1, 0)) * s1[None, :]     # (Cin, planes)
    w1_2d = _pad_axis(_pad_axis(w1_2d, cin_p, 0), pln_p, 1).astype(jnp.bfloat16)
    y1 = _fused_matmul_bias_act(x2d, w1_2d, b1, None, jnp.bfloat16, tm_eff, tn1)
    y1 = y1[:M].reshape(N, H, W, pln_p)

    # ---- layer 2: 3x3 conv (pad=1) + BN + ReLU, taps accumulated in-kernel ----
    y1_pad = jnp.pad(y1, ((0, 0), (1, 1), (1, 1), (0, 0)))           # zero halo
    s2, b2 = _fold_bn(params["bn2_g"], params["bn2_b"],
                      params["bn2_m"], params["bn2_v"], eps, pln_p)
    w2_t = jnp.transpose(w2, (2, 3, 1, 0)) * s2[None, None, None, :]  # (3,3,Ci,Co)
    w2_t = _pad_axis(_pad_axis(w2_t, pln_p, 2), pln_p, 3).astype(jnp.bfloat16)
    y2 = _conv3x3_bias_relu(y1_pad, w2_t, b2, jnp.bfloat16, tn1)      # (N,HW,Cp)

    # ---- layer 3: 1x1 conv + BN + residual add + ReLU (fully fused) ----
    s3, b3 = _fold_bn(params["bn3_g"], params["bn3_b"],
                      params["bn3_m"], params["bn3_v"], eps, cexp_p)
    w3_2d = jnp.transpose(w3[:, :, 0, 0], (1, 0)) * s3[None, :]       # (planes,Cexp)
    w3_2d = _pad_axis(_pad_axis(w3_2d, pln_p, 0), cexp_p, 1).astype(jnp.bfloat16)
    y2_2d = _pad_axis(y2.reshape(M, pln_p), Mp, 0)
    out2d = _fused_matmul_bias_act(y2_2d, w3_2d, b3, x2d,
                                   x_nchw.dtype, tm_eff, tn3)

    out = out2d[:M].reshape(N, H, W, cexp_p)[:, :, :, :Cexp]
    return jnp.transpose(out, (0, 3, 1, 2))                           # NCHW out


# ---------------------------------------------------------------------------
# Pure-JAX references
# ---------------------------------------------------------------------------
def _conv(a, w, stride=1, padding=0, **kw):
    return jax.lax.conv_general_dilated(
        a, w, (stride, stride), [(padding, padding)] * 2,
        dimension_numbers=("NCHW", "OIHW", "NCHW"), **kw)


def _bn(a, g, b, m, v, eps):
    s = g / jnp.sqrt(v + eps)
    return a * s[None, :, None, None] + (b - m * s)[None, :, None, None]


def _reference_f32(x, p, *, stride=1, eps=1e-5):
    """PyTorch-semantics f32 reference."""
    y = jnp.maximum(_bn(_conv(x, p["conv1_w"]),
                        p["bn1_g"], p["bn1_b"], p["bn1_m"], p["bn1_v"], eps), 0.0)
    y = jnp.maximum(_bn(_conv(y, p["conv2_w"], stride, 1),
                        p["bn2_g"], p["bn2_b"], p["bn2_m"], p["bn2_v"], eps), 0.0)
    y = _bn(_conv(y, p["conv3_w"]),
            p["bn3_g"], p["bn3_b"], p["bn3_m"], p["bn3_v"], eps) + x
    return jnp.maximum(y, 0.0)


def _reference_bf16(x, p, *, stride=1, eps=1e-5):
    """Reference mirroring the kernel numerics: bf16 operands with BN scale
    folded into the weights before the bf16 cast, f32 accumulation/epilogue."""
    def fold(g, b, m, v):
        s = g / jnp.sqrt(v + eps)
        return s, b - m * s

    def conv_bf16(a, w, stride=1, padding=0):
        return _conv(a.astype(jnp.bfloat16), w.astype(jnp.bfloat16),
                     stride, padding, preferred_element_type=jnp.float32)

    s1, b1 = fold(p["bn1_g"], p["bn1_b"], p["bn1_m"], p["bn1_v"])
    s2, b2 = fold(p["bn2_g"], p["bn2_b"], p["bn2_m"], p["bn2_v"])
    s3, b3 = fold(p["bn3_g"], p["bn3_b"], p["bn3_m"], p["bn3_v"])

    xq = x.astype(jnp.bfloat16).astype(jnp.float32)
    y = jnp.maximum(conv_bf16(xq, p["conv1_w"] * s1[:, None, None, None])
                    + b1[None, :, None, None], 0.0)
    y = jnp.maximum(conv_bf16(y, p["conv2_w"] * s2[:, None, None, None], stride, 1)
                    + b2[None, :, None, None], 0.0)
    y = (conv_bf16(y, p["conv3_w"] * s3[:, None, None, None])
         + b3[None, :, None, None] + xq)
    return jnp.maximum(y, 0.0)


if __name__ == "__main__":
    key = jax.random.PRNGKey(0)
    ks = jax.random.split(key, 16)

    N, planes, H, W = 2, 4, 16, 16
    inplanes = planes * 4      # downsample=None requires inplanes == planes*4

    def nrm(k, shape, scale=1.0):
        return scale * jax.random.normal(k, shape, dtype=jnp.float32)

    params = {
        "conv1_w": nrm(ks[0], (planes, inplanes, 1, 1), 0.1),
        "bn1_g": 1.0 + nrm(ks[1], (planes,), 0.1),
        "bn1_b": nrm(ks[2], (planes,), 0.1),
        "bn1_m": nrm(ks[3], (planes,), 0.1),
        "bn1_v": jnp.abs(nrm(ks[4], (planes,))) + 0.5,
        "conv2_w": nrm(ks[5], (planes, planes, 3, 3), 0.1),
        "bn2_g": 1.0 + nrm(ks[6], (planes,), 0.1),
        "bn2_b": nrm(ks[7], (planes,), 0.1),
        "bn2_m": nrm(ks[8], (planes,), 0.1),
        "bn2_v": jnp.abs(nrm(ks[9], (planes,))) + 0.5,
        "conv3_w": nrm(ks[10], (planes * 4, planes, 1, 1), 0.1),
        "bn3_g": 1.0 + nrm(ks[11], (planes * 4,), 0.1),
        "bn3_b": nrm(ks[12], (planes * 4,), 0.1),
        "bn3_m": nrm(ks[13], (planes * 4,), 0.1),
        "bn3_v": jnp.abs(nrm(ks[14], (planes * 4,))) + 0.5,
    }
    x = nrm(ks[15], (N, inplanes, H, W))

    out = bottleneck_forward(x, params, stride=1)
    out = jax.block_until_ready(out)
    assert out.shape == (N, planes * 4, H, W), out.shape

    ref_b = _reference_bf16(x, params, stride=1)
    ref_f = _reference_f32(x, params, stride=1)
    err_b = float(jnp.max(jnp.abs(out - ref_b)))
    err_f = float(jnp.max(jnp.abs(out - ref_f)))
    # tight vs. bf16-consistent reference; loose vs. PyTorch-semantics f32 ref
    assert jnp.allclose(out, ref_b, atol=1e-2, rtol=1e-2), err_b
    assert jnp.allclose(out, ref_f, atol=1e-1, rtol=1e-1), err_f

    print("KERNEL_OK")
</pallas_src>

<mosaic_0001>
module attributes {stable_mosaic.version = 11 : i64} {
  func.func @_mm_bias_relu_kernel(%arg0: i32, %arg1: i32, %arg2: memref<256x128xbf16, #tpu.memory_space<vmem>>, %arg3: memref<128x128xbf16, #tpu.memory_space<vmem>>, %arg4: memref<1x128xf32, #tpu.memory_space<vmem>>, %arg5: memref<256x128xbf16, #tpu.memory_space<vmem>>) attributes {dimension_semantics = [#tpu.dimension_semantics<parallel>, #tpu.dimension_semantics<parallel>], iteration_bounds = array<i64: 2, 1>, scalar_prefetch = 0 : i64, scratch_operands = 0 : i64, tpu.core_type = #tpu.core_type<tc>, window_params = [{transform_indices = @transform_0, window_bounds = array<i64: 256, 128>}, {transform_indices = @transform_1, window_bounds = array<i64: 128, 128>}, {transform_indices = @transform_2, window_bounds = array<i64: 1, 128>}, {transform_indices = @transform_3, window_bounds = array<i64: 256, 128>}]} {
    %c0 = arith.constant 0 : index
    %c0_0 = arith.constant 0 : index
    %0 = vector.load %arg2[%c0, %c0_0] : memref<256x128xbf16, #tpu.memory_space<vmem>>, vector<256x128xbf16>
    %c0_1 = arith.constant 0 : index
    %c0_2 = arith.constant 0 : index
    %1 = vector.load %arg3[%c0_1, %c0_2] : memref<128x128xbf16, #tpu.memory_space<vmem>>, vector<128x128xbf16>
    %cst = arith.constant dense<0.000000e+00> : vector<256x128xf32>
    %2 = tpu.matmul %0, %1, %cst {dimension_numbers = #tpu.dot_dimension_numbers<[1], [0], [0], [1], [0, 0, 1, 1], [], []>} : vector<256x128xbf16>, vector<128x128xbf16>, vector<256x128xf32> -> vector<256x128xf32>
    %c0_3 = arith.constant 0 : index
    %c0_4 = arith.constant 0 : index
    %3 = vector.load %arg4[%c0_3, %c0_4] : memref<1x128xf32, #tpu.memory_space<vmem>>, vector<1x128xf32>
    %4 = vector.broadcast %3 : vector<1x128xf32> to vector<256x128xf32>
    %5 = arith.addf %2, %4 : vector<256x128xf32>
    %cst_5 = arith.constant 0.000000e+00 : f32
    %6 = vector.broadcast %cst_5 : f32 to vector<256x128xf32>
    %7 = arith.maximumf %5, %6 : vector<256x128xf32>
    %8 = arith.truncf %7 : vector<256x128xf32> to vector<256x128xbf16>
    %c0_6 = arith.constant 0 : index
    %c0_7 = arith.constant 0 : index
    %9 = vector.load %arg5[%c0_6, %c0_7] : memref<256x128xbf16, #tpu.memory_space<vmem>>, vector<256x128xbf16>
    tpu.vector_store %arg5[%c0_6, %c0_7], %8 {strides = array<i32>} : memref<256x128xbf16, #tpu.memory_space<vmem>>, vector<256x128xbf16>,
    return
  }
  func.func @transform_0(%arg0: i32, %arg1: i32) -> (i32, i32) {
    %c0_i32 = arith.constant 0 : i32
    %c0_i32_0 = arith.constant 0 : i32
    return %arg0, %c0_i32 : i32, i32
  }
  func.func @transform_1(%arg0: i32, %arg1: i32) -> (i32, i32) {
    %c0_i32 = arith.constant 0 : i32
    %c0_i32_0 = arith.constant 0 : i32
    return %c0_i32, %arg1 : i32, i32
  }
  func.func @transform_2(%arg0: i32, %arg1: i32) -> (i32, i32) {
    %c0_i32 = arith.constant 0 : i32
    %c0_i32_0 = arith.constant 0 : i32
    return %c0_i32, %arg1 : i32, i32
  }
  func.func @transform_3(%arg0: i32, %arg1: i32) -> (i32, i32) {
    %c0_i32 = arith.constant 0 : i32
    return %arg0, %arg1 : i32, i32
  }
}

module attributes {stable_mosaic.version = 11 : i64} {
  func.func @_conv3x3_bias_relu_kernel(%arg0: i32, %arg1: i32, %arg2: memref<1x18x18x128xbf16, #tpu.memory_space<vmem>>, %arg3: memref<3x3x128x128xbf16, #tpu.memory_space<vmem>>, %arg4: memref<1x128xf32, #tpu.memory_space<vmem>>, %arg5: memref<1x256x128xbf16, #tpu.memory_space<vmem>>, %arg6: memref<256x128xf32, #tpu.memory_space<vmem>>) attributes {dimension_semantics = [#tpu.dimension_semantics<parallel>, #tpu.dimension_semantics<parallel>], iteration_bounds = array<i64: 2, 1>, scalar_prefetch = 0 : i64, scratch_operands = 1 : i64, tpu.core_type = #tpu.core_type<tc>, window_params = [{transform_indices = @transform_0, window_bounds = array<i64: 1, 18, 18, 128>}, {transform_indices = @transform_1, window_bounds = array<i64: 3, 3, 128, 128>}, {transform_indices = @transform_2, window_bounds = array<i64: 1, 128>}, {transform_indices = @transform_3, window_bounds = array<i64: 1, 256, 128>}]} {
    %cst = arith.constant 0.000000e+00 : f32
    %0 = vector.broadcast %cst : f32 to vector<256x128xf32>
    %c0 = arith.constant 0 : index
    %c0_0 = arith.constant 0 : index
    %1 = vector.load %arg6[%c0, %c0_0] : memref<256x128xf32, #tpu.memory_space<vmem>>, vector<256x128xf32>
    tpu.vector_store %arg6[%c0, %c0_0], %0 {strides = array<i32>} : memref<256x128xf32, #tpu.memory_space<vmem>>, vector<256x128xf32>,
    %c0_1 = arith.constant 0 : index
    %c0_2 = arith.constant 0 : index
    %c0_3 = arith.constant 0 : index
    %c0_4 = arith.constant 0 : index
    %2 = vector.load %arg2[%c0_1, %c0_2, %c0_3, %c0_4] : memref<1x18x18x128xbf16, #tpu.memory_space<vmem>>, vector<1x16x16x128xbf16>
    %3 = vector.shape_cast %2 : vector<1x16x16x128xbf16> to vector<16x16x128xbf16>
    %4 = vector.shape_cast %3 : vector<16x16x128xbf16> to vector<256x128xbf16>
    %c0_5 = arith.constant 0 : index
    %c0_6 = arith.constant 0 : index
    %5 = vector.load %arg6[%c0_5, %c0_6] : memref<256x128xf32, #tpu.memory_space<vmem>>, vector<256x128xf32>
    %c0_7 = arith.constant 0 : index
    %c0_8 = arith.constant 0 : index
    %c0_9 = arith.constant 0 : index
    %c0_10 = arith.constant 0 : index
    %6 = vector.load %arg3[%c0_7, %c0_8, %c0_9, %c0_10] : memref<3x3x128x128xbf16, #tpu.memory_space<vmem>>, vector<1x1x128x128xbf16>
    %7 = vector.shape_cast %6 : vector<1x1x128x128xbf16> to vector<128x128xbf16>
    %cst_11 = arith.constant dense<0.000000e+00> : vector<256x128xf32>
    %8 = tpu.matmul %4, %7, %cst_11 {dimension_numbers = #tpu.dot_dimension_numbers<[1], [0], [0], [1], [0, 0, 1, 1], [], []>} : vector<256x128xbf16>, vector<128x128xbf16>, vector<256x128xf32> -> vector<256x128xf32>
    %9 = arith.addf %5, %8 : vector<256x128xf32>
    %c0_12 = arith.constant 0 : index
    %c0_13 = arith.constant 0 : index
    %10 = vector.load %arg6[%c0_12, %c0_13] : memref<256x128xf32, #tpu.memory_space<vmem>>, vector<256x128xf32>
    tpu.vector_store %arg6[%c0_12, %c0_13], %9 {strides = array<i32>} : memref<256x128xf32, #tpu.memory_space<vmem>>, vector<256x128xf32>,
    %c0_14 = arith.constant 0 : index
    %c0_15 = arith.constant 0 : index
    %c1 = arith.constant 1 : index
    %c0_16 = arith.constant 0 : index
    %11 = vector.load %arg2[%c0_14, %c0_15, %c1, %c0_16] : memref<1x18x18x128xbf16, #tpu.memory_space<vmem>>, vector<1x16x16x128xbf16>
    %12 = vector.shape_cast %11 : vector<1x16x16x128xbf16> to vector<16x16x128xbf16>
    %13 = vector.shape_cast %12 : vector<16x16x128xbf16> to vector<256x128xbf16>
    %c0_17 = arith.constant 0 : index
    %c0_18 = arith.constant 0 : index
    %14 = vector.load %arg6[%c0_17, %c0_18] : memref<256x128xf32, #tpu.memory_space<vmem>>, vector<256x128xf32>
    %c0_19 = arith.constant 0 : index
    %c1_20 = arith.constant 1 : index
    %c0_21 = arith.constant 0 : index
    %c0_22 = arith.constant 0 : index
    %15 = vector.load %arg3[%c0_19, %c1_20, %c0_21, %c0_22] : memref<3x3x128x128xbf16, #tpu.memory_space<vmem>>, vector<1x1x128x128xbf16>
    %16 = vector.shape_cast %15 : vector<1x1x128x128xbf16> to vector<128x128xbf16>
    %cst_23 = arith.constant dense<0.000000e+00> : vector<256x128xf32>
    %17 = tpu.matmul %13, %16, %cst_23 {dimension_numbers = #tpu.dot_dimension_numbers<[1], [0], [0], [1], [0, 0, 1, 1], [], []>} : vector<256x128xbf16>, vector<128x128xbf16>, vector<256x128xf32> -> vector<256x128xf32>
    %18 = arith.addf %14, %17 : vector<256x128xf32>
    %c0_24 = arith.constant 0 : index
    %c0_25 = arith.constant 0 : index
    %19 = vector.load %arg6[%c0_24, %c0_25] : memref<256x128xf32, #tpu.memory_space<vmem>>, vector<256x128xf32>
    tpu.vector_store %arg6[%c0_24, %c0_25], %18 {strides = array<i32>} : memref<256x128xf32, #tpu.memory_space<vmem>>, vector<256x128xf32>,
    %c0_26 = arith.constant 0 : index
    %c0_27 = arith.constant 0 : index
    %c2 = arith.constant 2 : index
    %c0_28 = arith.constant 0 : index
    %20 = vector.load %arg2[%c0_26, %c0_27, %c2, %c0_28] : memref<1x18x18x128xbf16, #tpu.memory_space<vmem>>, vector<1x16x16x128xbf16>
    %21 = vector.shape_cast %20 : vector<1x16x16x128xbf16> to vector<16x16x128xbf16>
    %22 = vector.shape_cast %21 : vector<16x16x128xbf16> to vector<256x128xbf16>
    %c0_29 = arith.constant 0 : index
    %c0_30 = arith.constant 0 : index
    %23 = vector.load %arg6[%c0_29, %c0_30] : memref<256x128xf32, #tpu.memory_space<vmem>>, vector<256x128xf32>
    %c0_31 = arith.constant 0 : index
    %c2_32 = arith.constant 2 : index
    %c0_33 = arith.constant 0 : index
    %c0_34 = arith.constant 0 : index
    %24 = vector.load %arg3[%c0_31, %c2_32, %c0_33, %c0_34] : memref<3x3x128x128xbf16, #tpu.memory_space<vmem>>, vector<1x1x128x128xbf16>
    %25 = vector.shape_cast %24 : vector<1x1x128x128xbf16> to vector<128x128xbf16>
    %cst_35 = arith.constant dense<0.000000e+00> : vector<256x128xf32>
    %26 = tpu.matmul %22, %25, %cst_35 {dimension_numbers = #tpu.dot_dimension_numbers<[1], [0], [0], [1], [0, 0, 1, 1], [], []>} : vector<256x128xbf16>, vector<128x128xbf16>, vector<256x128xf32> -> vector<256x128xf32>
    %27 = arith.addf %23, %26 : vector<256x128xf32>
    %c0_36 = arith.constant 0 : index
    %c0_37 = arith.constant 0 : index
    %28 = vector.load %arg6[%c0_36, %c0_37] : memref<256x128xf32, #tpu.memory_space<vmem>>, vector<256x128xf32>
    tpu.vector_store %arg6[%c0_36, %c0_37], %27 {strides = array<i32>} : memref<256x128xf32, #tpu.memory_space<vmem>>, vector<256x128xf32>,
    %c0_38 = arith.constant 0 : index
    %c1_39 = arith.constant 1 : index
    %c0_40 = arith.constant 0 : index
    %c0_41 = arith.constant 0 : index
    %29 = vector.load %arg2[%c0_38, %c1_39, %c0_40, %c0_41] : memref<1x18x18x128xbf16, #tpu.memory_space<vmem>>, vector<1x16x16x128xbf16>
    %30 = vector.shape_cast %29 : vector<1x16x16x128xbf16> to vector<16x16x128xbf16>
    %31 = vector.shape_cast %30 : vector<16x16x128xbf16> to vector<256x128xbf16>
    %c0_42 = arith.constant 0 : index
    %c0_43 = arith.constant 0 : index
    %32 = vector.load %arg6[%c0_42, %c0_43] : memref<256x128xf32, #tpu.memory_space<vmem>>, vector<256x128xf32>
    %c1_44 = arith.constant 1 : index
    %c0_45 = arith.constant 0 : index
    %c0_46 = arith.constant 0 : index
    %c0_47 = arith.constant 0 : index
    %33 = vector.load %arg3[%c1_44, %c0_45, %c0_46, %c0_47] : memref<3x3x128x128xbf16, #tpu.memory_space<vmem>>, vector<1x1x128x128xbf16>
    %34 = vector.shape_cast %33 : vector<1x1x128x128xbf16> to vector<128x128xbf16>
    %cst_48 = arith.constant dense<0.000000e+00> : vector<256x128xf32>
    %35 = tpu.matmul %31, %34, %cst_48 {dimension_numbers = #tpu.dot_dimension_numbers<[1], [0], [0], [1], [0, 0, 1, 1], [], []>} : vector<256x128xbf16>, vector<128x128xbf16>, vector<256x128xf32> -> vector<256x128xf32>
    %36 = arith.addf %32, %35 : vector<256x128xf32>
    %c0_49 = arith.constant 0 : index
    %c0_50 = arith.constant 0 : index
    %37 = vector.load %arg6[%c0_49, %c0_50] : memref<256x128xf32, #tpu.memory_space<vmem>>, vector<256x128xf32>
    tpu.vector_store %arg6[%c0_49, %c0_50], %36 {strides = array<i32>} : memref<256x128xf32, #tpu.memory_space<vmem>>, vector<256x128xf32>,
    %c0_51 = arith.constant 0 : index
    %c1_52 = arith.constant 1 : index
    %c1_53 = arith.constant 1 : index
    %c0_54 = arith.constant 0 : index
    %38 = vector.load %arg2[%c0_51, %c1_52, %c1_53, %c0_54] : memref<1x18x18x128xbf16, #tpu.memory_space<vmem>>, vector<1x16x16x128xbf16>
    %39 = vector.shape_cast %38 : vector<1x16x16x128xbf16> to vector<16x16x128xbf16>
    %40 = vector.shape_cast %39 : vector<16x16x128xbf16> to vector<256x128xbf16>
    %c0_55 = arith.constant 0 : index
    %c0_56 = arith.constant 0 : index
    %41 = vector.load %arg6[%c0_55, %c0_56] : memref<256x128xf32, #tpu.memory_space<vmem>>, vector<256x128xf32>
    %c1_57 = arith.constant 1 : index
    %c1_58 = arith.constant 1 : index
    %c0_59 = arith.constant 0 : index
    %c0_60 = arith.constant 0 : index
    %42 = vector.load %arg3[%c1_57, %c1_58, %c0_59, %c0_60] : memref<3x3x128x128xbf16, #tpu.memory_space<vmem>>, vector<1x1x128x128xbf16>
    %43 = vector.shape_cast %42 : vector<1x1x128x128xbf16> to vector<128x128xbf16>
    %cst_61 = arith.constant dense<0.000000e+00> : vector<256x128xf32>
    %44 = tpu.matmul %40, %43, %cst_61 {dimension_numbers = #tpu.dot_dimension_numbers<[1], [0], [0], [1], [0, 0, 1, 1], [], []>} : vector<256x128xbf16>, vector<128x128xbf16>, vector<256x128xf32> -> vector<256x128xf32>
    %45 = arith.addf %41, %44 : vector<256x128xf32>
    %c0_62 = arith.constant 0 : index
    %c0_63 = arith.constant 0 : index
    %46 = vector.load %arg6[%c0_62, %c0_63] : memref<256x128xf32, #tpu.memory_space<vmem>>, vector<256x128xf32>
    tpu.vector_store %arg6[%c0_62, %c0_63], %45 {strides = array<i32>} : memref<256x128xf32, #tpu.memory_space<vmem>>, vector<256x128xf32>,
    %c0_64 = arith.constant 0 : index
    %c1_65 = arith.constant 1 : index
    %c2_66 = arith.constant 2 : index
    %c0_67 = arith.constant 0 : index
    %47 = vector.load %arg2[%c0_64, %c1_65, %c2_66, %c0_67] : memref<1x18x18x128xbf16, #tpu.memory_space<vmem>>, vector<1x16x16x128xbf16>
    %48 = vector.shape_cast %47 : vector<1x16x16x128xbf16> to vector<16x16x128xbf16>
    %49 = vector.shape_cast %48 : vector<16x16x128xbf16> to vector<256x128xbf16>
    %c0_68 = arith.constant 0 : index
    %c0_69 = arith.constant 0 : index
    %50 = vector.load %arg6[%c0_68, %c0_69] : memref<256x128xf32, #tpu.memory_space<vmem>>, vector<256x128xf32>
    %c1_70 = arith.constant 1 : index
    %c2_71 = arith.constant 2 : index
    %c0_72 = arith.constant 0 : index
    %c0_73 = arith.constant 0 : index
    %51 = vector.load %arg3[%c1_70, %c2_71, %c0_72, %c0_73] : memref<3x3x128x128xbf16, #tpu.memory_space<vmem>>, vector<1x1x128x128xbf16>
    %52 = vector.shape_cast %51 : vector<1x1x128x128xbf16> to vector<128x128xbf16>
    %cst_74 = arith.constant dense<0.000000e+00> : vector<256x128xf32>
    %53 = tpu.matmul %49, %52, %cst_74 {dimension_numbers = #tpu.dot_dimension_numbers<[1], [0], [0], [1], [0, 0, 1, 1], [], []>} : vector<256x128xbf16>, vector<128x128xbf16>, vector<256x128xf32> -> vector<256x128xf32>
    %54 = arith.addf %50, %53 : vector<256x128xf32>
    %c0_75 = arith.constant 0 : index
    %c0_76 = arith.constant 0 : index
    %55 = vector.load %arg6[%c0_75, %c0_76] : memref<256x128xf32, #tpu.memory_space<vmem>>, vector<256x128xf32>
    tpu.vector_store %arg6[%c0_75, %c0_76], %54 {strides = array<i32>} : memref<256x128xf32, #tpu.memory_space<vmem>>, vector<256x128xf32>,
    %c0_77 = arith.constant 0 : index
    %c2_78 = arith.constant 2 : index
    %c0_79 = arith.constant 0 : index
    %c0_80 = arith.constant 0 : index
    %56 = vector.load %arg2[%c0_77, %c2_78, %c0_79, %c0_80] : memref<1x18x18x128xbf16, #tpu.memory_space<vmem>>, vector<1x16x16x128xbf16>
    %57 = vector.shape_cast %56 : vector<1x16x16x128xbf16> to vector<16x16x128xbf16>
    %58 = vector.shape_cast %57 : vector<16x16x128xbf16> to vector<256x128xbf16>
    %c0_81 = arith.constant 0 : index
    %c0_82 = arith.constant 0 : index
    %59 = vector.load %arg6[%c0_81, %c0_82] : memref<256x128xf32, #tpu.memory_space<vmem>>, vector<256x128xf32>
    %c2_83 = arith.constant 2 : index
    %c0_84 = arith.constant 0 : index
    %c0_85 = arith.constant 0 : index
    %c0_86 = arith.constant 0 : index
    %60 = vector.load %arg3[%c2_83, %c0_84, %c0_85, %c0_86] : memref<3x3x128x128xbf16, #tpu.memory_space<vmem>>, vector<1x1x128x128xbf16>
    %61 = vector.shape_cast %60 : vector<1x1x128x128xbf16> to vector<128x128xbf16>
    %cst_87 = arith.constant dense<0.000000e+00> : vector<256x128xf32>
    %62 = tpu.matmul %58, %61, %cst_87 {dimension_numbers = #tpu.dot_dimension_numbers<[1], [0], [0], [1], [0, 0, 1, 1], [], []>} : vector<256x128xbf16>, vector<128x128xbf16>, vector<256x128xf32> -> vector<256x128xf32>
    %63 = arith.addf %59, %62 : vector<256x128xf32>
    %c0_88 = arith.constant 0 : index
    %c0_89 = arith.constant 0 : index
    %64 = vector.load %arg6[%c0_88, %c0_89] : memref<256x128xf32, #tpu.memory_space<vmem>>, vector<256x128xf32>
    tpu.vector_store %arg6[%c0_88, %c0_89], %63 {strides = array<i32>} : memref<256x128xf32, #tpu.memory_space<vmem>>, vector<256x128xf32>,
    %c0_90 = arith.constant 0 : index
    %c2_91 = arith.constant 2 : index
    %c1_92 = arith.constant 1 : index
    %c0_93 = arith.constant 0 : index
    %65 = vector.load %arg2[%c0_90, %c2_91, %c1_92, %c0_93] : memref<1x18x18x128xbf16, #tpu.memory_space<vmem>>, vector<1x16x16x128xbf16>
    %66 = vector.shape_cast %65 : vector<1x16x16x128xbf16> to vector<16x16x128xbf16>
    %67 = vector.shape_cast %66 : vector<16x16x128xbf16> to vector<256x128xbf16>
    %c0_94 = arith.constant 0 : index
    %c0_95 = arith.constant 0 : index
    %68 = vector.load %arg6[%c0_94, %c0_95] : memref<256x128xf32, #tpu.memory_space<vmem>>, vector<256x128xf32>
    %c2_96 = arith.constant 2 : index
    %c1_97 = arith.constant 1 : index
    %c0_98 = arith.constant 0 : index
    %c0_99 = arith.constant 0 : index
    %69 = vector.load %arg3[%c2_96, %c1_97, %c0_98, %c0_99] : memref<3x3x128x128xbf16, #tpu.memory_space<vmem>>, vector<1x1x128x128xbf16>
    %70 = vector.shape_cast %69 : vector<1x1x128x128xbf16> to vector<128x128xbf16>
    %cst_100 = arith.constant dense<0.000000e+00> : vector<256x128xf32>
    %71 = tpu.matmul %67, %70, %cst_100 {dimension_numbers = #tpu.dot_dimension_numbers<[1], [0], [0], [1], [0, 0, 1, 1], [], []>} : vector<256x128xbf16>, vector<128x128xbf16>, vector<256x128xf32> -> vector<256x128xf32>
    %72 = arith.addf %68, %71 : vector<256x128xf32>
    %c0_101 = arith.constant 0 : index
    %c0_102 = arith.constant 0 : index
    %73 = vector.load %arg6[%c0_101, %c0_102] : memref<256x128xf32, #tpu.memory_space<vmem>>, vector<256x128xf32>
    tpu.vector_store %arg6[%c0_101, %c0_102], %72 {strides = array<i32>} : memref<256x128xf32, #tpu.memory_space<vmem>>, vector<256x128xf32>,
    %c0_103 = arith.constant 0 : index
    %c2_104 = arith.constant 2 : index
    %c2_105 = arith.constant 2 : index
    %c0_106 = arith.constant 0 : index
    %74 = vector.load %arg2[%c0_103, %c2_104, %c2_105, %c0_106] : memref<1x18x18x128xbf16, #tpu.memory_space<vmem>>, vector<1x16x16x128xbf16>
    %75 = vector.shape_cast %74 : vector<1x16x16x128xbf16> to vector<16x16x128xbf16>
    %76 = vector.shape_cast %75 : vector<16x16x128xbf16> to vector<256x128xbf16>
    %c0_107 = arith.constant 0 : index
    %c0_108 = arith.constant 0 : index
    %77 = vector.load %arg6[%c0_107, %c0_108] : memref<256x128xf32, #tpu.memory_space<vmem>>, vector<256x128xf32>
    %c2_109 = arith.constant 2 : index
    %c2_110 = arith.constant 2 : index
    %c0_111 = arith.constant 0 : index
    %c0_112 = arith.constant 0 : index
    %78 = vector.load %arg3[%c2_109, %c2_110, %c0_111, %c0_112] : memref<3x3x128x128xbf16, #tpu.memory_space<vmem>>, vector<1x1x128x128xbf16>
    %79 = vector.shape_cast %78 : vector<1x1x128x128xbf16> to vector<128x128xbf16>
    %cst_113 = arith.constant dense<0.000000e+00> : vector<256x128xf32>
    %80 = tpu.matmul %76, %79, %cst_113 {dimension_numbers = #tpu.dot_dimension_numbers<[1], [0], [0], [1], [0, 0, 1, 1], [], []>} : vector<256x128xbf16>, vector<128x128xbf16>, vector<256x128xf32> -> vector<256x128xf32>
    %81 = arith.addf %77, %80 : vector<256x128xf32>
    %c0_114 = arith.constant 0 : index
    %c0_115 = arith.constant 0 : index
    %82 = vector.load %arg6[%c0_114, %c0_115] : memref<256x128xf32, #tpu.memory_space<vmem>>, vector<256x128xf32>
    tpu.vector_store %arg6[%c0_114, %c0_115], %81 {strides = array<i32>} : memref<256x128xf32, #tpu.memory_space<vmem>>, vector<256x128xf32>,
    %c0_116 = arith.constant 0 : index
    %c0_117 = arith.constant 0 : index
    %83 = vector.load %arg6[%c0_116, %c0_117] : memref<256x128xf32, #tpu.memory_space<vmem>>, vector<256x128xf32>
    %c0_118 = arith.constant 0 : index
    %c0_119 = arith.constant 0 : index
    %84 = vector.load %arg4[%c0_118, %c0_119] : memref<1x128xf32, #tpu.memory_space<vmem>>, vector<1x128xf32>
    %85 = vector.broadcast %84 : vector<1x128xf32> to vector<256x128xf32>
    %86 = arith.addf %83, %85 : vector<256x128xf32>
    %cst_120 = arith.constant 0.000000e+00 : f32
    %87 = vector.broadcast %cst_120 : f32 to vector<256x128xf32>
    %88 = arith.maximumf %86, %87 : vector<256x128xf32>
    %89 = arith.truncf %88 : vector<256x128xf32> to vector<256x128xbf16>
    %c0_121 = arith.constant 0 : index
    %c0_122 = arith.constant 0 : index
    %c0_123 = arith.constant 0 : index
    %90 = vector.load %arg5[%c0_121, %c0_122, %c0_123] : memref<1x256x128xbf16, #tpu.memory_space<vmem>>, vector<1x256x128xbf16>
    %91 = vector.shape_cast %90 : vector<1x256x128xbf16> to vector<256x128xbf16>
    %92 = vector.shape_cast %89 : vector<256x128xbf16> to vector<1x256x128xbf16>
    tpu.vector_store %arg5[%c0_121, %c0_122, %c0_123], %92 {strides = array<i32>} : memref<1x256x128xbf16, #tpu.memory_space<vmem>>, vector<1x256x128xbf16>,
    return
  }
  func.func @transform_0(%arg0: i32, %arg1: i32) -> (i32, i32, i32, i32) {
    %c0_i32 = arith.constant 0 : i32
    %c0_i32_0 = arith.constant 0 : i32
    %c0_i32_1 = arith.constant 0 : i32
    %c0_i32_2 = arith.constant 0 : i32
    return %arg0, %c0_i32, %c0_i32_0, %c0_i32_1 : i32, i32, i32, i32
  }
  func.func @transform_1(%arg0: i32, %arg1: i32) -> (i32, i32, i32, i32) {
    %c0_i32 = arith.constant 0 : i32
    %c0_i32_0 = arith.constant 0 : i32
    %c0_i32_1 = arith.constant 0 : i32
    %c0_i32_2 = arith.constant 0 : i32
    return %c0_i32, %c0_i32_0, %c0_i32_1, %arg1 : i32, i32, i32, i32
  }
  func.func @transform_2(%arg0: i32, %arg1: i32) -> (i32, i32) {
    %c0_i32 = arith.constant 0 : i32
    %c0_i32_0 = arith.constant 0 : i32
    return %c0_i32, %arg1 : i32, i32
  }
  func.func @transform_3(%arg0: i32, %arg1: i32) -> (i32, i32, i32) {
    %c0_i32 = arith.constant 0 : i32
    %c0_i32_0 = arith.constant 0 : i32
    return %arg0, %c0_i32, %arg1 : i32, i32, i32
  }
}

module attributes {stable_mosaic.version = 11 : i64} {
  func.func @_mm_bias_add_relu_kernel(%arg0: i32, %arg1: i32, %arg2: memref<256x128xbf16, #tpu.memory_space<vmem>>, %arg3: memref<128x128xbf16, #tpu.memory_space<vmem>>, %arg4: memref<1x128xf32, #tpu.memory_space<vmem>>, %arg5: memref<256x128xbf16, #tpu.memory_space<vmem>>, %arg6: memref<256x128xf32, #tpu.memory_space<vmem>>) attributes {dimension_semantics = [#tpu.dimension_semantics<parallel>, #tpu.dimension_semantics<parallel>], iteration_bounds = array<i64: 2, 1>, scalar_prefetch = 0 : i64, scratch_operands = 0 : i64, tpu.core_type = #tpu.core_type<tc>, window_params = [{transform_indices = @transform_0, window_bounds = array<i64: 256, 128>}, {transform_indices = @transform_1, window_bounds = array<i64: 128, 128>}, {transform_indices = @transform_2, window_bounds = array<i64: 1, 128>}, {transform_indices = @transform_3, window_bounds = array<i64: 256, 128>}, {transform_indices = @transform_4, window_bounds = array<i64: 256, 128>}]} {
    %c0 = arith.constant 0 : index
    %c0_0 = arith.constant 0 : index
    %0 = vector.load %arg2[%c0, %c0_0] : memref<256x128xbf16, #tpu.memory_space<vmem>>, vector<256x128xbf16>
    %c0_1 = arith.constant 0 : index
    %c0_2 = arith.constant 0 : index
    %1 = vector.load %arg3[%c0_1, %c0_2] : memref<128x128xbf16, #tpu.memory_space<vmem>>, vector<128x128xbf16>
    %cst = arith.constant dense<0.000000e+00> : vector<256x128xf32>
    %2 = tpu.matmul %0, %1, %cst {dimension_numbers = #tpu.dot_dimension_numbers<[1], [0], [0], [1], [0, 0, 1, 1], [], []>} : vector<256x128xbf16>, vector<128x128xbf16>, vector<256x128xf32> -> vector<256x128xf32>
    %c0_3 = arith.constant 0 : index
    %c0_4 = arith.constant 0 : index
    %3 = vector.load %arg4[%c0_3, %c0_4] : memref<1x128xf32, #tpu.memory_space<vmem>>, vector<1x128xf32>
    %4 = vector.broadcast %3 : vector<1x128xf32> to vector<256x128xf32>
    %5 = arith.addf %2, %4 : vector<256x128xf32>
    %c0_5 = arith.constant 0 : index
    %c0_6 = arith.constant 0 : index
    %6 = vector.load %arg5[%c0_5, %c0_6] : memref<256x128xbf16, #tpu.memory_space<vmem>>, vector<256x128xbf16>
    %7 = arith.extf %6 : vector<256x128xbf16> to vector<256x128xf32>
    %8 = arith.addf %5, %7 : vector<256x128xf32>
    %cst_7 = arith.constant 0.000000e+00 : f32
    %9 = vector.broadcast %cst_7 : f32 to vector<256x128xf32>
    %10 = arith.maximumf %8, %9 : vector<256x128xf32>
    %c0_8 = arith.constant 0 : index
    %c0_9 = arith.constant 0 : index
    %11 = vector.load %arg6[%c0_8, %c0_9] : memref<256x128xf32, #tpu.memory_space<vmem>>, vector<256x128xf32>
    tpu.vector_store %arg6[%c0_8, %c0_9], %10 {strides = array<i32>} : memref<256x128xf32, #tpu.memory_space<vmem>>, vector<256x128xf32>,
    return
  }
  func.func @transform_0(%arg0: i32, %arg1: i32) -> (i32, i32) {
    %c0_i32 = arith.constant 0 : i32
    %c0_i32_0 = arith.constant 0 : i32
    return %arg0, %c0_i32 : i32, i32
  }
  func.func @transform_1(%arg0: i32, %arg1: i32) -> (i32, i32) {
    %c0_i32 = arith.constant 0 : i32
    %c0_i32_0 = arith.constant 0 : i32
    return %c0_i32, %arg1 : i32, i32
  }
  func.func @transform_2(%arg0: i32, %arg1: i32) -> (i32, i32) {
    %c0_i32 = arith.constant 0 : i32
    %c0_i32_0 = arith.constant 0 : i32
    return %c0_i32, %arg1 : i32, i32
  }
  func.func @transform_3(%arg0: i32, %arg1: i32) -> (i32, i32) {
    %c0_i32 = arith.constant 0 : i32
    return %arg0, %arg1 : i32, i32
  }
  func.func @transform_4(%arg0: i32, %arg1: i32) -> (i32, i32) {
    %c0_i32 = arith.constant 0 : i32
    return %arg0, %arg1 : i32, i32
  }
}

</mosaic_0001>

<bundles_post_ra>
// kernel: bottleneck_forward.3
= control target key start
LH: loop header
LB: loop body
LE: loop exit
PB: predicated region body
PF: predicated region fallthrough
CT: control target
= control target key end

     0   :  { %s1029_s12 = smov 0   ;;  %s1031_s13 = smov 0   ;;  %s1169_s0 = inlined_call_operand.vmem [shape: bf16[512,128], index: 0, kind: input, shape index: {}]   ;;  %s1170_s1 = inlined_call_operand.vmem [shape: bf16[128,128], index: 1, kind: input, shape index: {}]   ;;  %s1171_s2 = inlined_call_operand.vmem [shape: f32[1,128], index: 2, kind: input, shape index: {}]   ;;  %s1172_s3 = inlined_call_operand.vmem [shape: bf16[512,128], index: 3, kind: output, shape index: {}]  }
   0x1   :  { %s1033_s14 = smov 0  }
   0x2 LB: > { %s25_s15 = sadd.s32 1, %s1003_s13  ;;  %p714_p0 = scmp.ge.s32.totalorder %s1007_s14, 1  ;;  %s1007_s14 = sphi %s1033_s14, %s13_s14   ;;  %s1003_s13 = sphi %s1031_s13, %s1174_s13   ;;  %s999_s12 = sphi %s1029_s12, %s1173_s12  }
   0x3   : > { %p27_p1 = scmp.ge.s32.totalorder %s25_s15, 2  ;;  %p169_p2 = scmp.lt.s32.totalorder %s1007_s14, 3 }
   0x5   : > { %s1176_s15 = smov (%p27_p1, %s25_s15), 0  ;;  %p170_p3 = pnand %p714_p0, %p169_p2 }
   0x6   : > { %s715_s24 = sshll.u32 (!%p170_p3), %s999_s12, 5 }
   0x7   : > { %173 = sbr.rel (%p170_p3) target bundleno = 241 (0xf1), region = 32  ;;  %p204_p4 = scmp.lt.s32.totalorder (!%p170_p3), %s715_s24, 63 }
   0xc   : > { %v840_v0 = vld [vmem:[%s1170_s1 + $0x38] sm:$0xff]  ;;  %v839_v1 = vld [vmem:[%s1170_s1 + $0x30] sm:$0xff]  ;;  %v838_v2 = vld [vmem:[%s1170_s1 + $0x28] sm:$0xff]  ;;  %s1178_s24 = smov (!%p204_p4, %s715_s24), 63 }
   0xd   : > { %421 = vmatpush.bf16.msra.mxu0 %v840_v0  ;;  %936 = vmatpush.bf16.msra.mxu1 %v840_v0  ;;  %v837_v3 = vld [vmem:[%s1170_s1 + $0x20] sm:$0xff]  ;;  %v836_v4 = vld [vmem:[%s1170_s1 + $0x18] sm:$0xff]  ;;  %v835_v5 = vld [vmem:[%s1170_s1 + $0x10] sm:$0xff]  ;;  %s716_s4 = sshll.u32 %s1178_s24, 2 }
   0xe   : > { %937 = vmatpush.bf16.msra.mxu2 %v840_v0  ;;  %938 = vmatpush.bf16.msra.mxu3 %v840_v0  ;;  %v834_v6 = vld [vmem:[%s1170_s1 + $0x8] sm:$0xff]  ;;  %v833_v7 = vld [vmem:[%s1170_s1] sm:$0xff]  ;;  %s1082_s9 = scalar_lea.vmem %s1169_s0, %s716_s4  ;;  %s1114_s17 = scalar_lea.vmem %s1172_s3, %s716_s4 }
   0xf   : > { %v817_v8 = vld [vmem:[%s1082_s9] sm:$0xff]  ;;  %v818_v12 = vld [vmem:[%s1082_s9 + $0x8] sm:$0xff]  ;;  %v819_v16 = vld [vmem:[%s1082_s9 + $0x10] sm:$0xff] }
  0x10   : > { %v821_v9 = vld [vmem:[%s1082_s9 + $0x20] sm:$0xff]  ;;  %v822_v13 = vld [vmem:[%s1082_s9 + $0x28] sm:$0xff]  ;;  %v823_v17 = vld [vmem:[%s1082_s9 + $0x30] sm:$0xff] }
  0x11   : > { %422 = vmatpush.bf16.msra.mxu0 %v839_v1  ;;  %939 = vmatpush.bf16.msra.mxu1 %v839_v1  ;;  %v825_v10 = vld [vmem:[%s1082_s9 + $0x40] sm:$0xff]  ;;  %v826_v14 = vld [vmem:[%s1082_s9 + $0x48] sm:$0xff]  ;;  %v827_v18 = vld [vmem:[%s1082_s9 + $0x50] sm:$0xff] }
  0x12   : > { %940 = vmatpush.bf16.msra.mxu2 %v839_v1  ;;  %941 = vmatpush.bf16.msra.mxu3 %v839_v1  ;;  %v829_v11 = vld [vmem:[%s1082_s9 + $0x60] sm:$0xff]  ;;  %v830_v15 = vld [vmem:[%s1082_s9 + $0x68] sm:$0xff]  ;;  %v831_v19 = vld [vmem:[%s1082_s9 + $0x70] sm:$0xff] }
  0x13   : > { %v820_v20 = vld [vmem:[%s1082_s9 + $0x18] sm:$0xff]  ;;  %v1103_v26 = vld [vmem:[%s1171_s2] ss:$0 sm:$0xff] }
  0x14   : > { %v824_v21 = vld [vmem:[%s1082_s9 + $0x38] sm:$0xff] }
  0x15   : > { %423 = vmatpush.bf16.msra.mxu0 %v838_v2  ;;  %942 = vmatpush.bf16.msra.mxu1 %v838_v2  ;;  %v828_v22 = vld [vmem:[%s1082_s9 + $0x58] sm:$0xff] }
  0x16   : > { %943 = vmatpush.bf16.msra.mxu2 %v838_v2  ;;  %944 = vmatpush.bf16.msra.mxu3 %v838_v2  ;;  %v832_v23 = vld [vmem:[%s1082_s9 + $0x78] sm:$0xff] }
  0x19   : > { %424 = vmatpush.bf16.msra.mxu0 %v837_v3  ;;  %945 = vmatpush.bf16.msra.mxu1 %v837_v3 }
  0x1a   : > { %946 = vmatpush.bf16.msra.mxu2 %v837_v3  ;;  %947 = vmatpush.bf16.msra.mxu3 %v837_v3 }
  0x1d   : > { %425 = vmatpush.bf16.msra.mxu0 %v836_v4  ;;  %948 = vmatpush.bf16.msra.mxu1 %v836_v4 }
  0x1e   : > { %949 = vmatpush.bf16.msra.mxu2 %v836_v4  ;;  %950 = vmatpush.bf16.msra.mxu3 %v836_v4 }
  0x21   : > { %426 = vmatpush.bf16.msra.mxu0 %v835_v5  ;;  %951 = vmatpush.bf16.msra.mxu1 %v835_v5 }
  0x22   : > { %952 = vmatpush.bf16.msra.mxu2 %v835_v5  ;;  %953 = vmatpush.bf16.msra.mxu3 %v835_v5 }
  0x25   : > { %427 = vmatpush.bf16.msra.mxu0 %v834_v6  ;;  %954 = vmatpush.bf16.msra.mxu1 %v834_v6 }
  0x26   : > { %955 = vmatpush.bf16.msra.mxu2 %v834_v6  ;;  %956 = vmatpush.bf16.msra.mxu3 %v834_v6 }
  0x29   : > { %428 = vmatpush.bf16.msra.mxu0 %v833_v7  ;;  %957 = vmatpush.bf16.msra.mxu1 %v833_v7 }
  0x2a   : > { %958 = vmatpush.bf16.msra.mxu2 %v833_v7  ;;  %959 = vmatpush.bf16.msra.mxu3 %v833_v7 }
  0x2c   : > { %429 = vmatmul.bf16.vlgmr.msra.gmra.mxu0 %v817_v8  ;;  %449 = vmatmul.bf16.vlgmr.msra.gmra.mxu1 %v821_v9 }
  0x2d   : > { %469 = vmatmul.bf16.vlgmr.msra.gmra.mxu2 %v825_v10  ;;  %489 = vmatmul.bf16.vlgmr.msra.gmra.mxu3 %v829_v11 }
  0x3c   : > { %434 = vmatmul.bf16.gmra.mxu0 %v818_v12  ;;  %454 = vmatmul.bf16.gmra.mxu1 %v822_v13 }
  0x3d   : > { %474 = vmatmul.bf16.gmra.mxu2 %v826_v14  ;;  %494 = vmatmul.bf16.gmra.mxu3 %v830_v15 }
  0x4c   : > { %439 = vmatmul.bf16.gmra.mxu0 %v819_v16  ;;  %459 = vmatmul.bf16.gmra.mxu1 %v823_v17 }
  0x4d   : > { %479 = vmatmul.bf16.gmra.mxu2 %v827_v18  ;;  %499 = vmatmul.bf16.gmra.mxu3 %v831_v19 }
  0x5c   : > { %444 = vmatmul.bf16.gmra.mxu0 %v820_v20  ;;  %464 = vmatmul.bf16.gmra.mxu1 %v824_v21 }
  0x5d   : > { %484 = vmatmul.bf16.gmra.mxu2 %v828_v22  ;;  %504 = vmatmul.bf16.gmra.mxu3 %v832_v23 }
  0xa9   : > { %v430_v24 = vpop.f32.mrf.mxu0  ;;  %v450_v25 = vpop.f32.mrf.mxu1 }
  0xaa   : > { %v431_v27 = vadd.f32 %v1103_v26, %v430_v24  ;;  %v451_v28 = vadd.f32 %v1103_v26, %v450_v25 }
  0xac   : > { %v510_v35 = vmax.f32 %v431_v27, 0.0  ;;  %v518_v36 = vmax.f32 %v451_v28, 0.0 }
  0xb0   : > { %v470_v29 = vpop.f32.mrf.mxu2  ;;  %v490_v30 = vpop.f32.mrf.mxu3 }
  0xb1   : > { %v432_v31 = vpop.f32.mrf.mxu0  ;;  %v452_v32 = vpop.f32.mrf.mxu1  ;;  %v471_v41 = vadd.f32 %v1103_v26, %v470_v29  ;;  %v491_v42 = vadd.f32 %v1103_v26, %v490_v30 }
  0xb2   : > { %v433_v33 = vadd.f32 %v1103_v26, %v432_v31  ;;  %v453_v34 = vadd.f32 %v1103_v26, %v452_v32 }
  0xb3   : > { %v526_v49 = vmax.f32 %v471_v41, 0.0  ;;  %v534_v50 = vmax.f32 %v491_v42, 0.0 }
  0xb4   : > { %v511_v37 = vmax.f32 %v433_v33, 0.0  ;;  %v519_v38 = vmax.f32 %v453_v34, 0.0 }
  0xb6   : > { %v844_v39 = vpack.c.bf16 %v511_v37, %v510_v35  ;;  %v864_v40 = vpack.c.bf16 %v519_v38, %v518_v36 }
  0xb8   : > { %845 = vst [vmem:[%s1114_s17] sm:$0xff] %v844_v39   ;;  %v472_v43 = vpop.f32.mrf.mxu2  ;;  %v492_v44 = vpop.f32.mrf.mxu3 }
  0xb9   : > { %924 = vst [vmem:[%s1114_s17 + $0x20] sm:$0xff] %v864_v40   ;;  %v473_v45 = vadd.f32 %v1103_v26, %v472_v43  ;;  %v493_v46 = vadd.f32 %v1103_v26, %v492_v44  ;;  %v435_v47 = vpop.f32.mrf.mxu0  ;;  %v455_v48 = vpop.f32.mrf.mxu1 }
  0xba   : > { %v436_v55 = vadd.f32 %v1103_v26, %v435_v47  ;;  %v456_v56 = vadd.f32 %v1103_v26, %v455_v48 }
  0xbb   : > { %v527_v51 = vmax.f32 %v473_v45, 0.0  ;;  %v535_v52 = vmax.f32 %v493_v46, 0.0 }
  0xbc   : > { %v512_v63 = vmax.f32 %v436_v55, 0.0  ;;  %v520_v0 = vmax.f32 %v456_v56, 0.0 }
  0xbd   : > { %v884_v53 = vpack.c.bf16 %v527_v51, %v526_v49  ;;  %v904_v54 = vpack.c.bf16 %v535_v52, %v534_v50 }
  0xbf   : > { %928 = vst [vmem:[%s1114_s17 + $0x40] sm:$0xff] %v884_v53  }
  0xc0   : > { %932 = vst [vmem:[%s1114_s17 + $0x60] sm:$0xff] %v904_v54   ;;  %v475_v57 = vpop.f32.mrf.mxu2  ;;  %v495_v58 = vpop.f32.mrf.mxu3 }
  0xc1   : > { %v437_v59 = vpop.f32.mrf.mxu0  ;;  %v457_v60 = vpop.f32.mrf.mxu1  ;;  %v476_v5 = vadd.f32 %v1103_v26, %v475_v57  ;;  %v496_v6 = vadd.f32 %v1103_v26, %v495_v58 }
  0xc2   : > { %v438_v61 = vadd.f32 %v1103_v26, %v437_v59  ;;  %v458_v62 = vadd.f32 %v1103_v26, %v457_v60 }
  0xc3   : > { %v528_v13 = vmax.f32 %v476_v5, 0.0  ;;  %v536_v14 = vmax.f32 %v496_v6, 0.0 }
  0xc4   : > { %v513_v1 = vmax.f32 %v438_v61, 0.0  ;;  %v521_v2 = vmax.f32 %v458_v62, 0.0 }
  0xc6   : > { %v849_v3 = vpack.c.bf16 %v513_v1, %v512_v63  ;;  %v869_v4 = vpack.c.bf16 %v521_v2, %v520_v0 }
  0xc8   : > { %921 = vst [vmem:[%s1114_s17 + $0x8] sm:$0xff] %v849_v3   ;;  %v477_v7 = vpop.f32.mrf.mxu2  ;;  %v497_v8 = vpop.f32.mrf.mxu3 }
  0xc9   : > { %925 = vst [vmem:[%s1114_s17 + $0x28] sm:$0xff] %v869_v4   ;;  %v478_v9 = vadd.f32 %v1103_v26, %v477_v7  ;;  %v498_v10 = vadd.f32 %v1103_v26, %v497_v8  ;;  %v440_v11 = vpop.f32.mrf.mxu0  ;;  %v460_v12 = vpop.f32.mrf.mxu1 }
  0xca   : > { %v441_v19 = vadd.f32 %v1103_v26, %v440_v11  ;;  %v461_v20 = vadd.f32 %v1103_v26, %v460_v12 }
  0xcb   : > { %v529_v15 = vmax.f32 %v478_v9, 0.0  ;;  %v537_v16 = vmax.f32 %v498_v10, 0.0 }
  0xcc   : > { %v514_v28 = vmax.f32 %v441_v19, 0.0  ;;  %v522_v29 = vmax.f32 %v461_v20, 0.0 }
  0xcd   : > { %v889_v17 = vpack.c.bf16 %v529_v15, %v528_v13  ;;  %v909_v18 = vpack.c.bf16 %v537_v16, %v536_v14 }
  0xcf   : > { %929 = vst [vmem:[%s1114_s17 + $0x48] sm:$0xff] %v889_v17  }
  0xd0   : > { %933 = vst [vmem:[%s1114_s17 + $0x68] sm:$0xff] %v909_v18   ;;  %v480_v21 = vpop.f32.mrf.mxu2  ;;  %v500_v22 = vpop.f32.mrf.mxu3 }
  0xd1   : > { %v442_v23 = vpop.f32.mrf.mxu0  ;;  %v462_v24 = vpop.f32.mrf.mxu1  ;;  %v481_v34 = vadd.f32 %v1103_v26, %v480_v21  ;;  %v501_v35 = vadd.f32 %v1103_v26, %v500_v22 }
  0xd2   : > { %v443_v25 = vadd.f32 %v1103_v26, %v442_v23  ;;  %v463_v27 = vadd.f32 %v1103_v26, %v462_v24 }
  0xd3   : > { %v530_v42 = vmax.f32 %v481_v34, 0.0  ;;  %v538_v43 = vmax.f32 %v501_v35, 0.0 }
  0xd4   : > { %v515_v30 = vmax.f32 %v443_v25, 0.0  ;;  %v523_v31 = vmax.f32 %v463_v27, 0.0 }
  0xd6   : > { %v854_v32 = vpack.c.bf16 %v515_v30, %v514_v28  ;;  %v874_v33 = vpack.c.bf16 %v523_v31, %v522_v29 }
  0xd8   : > { %922 = vst [vmem:[%s1114_s17 + $0x10] sm:$0xff] %v854_v32   ;;  %v482_v36 = vpop.f32.mrf.mxu2  ;;  %v502_v37 = vpop.f32.mrf.mxu3 }
  0xd9   : > { %926 = vst [vmem:[%s1114_s17 + $0x30] sm:$0xff] %v874_v33   ;;  %v483_v38 = vadd.f32 %v1103_v26, %v482_v36  ;;  %v503_v39 = vadd.f32 %v1103_v26, %v502_v37  ;;  %v445_v40 = vpop.f32.mrf.mxu0  ;;  %v465_v41 = vpop.f32.mrf.mxu1 }
  0xda   : > { %v446_v48 = vadd.f32 %v1103_v26, %v445_v40  ;;  %v466_v49 = vadd.f32 %v1103_v26, %v465_v41 }
  0xdb   : > { %v531_v44 = vmax.f32 %v483_v38, 0.0  ;;  %v539_v45 = vmax.f32 %v503_v39, 0.0 }
  0xdc   : > { %v516_v56 = vmax.f32 %v446_v48, 0.0  ;;  %v524_v57 = vmax.f32 %v466_v49, 0.0 }
  0xdd   : > { %v894_v46 = vpack.c.bf16 %v531_v44, %v530_v42  ;;  %v914_v47 = vpack.c.bf16 %v539_v45, %v538_v43 }
  0xdf   : > { %930 = vst [vmem:[%s1114_s17 + $0x50] sm:$0xff] %v894_v46  }
  0xe0   : > { %934 = vst [vmem:[%s1114_s17 + $0x70] sm:$0xff] %v914_v47   ;;  %v485_v50 = vpop.f32.mrf.mxu2  ;;  %v505_v51 = vpop.f32.mrf.mxu3 }
  0xe1   : > { %v447_v52 = vpop.f32.mrf.mxu0  ;;  %v467_v53 = vpop.f32.mrf.mxu1  ;;  %v486_v62 = vadd.f32 %v1103_v26, %v485_v50  ;;  %v506_v63 = vadd.f32 %v1103_v26, %v505_v51 }
  0xe2   : > { %v448_v54 = vadd.f32 %v1103_v26, %v447_v52  ;;  %v468_v55 = vadd.f32 %v1103_v26, %v467_v53 }
  0xe3   : > { %v532_v4 = vmax.f32 %v486_v62, 0.0  ;;  %v540_v5 = vmax.f32 %v506_v63, 0.0 }
  0xe4   : > { %v517_v58 = vmax.f32 %v448_v54, 0.0  ;;  %v525_v59 = vmax.f32 %v468_v55, 0.0 }
  0xe6   : > { %v859_v60 = vpack.c.bf16 %v517_v58, %v516_v56  ;;  %v879_v61 = vpack.c.bf16 %v525_v59, %v524_v57 }
  0xe8   : > { %923 = vst [vmem:[%s1114_s17 + $0x18] sm:$0xff] %v859_v60   ;;  %v487_v0 = vpop.f32.mrf.mxu2  ;;  %v507_v1 = vpop.f32.mrf.mxu3 }
  0xe9   : > { %927 = vst [vmem:[%s1114_s17 + $0x38] sm:$0xff] %v879_v61   ;;  %v488_v2 = vadd.f32 %v1103_v26, %v487_v0  ;;  %v508_v3 = vadd.f32 %v1103_v26, %v507_v1 }
  0xeb   : > { %v533_v6 = vmax.f32 %v488_v2, 0.0  ;;  %v541_v7 = vmax.f32 %v508_v3, 0.0 }
  0xed   : > { %v899_v8 = vpack.c.bf16 %v533_v6, %v532_v4  ;;  %v919_v9 = vpack.c.bf16 %v541_v7, %v540_v5 }
  0xef   : > { %931 = vst [vmem:[%s1114_s17 + $0x58] sm:$0xff] %v899_v8  }
  0xf0   : > { %935 = vst [vmem:[%s1114_s17 + $0x78] sm:$0xff] %v919_v9  }
  0xf1 PF: > { %s13_s14 = sadd.s32 1, %s1007_s14   ;;  %s1173_s12 = smov %s1003_s13 }
  0xf2   : > { %p10_p5 = scmp.ge.s32.totalorder %s13_s14, 4   ;;  %s1174_s13 = smov %s1176_s15 }
  0xf4   :  { %12 = sbr.rel (!%p10_p5) target bundleno = 2 (0x2), region = 68 }

// kernel: bottleneck_forward.5
= control target key start
LH: loop header
LB: loop body
LE: loop exit
PB: predicated region body
PF: predicated region fallthrough
CT: control target
= control target key end

     0   :  { %s1159_s15 = smov 0   ;;  %s1161_s16 = smov 0   ;;  %s1337_s0 = inlined_call_operand.vmem [shape: bf16[512,128], index: 0, kind: input, shape index: {}]   ;;  %s1338_s1 = inlined_call_operand.vmem [shape: bf16[128,128], index: 1, kind: input, shape index: {}]   ;;  %s1339_s2 = inlined_call_operand.vmem [shape: f32[1,128], index: 2, kind: input, shape index: {}]   ;;  %s1340_s3 = inlined_call_operand.vmem [shape: bf16[512,128], index: 3, kind: input, shape index: {}]   ;;  %s1341_s4 = inlined_call_operand.vmem [shape: f32[512,128], index: 4, kind: output, shape index: {}]  }
   0x1   :  { %s1163_s17 = smov 0  }
   0x2 LB: > { %s26_s18 = sadd.s32 1, %s1128_s16  ;;  %p853_p0 = scmp.ge.s32.totalorder %s1132_s17, 1  ;;  %s1132_s17 = sphi %s1163_s17, %s14_s17   ;;  %s1128_s16 = sphi %s1161_s16, %s1343_s16   ;;  %s1124_s15 = sphi %s1159_s15, %s1342_s15  }
   0x3   : > { %p28_p1 = scmp.ge.s32.totalorder %s26_s18, 2  ;;  %p210_p2 = scmp.lt.s32.totalorder %s1132_s17, 3 }
   0x5   : > { %s1345_s18 = smov (%p28_p1, %s26_s18), 0  ;;  %p211_p3 = pnand %p853_p0, %p210_p2 }
   0x6   : > { %s854_s27 = sshll.u32 (!%p211_p3), %s1124_s15, 5 }
   0x7   : > { %214 = sbr.rel (%p211_p3) target bundleno = 241 (0xf1), region = 36  ;;  %p255_p4 = scmp.lt.s32.totalorder (!%p211_p3), %s854_s27, 63 }
   0xc   : > { %v981_v0 = vld [vmem:[%s1338_s1 + $0x38] sm:$0xff]  ;;  %v980_v1 = vld [vmem:[%s1338_s1 + $0x30] sm:$0xff]  ;;  %v979_v2 = vld [vmem:[%s1338_s1 + $0x28] sm:$0xff]  ;;  %s1347_s27 = smov (!%p255_p4, %s854_s27), 63 }
   0xd   : > { %481 = vmatpush.bf16.msra.mxu0 %v981_v0  ;;  %1061 = vmatpush.bf16.msra.mxu1 %v981_v0  ;;  %v978_v3 = vld [vmem:[%s1338_s1 + $0x20] sm:$0xff]  ;;  %v977_v4 = vld [vmem:[%s1338_s1 + $0x18] sm:$0xff]  ;;  %v976_v5 = vld [vmem:[%s1338_s1 + $0x10] sm:$0xff]  ;;  %s855_s8 = sshll.u32 %s1347_s27, 2  ;;  %s859_s22 = sshll.u32 %s1347_s27, 3 }
   0xe   : > { %1062 = vmatpush.bf16.msra.mxu2 %v981_v0  ;;  %1063 = vmatpush.bf16.msra.mxu3 %v981_v0  ;;  %v975_v6 = vld [vmem:[%s1338_s1 + $0x8] sm:$0xff]  ;;  %v974_v7 = vld [vmem:[%s1338_s1] sm:$0xff]  ;;  %s1212_s13 = scalar_lea.vmem %s1337_s0, %s855_s8  ;;  %s1235_s19 = scalar_lea.vmem %s1340_s3, %s855_s8 }
   0xf   : > { %v958_v8 = vld [vmem:[%s1212_s13] sm:$0xff]  ;;  %v959_v12 = vld [vmem:[%s1212_s13 + $0x8] sm:$0xff]  ;;  %v960_v16 = vld [vmem:[%s1212_s13 + $0x10] sm:$0xff]  ;;  %s1252_s25 = scalar_lea.vmem %s1341_s4, %s859_s22 }
  0x10   : > { %v962_v9 = vld [vmem:[%s1212_s13 + $0x20] sm:$0xff]  ;;  %v963_v13 = vld [vmem:[%s1212_s13 + $0x28] sm:$0xff]  ;;  %v964_v17 = vld [vmem:[%s1212_s13 + $0x30] sm:$0xff] }
  0x11   : > { %482 = vmatpush.bf16.msra.mxu0 %v980_v1  ;;  %1064 = vmatpush.bf16.msra.mxu1 %v980_v1  ;;  %v966_v10 = vld [vmem:[%s1212_s13 + $0x40] sm:$0xff]  ;;  %v967_v14 = vld [vmem:[%s1212_s13 + $0x48] sm:$0xff]  ;;  %v968_v18 = vld [vmem:[%s1212_s13 + $0x50] sm:$0xff] }
  0x12   : > { %1065 = vmatpush.bf16.msra.mxu2 %v980_v1  ;;  %1066 = vmatpush.bf16.msra.mxu3 %v980_v1  ;;  %v970_v11 = vld [vmem:[%s1212_s13 + $0x60] sm:$0xff]  ;;  %v971_v15 = vld [vmem:[%s1212_s13 + $0x68] sm:$0xff]  ;;  %v972_v19 = vld [vmem:[%s1212_s13 + $0x70] sm:$0xff] }
  0x13   : > { %v961_v20 = vld [vmem:[%s1212_s13 + $0x18] sm:$0xff]  ;;  %v983_v24 = vld [vmem:[%s1235_s19] sm:$0xff]   ;;  %v1046_v57 = vld [vmem:[%s1235_s19 + $0x8] sm:$0xff]  }
  0x14   : > { %v965_v21 = vld [vmem:[%s1212_s13 + $0x38] sm:$0xff]  ;;  %v1049_v25 = vld [vmem:[%s1235_s19 + $0x20] sm:$0xff]   ;;  %v984_v27 = vunpack.c.l.bf16 %v983_v24  ;;  %v985_v43 = vunpack.c.h.bf16 %v983_v24  ;;  %v1050_v58 = vld [vmem:[%s1235_s19 + $0x28] sm:$0xff]   ;;  %v988_v1 = vunpack.c.l.bf16 %v1046_v57 }
  0x15   : > { %483 = vmatpush.bf16.msra.mxu0 %v979_v2  ;;  %1067 = vmatpush.bf16.msra.mxu1 %v979_v2  ;;  %v969_v22 = vld [vmem:[%s1212_s13 + $0x58] sm:$0xff]  ;;  %v1242_v26 = vld [vmem:[%s1339_s2] ss:$0 sm:$0xff]  ;;  %v1000_v28 = vunpack.c.l.bf16 %v1049_v25  ;;  %v1001_v44 = vunpack.c.h.bf16 %v1049_v25  ;;  %v1005_v24 = vunpack.c.h.bf16 %v1050_v58 }
  0x16   : > { %1068 = vmatpush.bf16.msra.mxu2 %v979_v2  ;;  %1069 = vmatpush.bf16.msra.mxu3 %v979_v2  ;;  %v973_v23 = vld [vmem:[%s1212_s13 + $0x78] sm:$0xff]  ;;  %v1053_v35 = vld [vmem:[%s1235_s19 + $0x40] sm:$0xff]   ;;  %v1004_v2 = vunpack.c.l.bf16 %v1050_v58  ;;  %v1055_v58 = vld [vmem:[%s1235_s19 + $0x50] sm:$0xff]  }
  0x17   : > { %v1057_v36 = vld [vmem:[%s1235_s19 + $0x60] sm:$0xff]   ;;  %v1016_v39 = vunpack.c.l.bf16 %v1053_v35  ;;  %v1017_v61 = vunpack.c.h.bf16 %v1053_v35 }
  0x18   : > { %v1032_v40 = vunpack.c.l.bf16 %v1057_v36  ;;  %v1033_v62 = vunpack.c.h.bf16 %v1057_v36 }
  0x19   : > { %484 = vmatpush.bf16.msra.mxu0 %v978_v3  ;;  %1070 = vmatpush.bf16.msra.mxu1 %v978_v3 }
  0x1a   : > { %1071 = vmatpush.bf16.msra.mxu2 %v978_v3  ;;  %1072 = vmatpush.bf16.msra.mxu3 %v978_v3 }
  0x1d   : > { %485 = vmatpush.bf16.msra.mxu0 %v977_v4  ;;  %1073 = vmatpush.bf16.msra.mxu1 %v977_v4 }
  0x1e   : > { %1074 = vmatpush.bf16.msra.mxu2 %v977_v4  ;;  %1075 = vmatpush.bf16.msra.mxu3 %v977_v4 }
  0x21   : > { %486 = vmatpush.bf16.msra.mxu0 %v976_v5  ;;  %1076 = vmatpush.bf16.msra.mxu1 %v976_v5 }
  0x22   : > { %1077 = vmatpush.bf16.msra.mxu2 %v976_v5  ;;  %1078 = vmatpush.bf16.msra.mxu3 %v976_v5 }
  0x25   : > { %487 = vmatpush.bf16.msra.mxu0 %v975_v6  ;;  %1079 = vmatpush.bf16.msra.mxu1 %v975_v6 }
  0x26   : > { %1080 = vmatpush.bf16.msra.mxu2 %v975_v6  ;;  %1081 = vmatpush.bf16.msra.mxu3 %v975_v6 }
  0x29   : > { %488 = vmatpush.bf16.msra.mxu0 %v974_v7  ;;  %1082 = vmatpush.bf16.msra.mxu1 %v974_v7 }
  0x2a   : > { %1083 = vmatpush.bf16.msra.mxu2 %v974_v7  ;;  %1084 = vmatpush.bf16.msra.mxu3 %v974_v7 }
  0x2c   : > { %489 = vmatmul.bf16.vlgmr.msra.gmra.mxu0 %v958_v8  ;;  %509 = vmatmul.bf16.vlgmr.msra.gmra.mxu1 %v962_v9 }
  0x2d   : > { %529 = vmatmul.bf16.vlgmr.msra.gmra.mxu2 %v966_v10  ;;  %549 = vmatmul.bf16.vlgmr.msra.gmra.mxu3 %v970_v11 }
  0x3c   : > { %494 = vmatmul.bf16.gmra.mxu0 %v959_v12  ;;  %514 = vmatmul.bf16.gmra.mxu1 %v963_v13  ;;  %v1054_v13 = vld [vmem:[%s1235_s19 + $0x48] sm:$0xff]  }
  0x3d   : > { %534 = vmatmul.bf16.gmra.mxu2 %v967_v14  ;;  %554 = vmatmul.bf16.gmra.mxu3 %v971_v15  ;;  %v1058_v14 = vld [vmem:[%s1235_s19 + $0x68] sm:$0xff]  }
  0x4c   : > { %499 = vmatmul.bf16.gmra.mxu0 %v960_v16  ;;  %519 = vmatmul.bf16.gmra.mxu1 %v964_v17 }
  0x4d   : > { %539 = vmatmul.bf16.gmra.mxu2 %v968_v18  ;;  %559 = vmatmul.bf16.gmra.mxu3 %v972_v19  ;;  %v1020_v19 = vunpack.c.l.bf16 %v1054_v13 }
  0x5c   : > { %504 = vmatmul.bf16.gmra.mxu0 %v961_v20  ;;  %524 = vmatmul.bf16.gmra.mxu1 %v965_v21  ;;  %v1036_v20 = vunpack.c.l.bf16 %v1058_v14 }
  0x5d   : > { %544 = vmatmul.bf16.gmra.mxu2 %v969_v22  ;;  %564 = vmatmul.bf16.gmra.mxu3 %v973_v23  ;;  %v989_v23 = vunpack.c.h.bf16 %v1046_v57 }
  0xa9   : > { %v490_v29 = vpop.f32.mrf.mxu0  ;;  %v510_v30 = vpop.f32.mrf.mxu1 }
  0xaa   : > { %v491_v31 = vadd.f32 %v1242_v26, %v490_v29  ;;  %v511_v32 = vadd.f32 %v1242_v26, %v510_v30 }
  0xac   : > { %v634_v33 = vadd.f32 %v984_v27, %v491_v31  ;;  %v642_v34 = vadd.f32 %v1000_v28, %v511_v32 }
  0xae   : > { %v666_v37 = vmax.f32 %v634_v33, 0.0  ;;  %v674_v38 = vmax.f32 %v642_v34, 0.0 }
  0xb0   : > { %698 = vst [vmem:[%s1252_s25] sm:$0xff] %v666_v37  ;;  %v530_v41 = vpop.f32.mrf.mxu2  ;;  %v550_v42 = vpop.f32.mrf.mxu3 }
  0xb1   : > { %706 = vst [vmem:[%s1252_s25 + $0x40] sm:$0xff] %v674_v38  ;;  %v531_v45 = vadd.f32 %v1242_v26, %v530_v41  ;;  %v551_v46 = vadd.f32 %v1242_v26, %v550_v42  ;;  %v492_v47 = vpop.f32.mrf.mxu0  ;;  %v512_v48 = vpop.f32.mrf.mxu1  ;;  %v1047_v38 = vld [vmem:[%s1235_s19 + $0x10] sm:$0xff]   ;;  %v1021_v42 = vunpack.c.h.bf16 %v1054_v13 }
  0xb2   : > { %v493_v49 = vadd.f32 %v1242_v26, %v492_v47  ;;  %v513_v50 = vadd.f32 %v1242_v26, %v512_v48 }
  0xb3   : > { %v650_v51 = vadd.f32 %v1016_v39, %v531_v45  ;;  %v658_v52 = vadd.f32 %v1032_v40, %v551_v46  ;;  %v1051_v39 = vld [vmem:[%s1235_s19 + $0x30] sm:$0xff]   ;;  %v992_v46 = vunpack.c.l.bf16 %v1047_v38 }
  0xb4   : > { %v635_v53 = vadd.f32 %v985_v43, %v493_v49  ;;  %v643_v54 = vadd.f32 %v1001_v44, %v513_v50  ;;  %v1037_v43 = vunpack.c.h.bf16 %v1058_v14  ;;  %v1008_v47 = vunpack.c.l.bf16 %v1051_v39 }
  0xb5   : > { %v682_v55 = vmax.f32 %v650_v51, 0.0  ;;  %v690_v56 = vmax.f32 %v658_v52, 0.0 }
  0xb6   : > { %v667_v59 = vmax.f32 %v635_v53, 0.0  ;;  %v675_v60 = vmax.f32 %v643_v54, 0.0 }
  0xb7   : > { %714 = vst [vmem:[%s1252_s25 + $0x80] sm:$0xff] %v682_v55 }
  0xb8   : > { %722 = vst [vmem:[%s1252_s25 + $0xc0] sm:$0xff] %v690_v56  ;;  %v532_v63 = vpop.f32.mrf.mxu2  ;;  %v552_v0 = vpop.f32.mrf.mxu3 }
  0xb9   : > { %699 = vst [vmem:[%s1252_s25 + $0x8] sm:$0xff] %v667_v59  ;;  %v533_v3 = vadd.f32 %v1242_v26, %v532_v63  ;;  %v553_v4 = vadd.f32 %v1242_v26, %v552_v0  ;;  %v495_v5 = vpop.f32.mrf.mxu0  ;;  %v515_v6 = vpop.f32.mrf.mxu1  ;;  %v1059_v59 = vld [vmem:[%s1235_s19 + $0x70] sm:$0xff]   ;;  %v1024_v0 = vunpack.c.l.bf16 %v1055_v58 }
  0xba   : > { %707 = vst [vmem:[%s1252_s25 + $0x48] sm:$0xff] %v675_v60  ;;  %v496_v7 = vadd.f32 %v1242_v26, %v495_v5  ;;  %v516_v8 = vadd.f32 %v1242_v26, %v515_v6  ;;  %v1009_v5 = vunpack.c.h.bf16 %v1051_v39  ;;  %v1056_v39 = vld [vmem:[%s1235_s19 + $0x58] sm:$0xff]  }
  0xbb   : > { %v651_v9 = vadd.f32 %v1017_v61, %v533_v3  ;;  %v659_v10 = vadd.f32 %v1033_v62, %v553_v4  ;;  %v993_v4 = vunpack.c.h.bf16 %v1047_v38 }
  0xbc   : > { %v636_v11 = vadd.f32 %v988_v1, %v496_v7  ;;  %v644_v12 = vadd.f32 %v1004_v2, %v516_v8  ;;  %v1040_v1 = vunpack.c.l.bf16 %v1059_v59 }
  0xbd   : > { %v683_v15 = vmax.f32 %v651_v9, 0.0  ;;  %v691_v16 = vmax.f32 %v659_v10, 0.0 }
  0xbe   : > { %v668_v17 = vmax.f32 %v636_v11, 0.0  ;;  %v676_v18 = vmax.f32 %v644_v12, 0.0 }
  0xbf   : > { %715 = vst [vmem:[%s1252_s25 + $0x88] sm:$0xff] %v683_v15 }
  0xc0   : > { %723 = vst [vmem:[%s1252_s25 + $0xc8] sm:$0xff] %v691_v16  ;;  %v535_v21 = vpop.f32.mrf.mxu2  ;;  %v555_v22 = vpop.f32.mrf.mxu3 }
  0xc1   : > { %700 = vst [vmem:[%s1252_s25 + $0x10] sm:$0xff] %v668_v17  ;;  %v536_v25 = vadd.f32 %v1242_v26, %v535_v21  ;;  %v556_v27 = vadd.f32 %v1242_v26, %v555_v22  ;;  %v497_v28 = vpop.f32.mrf.mxu0  ;;  %v517_v29 = vpop.f32.mrf.mxu1  ;;  %v1025_v22 = vunpack.c.h.bf16 %v1055_v58 }
  0xc2   : > { %708 = vst [vmem:[%s1252_s25 + $0x50] sm:$0xff] %v676_v18  ;;  %v498_v30 = vadd.f32 %v1242_v26, %v497_v28  ;;  %v518_v31 = vadd.f32 %v1242_v26, %v517_v29  ;;  %v1048_v18 = vld [vmem:[%s1235_s19 + $0x18] sm:$0xff]  }
  0xc3   : > { %v652_v32 = vadd.f32 %v1020_v19, %v536_v25  ;;  %v660_v33 = vadd.f32 %v1036_v20, %v556_v27  ;;  %v1052_v19 = vld [vmem:[%s1235_s19 + $0x38] sm:$0xff]   ;;  %v996_v27 = vunpack.c.l.bf16 %v1048_v18 }
  0xc4   : > { %v637_v34 = vadd.f32 %v989_v23, %v498_v30  ;;  %v645_v35 = vadd.f32 %v1005_v24, %v518_v31  ;;  %v1041_v23 = vunpack.c.h.bf16 %v1059_v59  ;;  %v1012_v28 = vunpack.c.l.bf16 %v1052_v19 }
  0xc5   : > { %v684_v36 = vmax.f32 %v652_v32, 0.0  ;;  %v692_v37 = vmax.f32 %v660_v33, 0.0 }
  0xc6   : > { %v669_v40 = vmax.f32 %v637_v34, 0.0  ;;  %v677_v41 = vmax.f32 %v645_v35, 0.0 }
  0xc7   : > { %716 = vst [vmem:[%s1252_s25 + $0x90] sm:$0xff] %v684_v36 }
  0xc8   : > { %724 = vst [vmem:[%s1252_s25 + $0xd0] sm:$0xff] %v692_v37  ;;  %v537_v44 = vpop.f32.mrf.mxu2  ;;  %v557_v45 = vpop.f32.mrf.mxu3 }
  0xc9   : > { %701 = vst [vmem:[%s1252_s25 + $0x18] sm:$0xff] %v669_v40  ;;  %v538_v48 = vadd.f32 %v1242_v26, %v537_v44  ;;  %v558_v49 = vadd.f32 %v1242_v26, %v557_v45  ;;  %v500_v50 = vpop.f32.mrf.mxu0  ;;  %v520_v51 = vpop.f32.mrf.mxu1  ;;  %v1060_v40 = vld [vmem:[%s1235_s19 + $0x78] sm:$0xff]   ;;  %v1028_v45 = vunpack.c.l.bf16 %v1056_v39 }
  0xca   : > { %709 = vst [vmem:[%s1252_s25 + $0x58] sm:$0xff] %v677_v41  ;;  %v501_v52 = vadd.f32 %v1242_v26, %v500_v50  ;;  %v521_v53 = vadd.f32 %v1242_v26, %v520_v51  ;;  %v1013_v50 = vunpack.c.h.bf16 %v1052_v19 }
  0xcb   : > { %v653_v54 = vadd.f32 %v1021_v42, %v538_v48  ;;  %v661_v55 = vadd.f32 %v1037_v43, %v558_v49  ;;  %v997_v49 = vunpack.c.h.bf16 %v1048_v18 }
  0xcc   : > { %v638_v56 = vadd.f32 %v992_v46, %v501_v52  ;;  %v646_v57 = vadd.f32 %v1008_v47, %v521_v53  ;;  %v1044_v46 = vunpack.c.l.bf16 %v1060_v40 }
  0xcd   : > { %v685_v60 = vmax.f32 %v653_v54, 0.0  ;;  %v693_v61 = vmax.f32 %v661_v55, 0.0 }
  0xce   : > { %v670_v62 = vmax.f32 %v638_v56, 0.0  ;;  %v678_v63 = vmax.f32 %v646_v57, 0.0 }
  0xcf   : > { %717 = vst [vmem:[%s1252_s25 + $0x98] sm:$0xff] %v685_v60 }
  0xd0   : > { %725 = vst [vmem:[%s1252_s25 + $0xd8] sm:$0xff] %v693_v61  ;;  %v540_v2 = vpop.f32.mrf.mxu2  ;;  %v560_v3 = vpop.f32.mrf.mxu3 }
  0xd1   : > { %702 = vst [vmem:[%s1252_s25 + $0x20] sm:$0xff] %v670_v62  ;;  %v541_v6 = vadd.f32 %v1242_v26, %v540_v2  ;;  %v561_v7 = vadd.f32 %v1242_v26, %v560_v3  ;;  %v502_v8 = vpop.f32.mrf.mxu0  ;;  %v522_v9 = vpop.f32.mrf.mxu1  ;;  %v1045_v2 = vunpack.c.h.bf16 %v1060_v40 }
  0xd2   : > { %710 = vst [vmem:[%s1252_s25 + $0x60] sm:$0xff] %v678_v63  ;;  %v503_v10 = vadd.f32 %v1242_v26, %v502_v8  ;;  %v523_v11 = vadd.f32 %v1242_v26, %v522_v9 }
  0xd3   : > { %v654_v12 = vadd.f32 %v1024_v0, %v541_v6  ;;  %v662_v13 = vadd.f32 %v1040_v1, %v561_v7  ;;  %v1029_v1 = vunpack.c.h.bf16 %v1056_v39 }
  0xd4   : > { %v639_v14 = vadd.f32 %v993_v4, %v503_v10  ;;  %v647_v15 = vadd.f32 %v1009_v5, %v523_v11 }
  0xd5   : > { %v686_v16 = vmax.f32 %v654_v12, 0.0  ;;  %v694_v17 = vmax.f32 %v662_v13, 0.0 }
  0xd6   : > { %v671_v20 = vmax.f32 %v639_v14, 0.0  ;;  %v679_v21 = vmax.f32 %v647_v15, 0.0 }
  0xd7   : > { %718 = vst [vmem:[%s1252_s25 + $0xa0] sm:$0xff] %v686_v16 }
  0xd8   : > { %726 = vst [vmem:[%s1252_s25 + $0xe0] sm:$0xff] %v694_v17  ;;  %v542_v24 = vpop.f32.mrf.mxu2  ;;  %v562_v25 = vpop.f32.mrf.mxu3 }
  0xd9   : > { %703 = vst [vmem:[%s1252_s25 + $0x28] sm:$0xff] %v671_v20  ;;  %v543_v29 = vadd.f32 %v1242_v26, %v542_v24  ;;  %v563_v30 = vadd.f32 %v1242_v26, %v562_v25  ;;  %v505_v31 = vpop.f32.mrf.mxu0  ;;  %v525_v32 = vpop.f32.mrf.mxu1 }
  0xda   : > { %711 = vst [vmem:[%s1252_s25 + $0x68] sm:$0xff] %v679_v21  ;;  %v506_v33 = vadd.f32 %v1242_v26, %v505_v31  ;;  %v526_v34 = vadd.f32 %v1242_v26, %v525_v32 }
  0xdb   : > { %v655_v35 = vadd.f32 %v1025_v22, %v543_v29  ;;  %v663_v36 = vadd.f32 %v1041_v23, %v563_v30 }
  0xdc   : > { %v640_v37 = vadd.f32 %v996_v27, %v506_v33  ;;  %v648_v38 = vadd.f32 %v1012_v28, %v526_v34 }
  0xdd   : > { %v687_v41 = vmax.f32 %v655_v35, 0.0  ;;  %v695_v42 = vmax.f32 %v663_v36, 0.0 }
  0xde   : > { %v672_v43 = vmax.f32 %v640_v37, 0.0  ;;  %v680_v44 = vmax.f32 %v648_v38, 0.0 }
  0xdf   : > { %719 = vst [vmem:[%s1252_s25 + $0xa8] sm:$0xff] %v687_v41 }
  0xe0   : > { %727 = vst [vmem:[%s1252_s25 + $0xe8] sm:$0xff] %v695_v42  ;;  %v545_v47 = vpop.f32.mrf.mxu2  ;;  %v565_v48 = vpop.f32.mrf.mxu3 }
  0xe1   : > { %704 = vst [vmem:[%s1252_s25 + $0x30] sm:$0xff] %v672_v43  ;;  %v546_v51 = vadd.f32 %v1242_v26, %v545_v47  ;;  %v566_v52 = vadd.f32 %v1242_v26, %v565_v48  ;;  %v507_v53 = vpop.f32.mrf.mxu0  ;;  %v527_v54 = vpop.f32.mrf.mxu1 }
  0xe2   : > { %712 = vst [vmem:[%s1252_s25 + $0x70] sm:$0xff] %v680_v44  ;;  %v508_v55 = vadd.f32 %v1242_v26, %v507_v53  ;;  %v528_v56 = vadd.f32 %v1242_v26, %v527_v54 }
  0xe3   : > { %v656_v57 = vadd.f32 %v1028_v45, %v546_v51  ;;  %v664_v58 = vadd.f32 %v1044_v46, %v566_v52 }
  0xe4   : > { %v641_v59 = vadd.f32 %v997_v49, %v508_v55  ;;  %v649_v60 = vadd.f32 %v1013_v50, %v528_v56 }
  0xe5   : > { %v688_v61 = vmax.f32 %v656_v57, 0.0  ;;  %v696_v62 = vmax.f32 %v664_v58, 0.0 }
  0xe6   : > { %v673_v63 = vmax.f32 %v641_v59, 0.0  ;;  %v681_v0 = vmax.f32 %v649_v60, 0.0 }
  0xe7   : > { %720 = vst [vmem:[%s1252_s25 + $0xb0] sm:$0xff] %v688_v61 }
  0xe8   : > { %728 = vst [vmem:[%s1252_s25 + $0xf0] sm:$0xff] %v696_v62  ;;  %v547_v3 = vpop.f32.mrf.mxu2  ;;  %v567_v4 = vpop.f32.mrf.mxu3 }
  0xe9   : > { %705 = vst [vmem:[%s1252_s25 + $0x38] sm:$0xff] %v673_v63  ;;  %v548_v5 = vadd.f32 %v1242_v26, %v547_v3  ;;  %v568_v6 = vadd.f32 %v1242_v26, %v567_v4 }
  0xea   : > { %713 = vst [vmem:[%s1252_s25 + $0x78] sm:$0xff] %v681_v0 }
  0xeb   : > { %v657_v7 = vadd.f32 %v1029_v1, %v548_v5  ;;  %v665_v8 = vadd.f32 %v1045_v2, %v568_v6 }
  0xed   : > { %v689_v9 = vmax.f32 %v657_v7, 0.0  ;;  %v697_v10 = vmax.f32 %v665_v8, 0.0 }
  0xef   : > { %721 = vst [vmem:[%s1252_s25 + $0xb8] sm:$0xff] %v689_v9 }
  0xf0   : > { %729 = vst [vmem:[%s1252_s25 + $0xf8] sm:$0xff] %v697_v10 }
  0xf1 PF: > { %s14_s17 = sadd.s32 1, %s1132_s17   ;;  %s1342_s15 = smov %s1128_s16 }
  0xf2   : > { %p11_p5 = scmp.ge.s32.totalorder %s14_s17, 4   ;;  %s1343_s16 = smov %s1345_s18 }
  0xf4   :  { %13 = sbr.rel (!%p11_p5) target bundleno = 2 (0x2), region = 75 }

// kernel: bottleneck_forward.4
= control target key start
LH: loop header
LB: loop body
LE: loop exit
PB: predicated region body
PF: predicated region fallthrough
CT: control target
= control target key end

     0   :  { %s6703_s12 = smov 0   ;;  %s6705_s13 = smov 0   ;;  %s8144_s0 = inlined_call_operand.vmem [shape: bf16[2,18,18,128], index: 0, kind: input, shape index: {}]   ;;  %s8145_s1 = inlined_call_operand.vmem [shape: bf16[3,3,128,128], index: 1, kind: input, shape index: {}]   ;;  %s8146_s2 = inlined_call_operand.vmem [shape: f32[1,128], index: 2, kind: input, shape index: {}]   ;;  %s8147_s3 = inlined_call_operand.vmem [shape: bf16[2,256,128], index: 3, kind: output, shape index: {}]  }
   0x1   :  { %s6707_s14 = smov 0  }
   0x2 LB: > { %s25_s15 = sadd.s32 1, %s6677_s13  ;;  %p5474_p0 = scmp.ge.s32.totalorder %s6681_s14, 1  ;;  %s6681_s14 = sphi %s6707_s14, %s13_s14   ;;  %s6677_s13 = sphi %s6705_s13, %s8171_s13   ;;  %s6673_s12 = sphi %s6703_s12, %s8170_s12  }
   0x3   : > { %p27_p1 = scmp.ge.s32.totalorder %s25_s15, 2  ;;  %p168_p2 = scmp.lt.s32.totalorder %s6681_s14, 3 }
   0x5   : > { %s8173_s15 = smov (%p27_p1, %s25_s15), 0  ;;  %p169_p3 = pnand %p5474_p0, %p168_p2 }
   0x7   : > { %172 = sbr.rel (%p169_p3) target bundleno = 757 (0x2f5), region = 32 }
   0xc   : > { %v6416_v0 = vld [vmem:[%s8145_s1 + $0x38] sm:$0xff]  ;;  %v6415_v1 = vld [vmem:[%s8145_s1 + $0x30] sm:$0xff]  ;;  %v6414_v2 = vld [vmem:[%s8145_s1 + $0x28] sm:$0xff]  ;;  %p202_p4 = scmp.lt.s32.totalorder %s6673_s12, 1  ;;  %vm679_vm0 = vsmask.f32 3328 }
   0xd   : > { %6608 = vmatpush.bf16.msra.mxu1 %v6416_v0  ;;  %6609 = vmatpush.bf16.msra.mxu2 %v6416_v0  ;;  %v6413_v3 = vld [vmem:[%s8145_s1 + $0x20] sm:$0xff]  ;;  %v6412_v4 = vld [vmem:[%s8145_s1 + $0x18] sm:$0xff]  ;;  %v6411_v5 = vld [vmem:[%s8145_s1 + $0x10] sm:$0xff]  ;;  %vm680_vm1 = vsmask.f32 7440  ;;  %vm1476_vm2 = vcmask 1042432  }
   0xe   : > { %6610 = vmatpush.bf16.msra.mxu3 %v6416_v0  ;;  %478 = vmatpush.bf16.msra.mxu0 %v6416_v0  ;;  %s8175_s12 = smov (!%p202_p4, %s6673_s12), 1  ;;  %v6410_v6 = vld [vmem:[%s8145_s1 + $0x8] sm:$0xff]  ;;  %v6409_v7 = vld [vmem:[%s8145_s1] sm:$0xff]  ;;  %v6432_v8 = vld [vmem:[%s8145_s1 + $0xb8] sm:$0xff]  ;;  %vm1477_vm3 = vcmask 1046532  }
   0xf   : > { %s6632_s30 = smul.u32 216, %s8175_s12  ;;  %v6456_v9 = vld [vmem:[%s8145_s1 + $0xf8] sm:$0xff]  ;;  %v6431_v16 = vld [vmem:[%s8145_s1 + $0xb0] sm:$0xff]  ;;  %v6430_v20 = vld [vmem:[%s8145_s1 + $0xa8] sm:$0xff]  ;;  %s6392_s6 = sshll.u32 %s8175_s12, 7 }
  0x10   : > { %v6424_v14 = vld [vmem:[%s8145_s1 + $0x78] sm:$0xff]  ;;  %v6455_v17 = vld [vmem:[%s8145_s1 + $0xf0] sm:$0xff]  ;;  %v6454_v21 = vld [vmem:[%s8145_s1 + $0xe8] sm:$0xff]  ;;  %s7922_s9 = scalar_lea.vmem %s8147_s3, %s6392_s6 }
  0x11   : > { %6611 = vmatpush.bf16.msra.mxu1 %v6415_v1  ;;  %6612 = vmatpush.bf16.msra.mxu2 %v6415_v1  ;;  %s6755_s8 = scalar_lea.vmem %s8144_s0, %s6632_s30  ;;  %v6464_v15 = vld [vmem:[%s8145_s1 + $0x138] sm:$0xff]  ;;  %v6423_v18 = vld [vmem:[%s8145_s1 + $0x70] sm:$0xff]  ;;  %v6422_v22 = vld [vmem:[%s8145_s1 + $0x68] sm:$0xff] }
  0x12   : > { %6613 = vmatpush.bf16.msra.mxu3 %v6415_v1  ;;  %479 = vmatpush.bf16.msra.mxu0 %v6415_v1  ;;  %v6397_v10 = vld [vmem:[%s6755_s8 + $0x30] sm:$0xff]  ;;  %v6401_v11 = vld [vmem:[%s6755_s8 + $0x60] sm:$0xff]  ;;  %v6462_v23 = vld [vmem:[%s8145_s1 + $0x128] sm:$0xff] }
  0x13   : > { %v6405_v12 = vld [vmem:[%s6755_s8 + $0x90] sm:$0xff]  ;;  %v6393_v13 = vld [vmem:[%s6755_s8] sm:$0xff]  ;;  %v6428_v28 = vld [vmem:[%s8145_s1 + $0x98] sm:$0xff] }
  0x14   : > { %v6463_v19 = vld [vmem:[%s8145_s1 + $0x130] sm:$0xff]  ;;  %v6429_v24 = vld [vmem:[%s8145_s1 + $0xa0] sm:$0xff]  ;;  %v6452_v29 = vld [vmem:[%s8145_s1 + $0xd8] sm:$0xff] }
  0x15   : > { %6614 = vmatpush.bf16.msra.mxu1 %v6414_v2  ;;  %6615 = vmatpush.bf16.msra.mxu2 %v6414_v2  ;;  %v6453_v25 = vld [vmem:[%s8145_s1 + $0xe0] sm:$0xff]  ;;  %v6402_v31 = vld [vmem:[%s6755_s8 + $0x6c] sm:$0xff]  ;;  %v6420_v34 = vld [vmem:[%s8145_s1 + $0x58] sm:$0xff] }
  0x16   : > { %6616 = vmatpush.bf16.msra.mxu3 %v6414_v2  ;;  %480 = vmatpush.bf16.msra.mxu0 %v6414_v2  ;;  %v6421_v26 = vld [vmem:[%s8145_s1 + $0x60] sm:$0xff]  ;;  %v6394_v33 = vld [vmem:[%s6755_s8 + $0xc] sm:$0xff]  ;;  %v6460_v35 = vld [vmem:[%s8145_s1 + $0x118] sm:$0xff] }
  0x17   : > { %v6461_v27 = vld [vmem:[%s8145_s1 + $0x120] sm:$0xff]  ;;  %v6427_v36 = vld [vmem:[%s8145_s1 + $0x90] sm:$0xff]  ;;  %v6426_v40 = vld [vmem:[%s8145_s1 + $0x88] sm:$0xff] }
  0x18   : > { %v6398_v30 = vld [vmem:[%s6755_s8 + $0x3c] sm:$0xff]  ;;  %v6451_v37 = vld [vmem:[%s8145_s1 + $0xd0] sm:$0xff]  ;;  %v6450_v41 = vld [vmem:[%s8145_s1 + $0xc8] sm:$0xff] }
  0x19   : > { %6617 = vmatpush.bf16.msra.mxu1 %v6413_v3  ;;  %6618 = vmatpush.bf16.msra.mxu2 %v6413_v3  ;;  %v6406_v32 = vld [vmem:[%s6755_s8 + $0x9c] sm:$0xff]  ;;  %v6419_v38 = vld [vmem:[%s8145_s1 + $0x50] sm:$0xff]  ;;  %v6418_v42 = vld [vmem:[%s8145_s1 + $0x48] sm:$0xff] }
  0x1a   : > { %6619 = vmatpush.bf16.msra.mxu3 %v6413_v3  ;;  %481 = vmatpush.bf16.msra.mxu0 %v6413_v3  ;;  %v6459_v39 = vld [vmem:[%s8145_s1 + $0x110] sm:$0xff]  ;;  %v6458_v43 = vld [vmem:[%s8145_s1 + $0x108] sm:$0xff]  ;;  %v6425_v44 = vld [vmem:[%s8145_s1 + $0x80] sm:$0xff] }
  0x1b   : > { %v6449_v45 = vld [vmem:[%s8145_s1 + $0xc0] sm:$0xff]  ;;  %v6399_v48 = vld [vmem:[%s6755_s8 + $0x48] sm:$0xff]  ;;  %v6403_v49 = vld [vmem:[%s6755_s8 + $0x78] sm:$0xff] }
  0x1c   : > { %v6417_v46 = vld [vmem:[%s8145_s1 + $0x40] sm:$0xff]  ;;  %v6407_v50 = vld [vmem:[%s6755_s8 + $0xa8] sm:$0xff]  ;;  %v6395_v51 = vld [vmem:[%s6755_s8 + $0x18] sm:$0xff] }
  0x1d   : > { %6620 = vmatpush.bf16.msra.mxu1 %v6412_v4  ;;  %6621 = vmatpush.bf16.msra.mxu2 %v6412_v4  ;;  %v6457_v47 = vld [vmem:[%s8145_s1 + $0x100] sm:$0xff]  ;;  %v6496_v54 = vld [vmem:[%s8145_s1 + $0x1b8] sm:$0xff]  ;;  %v5830_v57 = vld [vmem:[%s6755_s8 + $0xc] sm:$0xf] }
  0x1e   : > { %6622 = vmatpush.bf16.msra.mxu3 %v6412_v4  ;;  %482 = vmatpush.bf16.msra.mxu0 %v6412_v4  ;;  %v631_v52 = vld [vmem:[%s6755_s8] sm:$0xf]  ;;  %v632_v53 = vld [vmem:[%s6755_s8 + $0x4] sm:$0xf]  ;;  %v6504_v55 = vld [vmem:[%s8145_s1 + $0x1f8] sm:$0xff]  ;;  %v2333_v0 = vshrl.u32 %v5830_v57, 16 }
  0x1f   : > { %v6472_v56 = vld [vmem:[%s8145_s1 + $0x178] sm:$0xff]  ;;  %v5831_v58 = vld [vmem:[%s6755_s8 + $0x10] sm:$0xf]  ;;  %v683_v60 = vshrl.u32 %v631_v52, 16  ;;  %v686_v61 = vshll.u32 %v631_v52, 16  ;;  %v692_v62 = vshll.u32 %v632_v53, 16  ;;  %vm6899_vm4 = vmor %vm679_vm0, %vm680_vm1 }
  0x20   : > { %v6512_v59 = vld [vmem:[%s8145_s1 + $0x238] sm:$0xff]  ;;  %v696_v63 = vshrl.u32 %v632_v53, 16  ;;  %v2336_v1 = vshll.u32 %v5830_v57, 16  ;;  %v2342_v2 = vshll.u32 %v5831_v58, 16  ;;  %v2346_v3 = vshrl.u32 %v5831_v58, 16  ;;  %vm6906_vm5 = vmor %vm1476_vm2, %vm1477_vm3 }
  0x21   : > { %6623 = vmatpush.bf16.msra.mxu1 %v6411_v5  ;;  %6624 = vmatpush.bf16.msra.mxu2 %v6411_v5  ;;  %v633_v4 = vld [vmem:[%s6755_s8 + $0x8] sm:$0x1]  ;;  %v636_v57 = vld [vmem:[%s6755_s8 + $0x14] sm:$0x1] }
  0x22   : > { %6625 = vmatpush.bf16.msra.mxu3 %v6411_v5  ;;  %483 = vmatpush.bf16.msra.mxu0 %v6411_v5  ;;  %v685_v5 = vrot.slane %v683_v60, 4 }
  0x25   : > { %6626 = vmatpush.bf16.msra.mxu1 %v6410_v6  ;;  %6627 = vmatpush.bf16.msra.mxu2 %v6410_v6 }
  0x26   : > { %6628 = vmatpush.bf16.msra.mxu3 %v6410_v6  ;;  %484 = vmatpush.bf16.msra.mxu0 %v6410_v6  ;;  %v688_v6 = vrot.slane %v686_v61, 5 }
  0x29   : > { %6629 = vmatpush.bf16.msra.mxu1 %v6409_v7  ;;  %6630 = vmatpush.bf16.msra.mxu2 %v6409_v7 }
  0x2a   : > { %6631 = vmatpush.bf16.msra.mxu3 %v6409_v7  ;;  %485 = vmatpush.bf16.msra.mxu0 %v6409_v7  ;;  %v6882_v7 = vrot.slane %v692_v62, 5  ;;  %v1384_v62 = vld [vmem:[%s6755_s8 + $0x10] sm:$0xf] }
  0x2c   : > { %506 = vmatmul.bf16.vlgmr.msra.gmra.mxu1 %v6397_v10  ;;  %526 = vmatmul.bf16.vlgmr.msra.gmra.mxu2 %v6401_v11  ;;  %v2335_v10 = vrot.slane %v2333_v0, 4  ;;  %v2338_v11 = vrot.slane %v2336_v1, 5 }
  0x2d   : > { %1752 = vmatpush.bf16.msrb.mxu2 %v6432_v8  ;;  %546 = vmatmul.bf16.vlgmr.msra.gmra.mxu3 %v6405_v12  ;;  %v698_v8 = vrot.slane %v696_v63, 4  ;;  %v6885_v12 = vrot.slane %v2342_v2, 5 }
  0x2e   : > { %2131 = vmatpush.bf16.msrb.mxu3 %v6456_v9  ;;  %486 = vmatmul.bf16.vlgmr.msra.gmra.mxu0 %v6393_v13  ;;  %v1381_v9 = vld [vmem:[%s6755_s8 + $0x4] sm:$0xf]  ;;  %v2348_v13 = vrot.slane %v2346_v3, 4 }
  0x2f   : > { %1227 = vmatpush.bf16.msrb.mxu1 %v6424_v14  ;;  %2877 = vmatpush.bf16.msrb.mxu0 %v6464_v15  ;;  %v702_v14 = vshll.u32 %v633_v4, 16  ;;  %v5832_v15 = vld [vmem:[%s6755_s8 + $0x14] sm:$0x1] }
  0x31   : > { %1753 = vmatpush.bf16.msrb.mxu2 %v6431_v16  ;;  %v1481_v16 = vrot.slane %v1381_v9, 5 }
  0x32   : > { %2132 = vmatpush.bf16.msrb.mxu3 %v6455_v17  ;;  %v6400_v17 = vld [vmem:[%s6755_s8 + $0x54] sm:$0xff] }
  0x33   : > { %1228 = vmatpush.bf16.msrb.mxu1 %v6423_v18  ;;  %2878 = vmatpush.bf16.msrb.mxu0 %v6463_v19  ;;  %v6404_v18 = vld [vmem:[%s6755_s8 + $0x84] sm:$0xff]  ;;  %v689_v19 = vor.u32 %v688_v6, %v685_v5 }
  0x35   : > { %1754 = vmatpush.bf16.msrb.mxu2 %v6430_v20  ;;  %v699_v20 = vor.u32 %v698_v8, %v6882_v7 }
  0x36   : > { %2133 = vmatpush.bf16.msrb.mxu3 %v6454_v21  ;;  %v1380_v21 = vld [vmem:[%s6755_s8] sm:$0xe] }
  0x37   : > { %1229 = vmatpush.bf16.msrb.mxu1 %v6422_v22  ;;  %2879 = vmatpush.bf16.msrb.mxu0 %v6462_v23  ;;  %v6408_v22 = vld [vmem:[%s6755_s8 + $0xb4] sm:$0xff]  ;;  %v6396_v23 = vld [vmem:[%s6755_s8 + $0x24] sm:$0xff] }
  0x39   : > { %1755 = vmatpush.bf16.msrb.mxu2 %v6429_v24  ;;  %v2339_v24 = vor.u32 %v2338_v11, %v2335_v10  ;;  %v726_v10 = vshll.u32 %v636_v57, 16 }
  0x3a   : > { %2134 = vmatpush.bf16.msrb.mxu3 %v6453_v25  ;;  %v2349_v25 = vor.u32 %v2348_v13, %v6885_v12  ;;  %v1488_v13 = vrot.slane %v1384_v62, 5  ;;  %v639_v62 = vld [vmem:[%s6755_s8 + $0x20] sm:$0x1] }
  0x3b   : > { %1230 = vmatpush.bf16.msrb.mxu1 %v6421_v26  ;;  %2880 = vmatpush.bf16.msrb.mxu0 %v6461_v27  ;;  %v2352_v26 = vshll.u32 %v5832_v15, 16  ;;  %v704_v27 = vrot.slane %v702_v14, 5  ;;  %v1383_v14 = vld [vmem:[%s6755_s8 + $0xc] sm:$0xe] }
  0x3c   : > { %511 = vmatmul.bf16.gmra.mxu1 %v6398_v30  ;;  %531 = vmatmul.bf16.gmra.mxu2 %v6402_v31  ;;  %v1483_v30 = vrot.slane %v1481_v16, 4  ;;  %v634_v31 = vld [vmem:[%s6755_s8 + $0xc] sm:$0xf] }
  0x3d   : > { %1756 = vmatpush.bf16.msrb.mxu2 %v6428_v28  ;;  %551 = vmatmul.bf16.gmra.mxu3 %v6406_v32  ;;  %v1382_v28 = vld [vmem:[%s6755_s8 + $0x8] sm:$0x1]  ;;  %v635_v32 = vld [vmem:[%s6755_s8 + $0x10] sm:$0xf] }
  0x3e   : > { %2135 = vmatpush.bf16.msrb.mxu3 %v6452_v29  ;;  %491 = vmatmul.bf16.gmra.mxu0 %v6394_v33  ;;  %v5622_v29 = vrot.slane %v1380_v21, 9  ;;  %v6433_v21 = vld [vmem:[%s6755_s8 + $0xc] sm:$0xff] }
  0x3f   : > { %1231 = vmatpush.bf16.msrb.mxu1 %v6420_v34  ;;  %2881 = vmatpush.bf16.msrb.mxu0 %v6460_v35  ;;  %v690_v34 = vrot.slane %v689_v19, 4  ;;  %v700_v35 = vrot.slane %v699_v20, 4  ;;  %v1385_v20 = vld [vmem:[%s6755_s8 + $0x14] sm:$0x1] }
  0x40   : > { %v1482_v52 = vsel %vm6906_vm5, %v5622_v29, %v1481_v16 }
  0x41   : > { %1757 = vmatpush.bf16.msrb.mxu2 %v6427_v36  ;;  %v5833_v36 = vld [vmem:[%s6755_s8 + $0x18] sm:$0xf]  ;;  %v705_v53 = vsel %vm6899_vm4, %v700_v35, %v704_v27  ;;  %v1640_v5 = vunpack.c.l.b16 %v1482_v52  ;;  %v1490_v27 = vrot.slane %v1488_v13, 4  ;;  %v6495_v35 = vld [vmem:[%s8145_s1 + $0x1b0] sm:$0xff] }
  0x42   : > { %2136 = vmatpush.bf16.msrb.mxu3 %v6451_v37  ;;  %v5834_v37 = vld [vmem:[%s6755_s8 + $0x1c] sm:$0xf]  ;;  %v1116_v4 = vunpack.c.l.b16 %v705_v53 }
  0x43   : > { %1232 = vmatpush.bf16.msrb.mxu1 %v6419_v38  ;;  %2882 = vmatpush.bf16.msrb.mxu0 %v6459_v39  ;;  %v1484_v39 = vrot.slane %v1382_v28, 5  ;;  %v1491_v28 = vrot.slane %v1385_v20, 5 }
  0x45   : > { %1758 = vmatpush.bf16.msrb.mxu2 %v6426_v40  ;;  %v2340_v40 = vrot.slane %v2339_v24, 4 }
  0x46   : > { %2137 = vmatpush.bf16.msrb.mxu3 %v6450_v41  ;;  %v2350_v41 = vrot.slane %v2349_v25, 4 }
  0x47   : > { %1233 = vmatpush.bf16.msrb.mxu1 %v6418_v42  ;;  %2883 = vmatpush.bf16.msrb.mxu0 %v6458_v43  ;;  %v2354_v42 = vrot.slane %v2352_v26, 5  ;;  %v707_v43 = vshrl.u32 %v634_v31, 16  ;;  %v5623_v26 = vrot.slane %v1383_v14, 9 }
  0x49   : > { %1759 = vmatpush.bf16.msrb.mxu2 %v6425_v44  ;;  %v710_v44 = vshll.u32 %v634_v31, 16  ;;  %v709_v58 = vrot.slane %v707_v43, 4  ;;  %v5837_v43 = vld [vmem:[%s6755_s8 + $0x28] sm:$0xf] }
  0x4a   : > { %2138 = vmatpush.bf16.msrb.mxu3 %v6449_v45  ;;  %v716_v45 = vshll.u32 %v635_v32, 16 }
  0x4b   : > { %1234 = vmatpush.bf16.msrb.mxu1 %v6417_v46  ;;  %2884 = vmatpush.bf16.msrb.mxu0 %v6457_v47  ;;  %v720_v46 = vshrl.u32 %v635_v32, 16  ;;  %v2357_v47 = vshrl.u32 %v5833_v36, 16  ;;  %v637_v32 = vld [vmem:[%s6755_s8 + $0x18] sm:$0xf] }
  0x4c   : > { %516 = vmatmul.bf16.gmra.mxu1 %v6399_v48  ;;  %536 = vmatmul.bf16.gmra.mxu2 %v6403_v49  ;;  %v2360_v48 = vshll.u32 %v5833_v36, 16  ;;  %v2366_v49 = vshll.u32 %v5834_v37, 16  ;;  %v6925_v60 = vrot.slane %v716_v45, 5  ;;  %v6503_v36 = vld [vmem:[%s8145_s1 + $0x1f0] sm:$0xff]  ;;  %v1492_v45 = vsel %vm6906_vm5, %v1490_v27, %v1491_v28 }
  0x4d   : > { %556 = vmatmul.bf16.gmra.mxu3 %v6407_v50  ;;  %3778 = vmatpush.bf16.msra.mxu2 %v6496_v54  ;;  %v2370_v50 = vshrl.u32 %v5834_v37, 16  ;;  %v1485_v54 = vsel %vm6906_vm5, %v1483_v30, %v1484_v39  ;;  %v722_v61 = vrot.slane %v720_v46, 4  ;;  %v2359_v63 = vrot.slane %v2357_v47, 4  ;;  %v6471_v37 = vld [vmem:[%s8145_s1 + $0x170] sm:$0xff] }
  0x4e   : > { %496 = vmatmul.bf16.gmra.mxu0 %v6395_v51  ;;  %4524 = vmatpush.bf16.msra.mxu3 %v6504_v55  ;;  %v695_v51 = vsel %vm6899_vm4, %v690_v34, %v6882_v7  ;;  %v2345_v55 = vsel %vm6899_vm4, %v2340_v40, %v6885_v12  ;;  %v2362_v0 = vrot.slane %v2360_v48, 5  ;;  %v6928_v1 = vrot.slane %v2366_v49, 5  ;;  %v5835_v7 = vld [vmem:[%s6755_s8 + $0x20] sm:$0x1]  ;;  %v638_v34 = vld [vmem:[%s6755_s8 + $0x1c] sm:$0xf] }
  0x4f   : > { %3399 = vmatpush.bf16.msra.mxu1 %v6472_v56  ;;  %5046 = vmatpush.bf16.msra.mxu0 %v6512_v59  ;;  %v2355_v56 = vsel %vm6899_vm4, %v2350_v41, %v2354_v42  ;;  %v712_v59 = vrot.slane %v710_v44, 5  ;;  %v2372_v2 = vrot.slane %v2370_v50, 4  ;;  %v1115_v3 = vunpack.c.l.b16 %v695_v51  ;;  %v5836_v42 = vld [vmem:[%s6755_s8 + $0x24] sm:$0xf]  ;;  %v6511_v44 = vld [vmem:[%s8145_s1 + $0x230] sm:$0xff] }
  0x50   : > { %v1641_v6 = vunpack.c.l.b16 %v1485_v54  ;;  %v2765_v8 = vunpack.c.l.b16 %v2345_v55  ;;  %v2766_v9 = vunpack.c.l.b16 %v2355_v56  ;;  %v723_v12 = vor.u32 %v722_v61, %v6925_v60 }
  0x51   : > { %v713_v11 = vor.u32 %v712_v59, %v709_v58  ;;  %v2363_v15 = vor.u32 %v2362_v0, %v2359_v63  ;;  %v2373_v16 = vor.u32 %v2372_v2, %v6928_v1  ;;  %v1489_v41 = vsel %vm6906_vm5, %v5623_v26, %v1488_v13  ;;  %3779 = vmatpush.bf16.msra.mxu2 %v6495_v35  ;;  %v5840_v35 = vld [vmem:[%s6755_s8 + $0x34] sm:$0xf] }
  0x52   : > { %v1672_v19 = vpack.c.b16 %v1641_v6, %v1640_v5  ;;  %v724_v25 = vrot.slane %v723_v12, 4  ;;  %4525 = vmatpush.bf16.msra.mxu3 %v6503_v36  ;;  %v731_v48 = vshrl.u32 %v637_v32, 16  ;;  %v734_v49 = vshll.u32 %v637_v32, 16 }
  0x53   : > { %v714_v24 = vrot.slane %v713_v11, 4  ;;  %v2364_v29 = vrot.slane %v2363_v15, 4  ;;  %v2374_v30 = vrot.slane %v2373_v16, 4  ;;  %v740_v50 = vshll.u32 %v638_v34, 16  ;;  %3400 = vmatpush.bf16.msra.mxu1 %v6471_v37  ;;  %5047 = vmatpush.bf16.msra.mxu0 %v6511_v44  ;;  %v6434_v15 = vld [vmem:[%s6755_s8 + $0x18] sm:$0xff] }
  0x54   : > { %v744_v51 = vshrl.u32 %v638_v34, 16  ;;  %v2381_v52 = vshrl.u32 %v5836_v42, 16  ;;  %v2384_v53 = vshll.u32 %v5836_v42, 16  ;;  %v2390_v54 = vshll.u32 %v5837_v43, 16 }
  0x55   : > { %v719_v39 = vsel %vm6899_vm4, %v714_v24, %v6925_v60  ;;  %v2369_v46 = vsel %vm6899_vm4, %v2364_v29, %v6928_v1  ;;  %v2394_v55 = vshrl.u32 %v5837_v43, 16  ;;  %v1642_v58 = vunpack.c.l.b16 %v1489_v41  ;;  %v641_v24 = vld [vmem:[%s6755_s8 + $0x28] sm:$0xf]  ;;  %v5839_v29 = vld [vmem:[%s6755_s8 + $0x30] sm:$0xf] }
  0x56   : > { %v1117_v56 = vunpack.c.l.b16 %v719_v39  ;;  %v1643_v59 = vunpack.c.l.b16 %v1492_v45  ;;  %v2767_v60 = vunpack.c.l.b16 %v2369_v46  ;;  %v733_v63 = vrot.slane %v731_v48, 4 }
  0x57   : > { %v736_v0 = vrot.slane %v734_v49, 5  ;;  %v742_v1 = vrot.slane %v740_v50, 5  ;;  %v746_v2 = vrot.slane %v744_v51, 4  ;;  %v2386_v5 = vrot.slane %v2384_v53, 5 }
  0x58   : > { %v2392_v6 = vrot.slane %v2390_v54, 5  ;;  %v1673_v11 = vpack.c.b16 %v1643_v59, %v1642_v58  ;;  %v764_v39 = vshll.u32 %v641_v24, 16  ;;  %v2405_v41 = vshrl.u32 %v5839_v29, 16 }
  0x59   : > { %v737_v12 = vor.u32 %v736_v0, %v733_v63  ;;  %v747_v13 = vor.u32 %v746_v2, %v742_v1  ;;  %v2408_v42 = vshll.u32 %v5839_v29, 16  ;;  %v2414_v45 = vshll.u32 %v5840_v35, 16 }
  0x5a   : > { %v2418_v46 = vshrl.u32 %v5840_v35, 16  ;;  %v6988_v53 = vrot.slane %v764_v39, 5  ;;  %v2407_v58 = vrot.slane %v2405_v41, 4  ;;  %v5843_v41 = vld [vmem:[%s6755_s8 + $0x40] sm:$0xf] }
  0x5b   : > { %v748_v26 = vrot.slane %v747_v13, 4  ;;  %v2410_v59 = vrot.slane %v2408_v42, 5  ;;  %v6992_v63 = vrot.slane %v2414_v45, 5 }
  0x5c   : > { %521 = vmatmul.bf16.gmra.mxu1 %v6400_v17  ;;  %541 = vmatmul.bf16.gmra.mxu2 %v6404_v18  ;;  %v2376_v17 = vshll.u32 %v5835_v7, 16  ;;  %v1147_v18 = vpack.c.b16 %v1116_v4, %v1115_v3  ;;  %v1387_v3 = vld [vmem:[%s6755_s8 + $0x1c] sm:$0xf]  ;;  %v2383_v4 = vrot.slane %v2381_v52, 4  ;;  %v2396_v7 = vrot.slane %v2394_v55, 4 }
  0x5d   : > { %561 = vmatmul.bf16.gmra.mxu3 %v6408_v22  ;;  %v2797_v22 = vpack.c.b16 %v2766_v9, %v2765_v8  ;;  %v5838_v8 = vld [vmem:[%s6755_s8 + $0x2c] sm:$0x1]  ;;  %v1495_v14 = vrot.slane %v1387_v3, 5  ;;  %v2420_v0 = vrot.slane %v2418_v46, 4  ;;  %v5841_v3 = vld [vmem:[%s6755_s8 + $0x38] sm:$0x1] }
  0x5e   : > { %501 = vmatmul.bf16.gmra.mxu0 %v6396_v23  ;;  %v728_v23 = vrot.slane %v726_v10, 5  ;;  %v2378_v31 = vrot.slane %v2376_v17, 5  ;;  %v750_v10 = vshll.u32 %v639_v62, 16  ;;  %v1386_v17 = vld [vmem:[%s6755_s8 + $0x18] sm:$0xe]  ;;  %v2400_v20 = vshll.u32 %v5838_v8, 16 }
  0x5f   : > { %v5624_v27 = vrot.slane %v1386_v17, 9  ;;  %v1497_v28 = vrot.slane %v1495_v14, 4  ;;  %v1390_v62 = vld [vmem:[%s6755_s8 + $0x28] sm:$0xf]  ;;  %v2411_v8 = vor.u32 %v2410_v59, %v2407_v58  ;;  %v2421_v13 = vor.u32 %v2420_v0, %v6992_v63  ;;  %v643_v17 = vld [vmem:[%s6755_s8 + $0x30] sm:$0xf] }
  0x60   : > { %v729_v40 = vsel %vm6899_vm4, %v724_v25, %v728_v23  ;;  %v2379_v47 = vsel %vm6899_vm4, %v2374_v30, %v2378_v31  ;;  %v640_v23 = vld [vmem:[%s6755_s8 + $0x24] sm:$0xf]  ;;  %v738_v25 = vrot.slane %v737_v12, 4  ;;  %v2402_v34 = vrot.slane %v2400_v20, 5  ;;  %v1391_v12 = vld [vmem:[%s6755_s8 + $0x2c] sm:$0x1] }
  0x61   : > { %v1118_v57 = vunpack.c.l.b16 %v729_v40  ;;  %v2768_v61 = vunpack.c.l.b16 %v2379_v47  ;;  %v755_v36 = vshrl.u32 %v640_v23, 16  ;;  %v758_v37 = vshll.u32 %v640_v23, 16  ;;  %v6470_v46 = vld [vmem:[%s8145_s1 + $0x168] sm:$0xff] }
  0x62   : > { %v768_v40 = vshrl.u32 %v641_v24, 16  ;;  %v743_v43 = vsel %vm6899_vm4, %v738_v25, %v742_v1  ;;  %v1496_v47 = vsel %vm6906_vm5, %v5624_v27, %v1495_v14  ;;  %v2424_v14 = vshll.u32 %v5841_v3, 16  ;;  %3401 = vmatpush.bf16.msra.mxu1 %v6470_v46 }
  0x63   : > { %v1148_v9 = vpack.c.b16 %v1118_v57, %v1117_v56  ;;  %v2798_v16 = vpack.c.b16 %v2768_v61, %v2767_v60  ;;  %v757_v51 = vrot.slane %v755_v36, 4  ;;  %v760_v52 = vrot.slane %v758_v37, 5  ;;  %v642_v57 = vld [vmem:[%s6755_s8 + $0x2c] sm:$0x1]  ;;  %v5842_v36 = vld [vmem:[%s6755_s8 + $0x3c] sm:$0xf] }
  0x64   : > { %v770_v54 = vrot.slane %v768_v40, 4  ;;  %v1119_v55 = vunpack.c.l.b16 %v743_v43  ;;  %v1644_v60 = vunpack.c.l.b16 %v1496_v47  ;;  %v1505_v24 = vrot.slane %v1391_v12, 5  ;;  %v6436_v12 = vld [vmem:[%s6755_s8 + $0x30] sm:$0xff] }
  0x65   : > { %v2412_v25 = vrot.slane %v2411_v8, 4  ;;  %v2426_v27 = vrot.slane %v2424_v14, 5  ;;  %v782_v29 = vshll.u32 %v643_v17, 16 }
  0x67   : > { %v2417_v42 = vsel %vm6899_vm4, %v2412_v25, %v6992_v63  ;;  %v784_v45 = vrot.slane %v782_v29, 5 }
  0x68   : > { %v2771_v59 = vunpack.c.l.b16 %v2417_v42 }
  0x6c   : > { %1235 = vmatmul.bf16.vlgmr.msrb.gmra.mxu1 %v1147_v18  ;;  %1760 = vmatmul.bf16.vlgmr.msrb.gmra.mxu2 %v1672_v19  ;;  %v2387_v18 = vor.u32 %v2386_v5, %v2383_v4  ;;  %v2397_v19 = vor.u32 %v2396_v7, %v2392_v6  ;;  %v761_v4 = vor.u32 %v760_v52, %v757_v51  ;;  %v1502_v7 = vrot.slane %v1390_v62, 5  ;;  %v645_v51 = vld [vmem:[%s6755_s8 + $0x38] sm:$0x1]  ;;  %v1393_v62 = vld [vmem:[%s6755_s8 + $0x34] sm:$0xf] }
  0x6d   : > { %2139 = vmatmul.bf16.vlgmr.msrb.gmra.mxu3 %v6433_v21  ;;  %v1388_v21 = vld [vmem:[%s6755_s8 + $0x20] sm:$0x1]  ;;  %v771_v5 = vor.u32 %v770_v54, %v6988_v53  ;;  %v2438_v52 = vshll.u32 %v5843_v41, 16  ;;  %v6510_v54 = vld [vmem:[%s8145_s1 + $0x228] sm:$0xff]  ;;  %v798_v0 = vshll.u32 %v645_v51, 16 }
  0x6e   : > { %2885 = vmatmul.bf16.vlgmr.msrb.gmra.mxu0 %v2797_v22  ;;  %v752_v22 = vrot.slane %v750_v10, 5  ;;  %v1498_v30 = vrot.slane %v1388_v21, 5  ;;  %v2388_v31 = vrot.slane %v2387_v18, 4  ;;  %v2398_v32 = vrot.slane %v2397_v19, 4  ;;  %v644_v21 = vld [vmem:[%s6755_s8 + $0x34] sm:$0xf] }
  0x6f   : > { %v762_v18 = vrot.slane %v761_v4, 4  ;;  %v772_v19 = vrot.slane %v771_v5, 4  ;;  %v1504_v23 = vrot.slane %v1502_v7, 4  ;;  %5048 = vmatpush.bf16.msra.mxu0 %v6510_v54  ;;  %v2440_v3 = vrot.slane %v2438_v52, 5  ;;  %v648_v51 = vld [vmem:[%s6755_s8 + $0x44] sm:$0x1] }
  0x70   : > { %v753_v44 = vsel %vm6899_vm4, %v748_v26, %v752_v22  ;;  %v1499_v48 = vsel %vm6906_vm5, %v1497_v28, %v1498_v30  ;;  %v2393_v49 = vsel %vm6899_vm4, %v2388_v31, %v2392_v6  ;;  %v2403_v50 = vsel %vm6899_vm4, %v2398_v32, %v2402_v34  ;;  %v6494_v32 = vld [vmem:[%s8145_s1 + $0x1a8] sm:$0xff]  ;;  %v1396_v54 = vld [vmem:[%s6755_s8 + $0x40] sm:$0xf] }
  0x71   : > { %v1120_v56 = vunpack.c.l.b16 %v753_v44  ;;  %v1645_v61 = vunpack.c.l.b16 %v1499_v48  ;;  %v2769_v1 = vunpack.c.l.b16 %v2393_v49  ;;  %v2770_v2 = vunpack.c.l.b16 %v2403_v50  ;;  %v6502_v34 = vld [vmem:[%s8145_s1 + $0x1e8] sm:$0xff]  ;;  %3780 = vmatpush.bf16.msra.mxu2 %v6494_v32 }
  0x72   : > { %v774_v6 = vshll.u32 %v642_v57, 16  ;;  %v2422_v26 = vrot.slane %v2421_v13, 4  ;;  %v779_v28 = vshrl.u32 %v643_v17, 16  ;;  %v788_v30 = vshll.u32 %v644_v21, 16  ;;  %4526 = vmatpush.bf16.msra.mxu3 %v6502_v34 }
  0x73   : > { %v1674_v10 = vpack.c.b16 %v1645_v61, %v1644_v60  ;;  %v792_v31 = vshrl.u32 %v644_v21, 16  ;;  %v767_v35 = vsel %vm6899_vm4, %v762_v18, %v6988_v53  ;;  %v1506_v40 = vsel %vm6906_vm5, %v1504_v23, %v1505_v24  ;;  %v647_v23 = vld [vmem:[%s6755_s8 + $0x40] sm:$0xf] }
  0x74   : > { %v776_v20 = vrot.slane %v774_v6, 5  ;;  %v2427_v43 = vsel %vm6899_vm4, %v2422_v26, %v2426_v27  ;;  %v781_v44 = vrot.slane %v779_v28, 4  ;;  %v7027_v47 = vrot.slane %v788_v30, 5  ;;  %v5844_v6 = vld [vmem:[%s6755_s8 + $0x44] sm:$0x1] }
  0x75   : > { %v794_v48 = vrot.slane %v792_v31, 4  ;;  %v2429_v49 = vshrl.u32 %v5842_v36, 16  ;;  %v2432_v50 = vshll.u32 %v5842_v36, 16  ;;  %v2442_v53 = vshrl.u32 %v5843_v41, 16  ;;  %v5845_v27 = vld [vmem:[%s6755_s8 + $0x48] sm:$0xf] }
  0x76   : > { %v777_v37 = vsel %vm6899_vm4, %v772_v19, %v776_v20  ;;  %v1647_v58 = vunpack.c.l.b16 %v1506_v40  ;;  %v2772_v60 = vunpack.c.l.b16 %v2427_v43  ;;  %v785_v61 = vor.u32 %v784_v45, %v781_v44  ;;  %v5846_v28 = vld [vmem:[%s6755_s8 + $0x4c] sm:$0xf] }
  0x77   : > { %v795_v63 = vor.u32 %v794_v48, %v7027_v47  ;;  %v2444_v4 = vrot.slane %v2442_v53, 4  ;;  %v1509_v5 = vrot.slane %v1393_v62, 5  ;;  %v2448_v18 = vshll.u32 %v5844_v6, 16 }
  0x78   : > { %v786_v13 = vrot.slane %v785_v61, 4  ;;  %v812_v36 = vshll.u32 %v647_v23, 16  ;;  %v2456_v40 = vshll.u32 %v5845_v27, 16  ;;  %v2462_v41 = vshll.u32 %v5846_v28, 16  ;;  %v5847_v61 = vld [vmem:[%s6755_s8 + $0x50] sm:$0x1] }
  0x79   : > { %v796_v14 = vrot.slane %v795_v63, 4  ;;  %v2445_v17 = vor.u32 %v2444_v4, %v2440_v3  ;;  %v1511_v20 = vrot.slane %v1509_v5, 4  ;;  %v2450_v30 = vrot.slane %v2448_v18, 5 }
  0x7a   : > { %v791_v24 = vsel %vm6899_vm4, %v786_v13, %v7027_v47  ;;  %v2466_v42 = vshrl.u32 %v5846_v28, 16  ;;  %v7057_v52 = vrot.slane %v812_v36, 5  ;;  %v5848_v28 = vld [vmem:[%s6755_s8 + $0x54] sm:$0xf] }
  0x7b   : > { %v2446_v29 = vrot.slane %v2445_v17, 4  ;;  %v1123_v43 = vunpack.c.l.b16 %v791_v24  ;;  %v6493_v24 = vld [vmem:[%s8145_s1 + $0x1a0] sm:$0xff] }
  0x7c   : > { %1240 = vmatmul.bf16.gmra.mxu1 %v1148_v9  ;;  %1765 = vmatmul.bf16.gmra.mxu2 %v1673_v11  ;;  %v1149_v9 = vpack.c.b16 %v1120_v56, %v1119_v55  ;;  %v1389_v11 = vld [vmem:[%s6755_s8 + $0x24] sm:$0xe]  ;;  %v1121_v55 = vunpack.c.l.b16 %v767_v35  ;;  %v1122_v56 = vunpack.c.l.b16 %v777_v37  ;;  %v816_v37 = vshrl.u32 %v647_v23, 16  ;;  %v650_v23 = vld [vmem:[%s6755_s8 + $0x4c] sm:$0xf] }
  0x7d   : > { %2144 = vmatmul.bf16.gmra.mxu3 %v6434_v15  ;;  %v6435_v15 = vld [vmem:[%s6755_s8 + $0x24] sm:$0xff]  ;;  %v5625_v22 = vrot.slane %v1389_v11, 9  ;;  %v1394_v11 = vld [vmem:[%s6755_s8 + $0x38] sm:$0x1]  ;;  %v2451_v46 = vsel %vm6899_vm4, %v2446_v29, %v2450_v30  ;;  %3781 = vmatpush.bf16.msra.mxu2 %v6493_v24 }
  0x7e   : > { %2890 = vmatmul.bf16.gmra.mxu0 %v2798_v16  ;;  %v2799_v16 = vpack.c.b16 %v2770_v2, %v2769_v1  ;;  %v2431_v1 = vrot.slane %v2429_v49, 4  ;;  %v2434_v2 = vrot.slane %v2432_v50, 5  ;;  %v1512_v21 = vrot.slane %v1394_v11, 5  ;;  %v5849_v29 = vld [vmem:[%s6755_s8 + $0x58] sm:$0xf] }
  0x7f   : > { %v1503_v39 = vsel %vm6906_vm5, %v5625_v22, %v1502_v7  ;;  %v1150_v7 = vpack.c.b16 %v1122_v56, %v1121_v55  ;;  %v646_v22 = vld [vmem:[%s6755_s8 + $0x3c] sm:$0xf]  ;;  %v818_v53 = vrot.slane %v816_v37, 4  ;;  %v2458_v56 = vrot.slane %v2456_v40, 5 }
  0x80   : > { %v1646_v57 = vunpack.c.l.b16 %v1503_v39  ;;  %v803_v31 = vshrl.u32 %v646_v22, 16  ;;  %v806_v32 = vshll.u32 %v646_v22, 16  ;;  %v1513_v35 = vsel %vm6906_vm5, %v1511_v20, %v1512_v21  ;;  %v649_v22 = vld [vmem:[%s6755_s8 + $0x48] sm:$0xf] }
  0x81   : > { %v2453_v39 = vshrl.u32 %v5845_v27, 16  ;;  %v1649_v50 = vunpack.c.l.b16 %v1513_v35  ;;  %v830_v35 = vshll.u32 %v649_v22, 16  ;;  %v836_v40 = vshll.u32 %v650_v23, 16 }
  0x82   : > { %v1675_v8 = vpack.c.b16 %v1647_v58, %v1646_v57  ;;  %v805_v47 = vrot.slane %v803_v31, 4  ;;  %v808_v48 = vrot.slane %v806_v32, 5  ;;  %v7060_v57 = vrot.slane %v2462_v41, 5 }
  0x83   : > { %v2455_v55 = vrot.slane %v2453_v39, 4  ;;  %v2468_v58 = vrot.slane %v2466_v42, 4  ;;  %v840_v41 = vshrl.u32 %v650_v23, 16  ;;  %v6469_v42 = vld [vmem:[%s8145_s1 + $0x160] sm:$0xff] }
  0x84   : > { %v809_v62 = vor.u32 %v808_v48, %v805_v47  ;;  %v2490_v47 = vshrl.u32 %v5849_v29, 16  ;;  %3402 = vmatpush.bf16.msra.mxu1 %v6469_v42  ;;  %v5851_v42 = vld [vmem:[%s6755_s8 + $0x60] sm:$0xf] }
  0x85   : > { %v2459_v6 = vor.u32 %v2458_v56, %v2455_v55  ;;  %v832_v55 = vrot.slane %v830_v35, 5 }
  0x86   : > { %v810_v13 = vrot.slane %v809_v62, 4  ;;  %v5850_v62 = vld [vmem:[%s6755_s8 + $0x5c] sm:$0x1] }
  0x8c   : > { %1245 = vmatmul.bf16.gmra.mxu1 %v1149_v9  ;;  %1770 = vmatmul.bf16.gmra.mxu2 %v1674_v10  ;;  %v2800_v9 = vpack.c.b16 %v2772_v60, %v2771_v59  ;;  %v1392_v10 = vld [vmem:[%s6755_s8 + $0x30] sm:$0xe]  ;;  %v2774_v60 = vunpack.c.l.b16 %v2451_v46  ;;  %v2486_v46 = vshll.u32 %v5849_v29, 16 }
  0x8d   : > { %2149 = vmatmul.bf16.gmra.mxu3 %v6435_v15  ;;  %v800_v15 = vrot.slane %v798_v0, 5  ;;  %v5626_v19 = vrot.slane %v1392_v10, 9  ;;  %v819_v0 = vor.u32 %v818_v53, %v7057_v52  ;;  %v6437_v10 = vld [vmem:[%s6755_s8 + $0x3c] sm:$0xff] }
  0x8e   : > { %2895 = vmatmul.bf16.gmra.mxu0 %v2799_v16  ;;  %v2435_v16 = vor.u32 %v2434_v2, %v2431_v1  ;;  %v822_v1 = vshll.u32 %v648_v51, 16  ;;  %v1395_v2 = vld [vmem:[%s6755_s8 + $0x3c] sm:$0xe]  ;;  %v6509_v51 = vld [vmem:[%s8145_s1 + $0x220] sm:$0xff] }
  0x8f   : > { %v801_v25 = vsel %vm6899_vm4, %v796_v14, %v800_v15  ;;  %v1510_v34 = vsel %vm6906_vm5, %v5626_v19, %v1509_v5  ;;  %v1397_v5 = vld [vmem:[%s6755_s8 + $0x44] sm:$0x1]  ;;  %v5627_v14 = vrot.slane %v1395_v2, 9  ;;  %v820_v15 = vrot.slane %v819_v0, 4  ;;  %5049 = vmatpush.bf16.msra.mxu0 %v6509_v51 }
  0x90   : > { %v2436_v26 = vrot.slane %v2435_v16, 4  ;;  %v1124_v44 = vunpack.c.l.b16 %v801_v25  ;;  %v1648_v49 = vunpack.c.l.b16 %v1510_v34  ;;  %v824_v16 = vrot.slane %v822_v1, 5  ;;  %v6501_v25 = vld [vmem:[%s8145_s1 + $0x1e0] sm:$0xff] }
  0x91   : > { %v1519_v18 = vrot.slane %v1397_v5, 5  ;;  %v2460_v19 = vrot.slane %v2459_v6, 4  ;;  %v827_v34 = vshrl.u32 %v649_v22, 16  ;;  %4527 = vmatpush.bf16.msra.mxu3 %v6501_v25  ;;  %v7115_v1 = vrot.slane %v2486_v46, 5  ;;  %v652_v22 = vld [vmem:[%s6755_s8 + $0x54] sm:$0xf] }
  0x92   : > { %v2441_v45 = vsel %vm6899_vm4, %v2436_v26, %v2440_v3  ;;  %v1151_v63 = vpack.c.b16 %v1124_v44, %v1123_v43  ;;  %v1516_v3 = vrot.slane %v1396_v54, 5  ;;  %v1676_v4 = vpack.c.b16 %v1649_v50, %v1648_v49 }
  0x93   : > { %v2773_v59 = vunpack.c.l.b16 %v2441_v45  ;;  %v815_v26 = vsel %vm6899_vm4, %v810_v13, %v7057_v52  ;;  %v825_v31 = vsel %vm6899_vm4, %v820_v15, %v824_v16  ;;  %v2465_v37 = vsel %vm6899_vm4, %v2460_v19, %v7060_v57  ;;  %v6438_v16 = vld [vmem:[%s6755_s8 + $0x48] sm:$0xff] }
  0x94   : > { %v1518_v17 = vrot.slane %v1516_v3, 4  ;;  %v1517_v27 = vsel %vm6906_vm5, %v5627_v14, %v1516_v3  ;;  %v2477_v44 = vshrl.u32 %v5848_v28, 16  ;;  %v2480_v45 = vshll.u32 %v5848_v28, 16 }
  0x95   : > { %v2801_v11 = vpack.c.b16 %v2774_v60, %v2773_v59  ;;  %v1125_v49 = vunpack.c.l.b16 %v815_v26  ;;  %v1650_v50 = vunpack.c.l.b16 %v1517_v27  ;;  %v1126_v52 = vunpack.c.l.b16 %v825_v31  ;;  %v653_v31 = vld [vmem:[%s6755_s8 + $0x58] sm:$0xf] }
  0x96   : > { %v1520_v32 = vsel %vm6906_vm5, %v1518_v17, %v1519_v18  ;;  %v829_v54 = vrot.slane %v827_v34, 4  ;;  %v2775_v56 = vunpack.c.l.b16 %v2465_v37  ;;  %v7111_v59 = vrot.slane %v836_v40, 5  ;;  %v1400_v18 = vld [vmem:[%s6755_s8 + $0x50] sm:$0x1] }
  0x97   : > { %v1651_v53 = vunpack.c.l.b16 %v1520_v32  ;;  %v842_v60 = vrot.slane %v840_v41, 4  ;;  %v2482_v0 = vrot.slane %v2480_v45, 5  ;;  %v2492_v2 = vrot.slane %v2490_v47, 4 }
  0x98   : > { %v833_v5 = vor.u32 %v832_v55, %v829_v54  ;;  %v2496_v14 = vshll.u32 %v5850_v62, 16  ;;  %v1526_v28 = vrot.slane %v1400_v18, 5  ;;  %v851_v35 = vshrl.u32 %v652_v22, 16 }
  0x99   : > { %v854_v37 = vshll.u32 %v652_v22, 16  ;;  %v860_v40 = vshll.u32 %v653_v31, 16  ;;  %v864_v41 = vshrl.u32 %v653_v31, 16 }
  0x9a   : > { %v834_v23 = vrot.slane %v833_v5, 4  ;;  %v2498_v29 = vrot.slane %v2496_v14, 5  ;;  %v853_v54 = vrot.slane %v851_v35, 4  ;;  %v1402_v5 = vld [vmem:[%s6755_s8 + $0x58] sm:$0xf] }
  0x9b   : > { %v856_v55 = vrot.slane %v854_v37, 5  ;;  %v866_v62 = vrot.slane %v864_v41, 4 }
  0x9c   : > { %1250 = vmatmul.bf16.gmra.mxu1 %v1150_v7  ;;  %1775 = vmatmul.bf16.gmra.mxu2 %v1675_v8  ;;  %v2469_v7 = vor.u32 %v2468_v58, %v7060_v57  ;;  %v2472_v8 = vshll.u32 %v5847_v61, 16  ;;  %v651_v58 = vld [vmem:[%s6755_s8 + $0x50] sm:$0x1]  ;;  %v1399_v61 = vld [vmem:[%s6755_s8 + $0x4c] sm:$0xf]  ;;  %v839_v46 = vsel %vm6899_vm4, %v834_v23, %v7111_v59  ;;  %v1530_v23 = vrot.slane %v1402_v5, 5 }
  0x9d   : > { %2154 = vmatmul.bf16.gmra.mxu3 %v6436_v12  ;;  %v846_v6 = vshll.u32 %v651_v58, 16  ;;  %v1523_v13 = vrot.slane %v1399_v61, 5  ;;  %v2504_v58 = vshll.u32 %v5851_v42, 16  ;;  %v7156_v61 = vrot.slane %v860_v40, 5 }
  0x9e   : > { %2900 = vmatmul.bf16.gmra.mxu0 %v2800_v9  ;;  %v2470_v20 = vrot.slane %v2469_v7, 4  ;;  %v2474_v21 = vrot.slane %v2472_v8, 5  ;;  %v1677_v8 = vpack.c.b16 %v1651_v53, %v1650_v50 }
  0x9f   : > { %v848_v24 = vrot.slane %v846_v6, 5  ;;  %v1525_v27 = vrot.slane %v1523_v13, 4 }
  0xa0   : > { %v2475_v39 = vsel %vm6899_vm4, %v2470_v20, %v2474_v21  ;;  %v2493_v20 = vor.u32 %v2492_v2, %v7115_v1 }
  0xa1   : > { %v2776_v57 = vunpack.c.l.b16 %v2475_v39  ;;  %v1527_v50 = vsel %vm6906_vm5, %v1525_v27, %v1526_v28  ;;  %v1403_v27 = vld [vmem:[%s6755_s8 + $0x5c] sm:$0x1] }
  0xa2   : > { %v2494_v34 = vrot.slane %v2493_v20, 4  ;;  %v1653_v2 = vunpack.c.l.b16 %v1527_v50  ;;  %v867_v20 = vor.u32 %v866_v62, %v7156_v61  ;;  %v656_v50 = vld [vmem:[%s6755_s8 + $0x64] sm:$0xf] }
  0xa3   : > { %v2802_v17 = vpack.c.b16 %v2776_v57, %v2775_v56  ;;  %v2501_v57 = vshrl.u32 %v5851_v42, 16  ;;  %v888_v5 = vshrl.u32 %v656_v50, 16 }
  0xa4   : > { %v2499_v53 = vsel %vm6899_vm4, %v2494_v34, %v2498_v29  ;;  %v6439_v29 = vld [vmem:[%s6755_s8 + $0x54] sm:$0xff]  ;;  %v868_v42 = vrot.slane %v867_v20, 4 }
  0xa5   : > { %v2503_v14 = vrot.slane %v2501_v57, 4  ;;  %v6492_v57 = vld [vmem:[%s8145_s1 + $0x198] sm:$0xff] }
  0xa6   : > { %3782 = vmatpush.bf16.msra.mxu2 %v6492_v57 }
  0xa9   : > { %v7067_v9 = vpop.f32.mrf.mxu1 }
  0xab   : > { %v7070_v12 = vpop.f32.mrf.mxu0 }
  0xac   : > { %1255 = vmatmul.bf16.gmra.mxu1 %v1151_v63  ;;  %1780 = vmatmul.bf16.gmra.mxu2 %v1676_v4  ;;  %v2479_v63 = vrot.slane %v2477_v44, 4  ;;  %v1152_v4 = vpack.c.b16 %v1126_v52, %v1125_v49  ;;  %v5852_v44 = vld [vmem:[%s6755_s8 + $0x64] sm:$0xf] }
  0xad   : > { %2159 = vmatmul.bf16.gmra.mxu3 %v6437_v10  ;;  %v843_v10 = vor.u32 %v842_v60, %v7111_v59  ;;  %v2510_v59 = vshll.u32 %v5852_v44, 16  ;;  %v2514_v60 = vshrl.u32 %v5852_v44, 16 }
  0xae   : > { %2905 = vmatmul.bf16.gmra.mxu0 %v2801_v11  ;;  %v1398_v11 = vld [vmem:[%s6755_s8 + $0x48] sm:$0xe]  ;;  %v2483_v19 = vor.u32 %v2482_v0, %v2479_v63  ;;  %v1127_v63 = vunpack.c.l.b16 %v839_v46  ;;  %v1532_v46 = vrot.slane %v1530_v23, 4 }
  0xaf   : > { %v7087_v30 = vpop.f32.mrf.mxu2  ;;  %v5628_v25 = vrot.slane %v1398_v11, 9  ;;  %v844_v26 = vrot.slane %v843_v10, 4  ;;  %v857_v10 = vor.u32 %v856_v55, %v853_v54  ;;  %v1401_v11 = vld [vmem:[%s6755_s8 + $0x54] sm:$0xe]  ;;  %v2516_v18 = vrot.slane %v2514_v60, 4 }
  0xb0   : > { %v7093_v36 = vpop.f32.mrf.mxu3  ;;  %v2484_v32 = vrot.slane %v2483_v19, 4  ;;  %v5629_v34 = vrot.slane %v1401_v11, 9 }
  0xb1   : > { %v7103_v43 = vpop.f32.mrf.mxu1  ;;  %v849_v47 = vsel %vm6899_vm4, %v844_v26, %v848_v24  ;;  %v1524_v49 = vsel %vm6906_vm5, %v5628_v25, %v1523_v13  ;;  %v5853_v13 = vld [vmem:[%s6755_s8 + $0x68] sm:$0x1] }
  0xb2   : > { %v2489_v52 = vsel %vm6899_vm4, %v2484_v32, %v7115_v1  ;;  %v1128_v0 = vunpack.c.l.b16 %v849_v47  ;;  %v1652_v1 = vunpack.c.l.b16 %v1524_v49  ;;  %v858_v32 = vrot.slane %v857_v10, 4  ;;  %v655_v49 = vld [vmem:[%s6755_s8 + $0x60] sm:$0xf] }
  0xb3   : > { %v7105_v48 = vpop.f32.mrf.mxu0  ;;  %v2777_v6 = vunpack.c.l.b16 %v2489_v52  ;;  %v2520_v35 = vshll.u32 %v5853_v13, 16  ;;  %v1533_v47 = vrot.slane %v1403_v27, 5  ;;  %v5854_v52 = vld [vmem:[%s6755_s8 + $0x6c] sm:$0xf]  ;;  %v1531_v54 = vsel %vm6906_vm5, %v5629_v34, %v1530_v23  ;;  %v6468_v27 = vld [vmem:[%s8145_s1 + $0x158] sm:$0xff] }
  0xb4   : > { %v1153_v25 = vpack.c.b16 %v1128_v0, %v1127_v63  ;;  %v1678_v26 = vpack.c.b16 %v1653_v2, %v1652_v1  ;;  %v875_v63 = vshrl.u32 %v655_v49, 16  ;;  %v878_v0 = vshll.u32 %v655_v49, 16  ;;  %v657_v34 = vld [vmem:[%s6755_s8 + $0x68] sm:$0x1]  ;;  %3403 = vmatpush.bf16.msra.mxu1 %v6468_v27 }
  0xb5   : > { %v2522_v55 = vrot.slane %v2520_v35, 5  ;;  %v1534_v2 = vsel %vm6906_vm5, %v1532_v46, %v1533_v47  ;;  %v2528_v10 = vshll.u32 %v5854_v52, 16  ;;  %v894_v57 = vshll.u32 %v657_v34, 16 }
  0xb7   : > { %v7117_v3 = vpop.f32.mrf.mxu2 }
  0xb8   : > { %v7119_v7 = vpop.f32.mrf.mxu3 }
  0xb9   : > { %v7123_v15 = vpop.f32.mrf.mxu1 }
  0xbb   : > { %v7128_v21 = vpop.f32.mrf.mxu0 }
  0xbc   : > { %1260 = vmatmul.bf16.gmra.mxu1 %v1152_v4  ;;  %1785 = vmatmul.bf16.gmra.mxu2 %v1677_v8  ;;  %v654_v4 = vld [vmem:[%s6755_s8 + $0x5c] sm:$0x1]  ;;  %v2778_v8 = vunpack.c.l.b16 %v2499_v53  ;;  %v863_v53 = vsel %vm6899_vm4, %v858_v32, %v7156_v61  ;;  %v1655_v32 = vunpack.c.l.b16 %v1534_v2 }
  0xbd   : > { %2164 = vmatmul.bf16.gmra.mxu3 %v6438_v16  ;;  %v2506_v16 = vrot.slane %v2504_v58, 5  ;;  %v870_v22 = vshll.u32 %v654_v4, 16  ;;  %v5855_v58 = vld [vmem:[%s6755_s8 + $0x70] sm:$0xf]  ;;  %v884_v4 = vshll.u32 %v656_v50, 16 }
  0xbe   : > { %2910 = vmatmul.bf16.gmra.mxu0 %v2802_v17  ;;  %v7162_v17 = vrot.slane %v2510_v59, 5  ;;  %v2803_v31 = vpack.c.b16 %v2778_v8, %v2777_v6  ;;  %v6500_v59 = vld [vmem:[%s8145_s1 + $0x1d8] sm:$0xff]  ;;  %v2525_v8 = vshrl.u32 %v5854_v52, 16  ;;  %v2534_v11 = vshll.u32 %v5855_v58, 16  ;;  %v5856_v50 = vld [vmem:[%s6755_s8 + $0x74] sm:$0x1] }
  0xbf   : > { %v7132_v39 = vpop.f32.mrf.mxu2  ;;  %v2507_v40 = vor.u32 %v2506_v16, %v2503_v14  ;;  %v872_v44 = vrot.slane %v870_v22, 5  ;;  %4528 = vmatpush.bf16.msra.mxu3 %v6500_v59  ;;  %v2538_v13 = vshrl.u32 %v5855_v58, 16  ;;  %v1129_v16 = vunpack.c.l.b16 %v863_v53 }
  0xc0   : > { %v7136_v45 = vpop.f32.mrf.mxu3  ;;  %v2517_v41 = vor.u32 %v2516_v18, %v7162_v17  ;;  %v1654_v18 = vunpack.c.l.b16 %v1531_v54  ;;  %v7215_v35 = vrot.slane %v884_v4, 5  ;;  %v6440_v4 = vld [vmem:[%s6755_s8 + $0x60] sm:$0xff] }
  0xc1   : > { %v7147_v51 = vpop.f32.mrf.mxu1  ;;  %v2508_v60 = vrot.slane %v2507_v40, 4  ;;  %v873_v61 = vsel %vm6899_vm4, %v868_v42, %v872_v44  ;;  %v1405_v40 = vld [vmem:[%s6755_s8 + $0x64] sm:$0xf]  ;;  %v2530_v42 = vrot.slane %v2528_v10, 5  ;;  %v7218_v44 = vrot.slane %v2534_v11, 5 }
  0xc2   : > { %v2518_v62 = vrot.slane %v2517_v41, 4  ;;  %v2527_v41 = vrot.slane %v2525_v8, 4  ;;  %v2540_v46 = vrot.slane %v2538_v13, 4  ;;  %v1537_v58 = vrot.slane %v1405_v40, 5  ;;  %v1406_v8 = vld [vmem:[%s6755_s8 + $0x68] sm:$0x1] }
  0xc3   : > { %v7154_v56 = vpop.f32.mrf.mxu0  ;;  %v2513_v22 = vsel %vm6899_vm4, %v2508_v60, %v7162_v17  ;;  %v890_v17 = vrot.slane %v888_v5, 4  ;;  %v1679_v60 = vpack.c.b16 %v1655_v32, %v1654_v18  ;;  %v658_v13 = vld [vmem:[%s6755_s8 + $0x6c] sm:$0xf]  ;;  %v1540_v18 = vrot.slane %v1406_v8, 5 }
  0xc4   : > { %v2523_v23 = vsel %vm6899_vm4, %v2518_v62, %v2522_v55  ;;  %v2779_v47 = vunpack.c.l.b16 %v2513_v22  ;;  %v1404_v62 = vld [vmem:[%s6755_s8 + $0x60] sm:$0xe]  ;;  %v899_v32 = vshrl.u32 %v658_v13, 16  ;;  %v902_v34 = vshll.u32 %v658_v13, 16 }
  0xc5   : > { %v2780_v49 = vunpack.c.l.b16 %v2523_v23  ;;  %v891_v55 = vor.u32 %v890_v17, %v7215_v35  ;;  %v896_v23 = vrot.slane %v894_v57, 5 }
  0xc7   : > { %v7164_v19 = vpop.f32.mrf.mxu2  ;;  %v2804_v5 = vpack.c.b16 %v2780_v49, %v2779_v47  ;;  %v892_v22 = vrot.slane %v891_v55, 4  ;;  %v5857_v47 = vld [vmem:[%s6755_s8 + $0x78] sm:$0xf]  ;;  %v5858_v49 = vld [vmem:[%s6755_s8 + $0x7c] sm:$0xf] }
  0xc8   : > { %v7167_v24 = vpop.f32.mrf.mxu3  ;;  %v2558_v8 = vshll.u32 %v5858_v49, 16 }
  0xc9   : > { %8152 = vst [vmem:[#allocation3_spill] sm:$0xff] %v7167_v24  ;;  %v7170_v28 = vpop.f32.mrf.mxu1 }
  0xcb   : > { %v7173_v37 = vpop.f32.mrf.mxu0 }
  0xcc   : > { %1265 = vmatmul.bf16.gmra.mxu1 %v1153_v25  ;;  %1790 = vmatmul.bf16.gmra.mxu2 %v1678_v26  ;;  %v877_v25 = vrot.slane %v875_v63, 4  ;;  %v880_v26 = vrot.slane %v878_v0, 5  ;;  %v2531_v63 = vor.u32 %v2530_v42, %v2527_v41  ;;  %v2541_v0 = vor.u32 %v2540_v46, %v7218_v44 }
  0xcd   : > { %2169 = vmatmul.bf16.gmra.mxu3 %v6439_v29  ;;  %v6508_v29 = vld [vmem:[%s8145_s1 + $0x218] sm:$0xff] }
  0xce   : > { %2915 = vmatmul.bf16.gmra.mxu0 %v2803_v31  ;;  %v1130_v31 = vunpack.c.l.b16 %v873_v61  ;;  %v881_v52 = vor.u32 %v880_v26, %v877_v25  ;;  %v2544_v61 = vshll.u32 %v5856_v50, 16  ;;  %v5630_v25 = vrot.slane %v1404_v62, 9 }
  0xcf   : > { %v7191_v1 = vpop.f32.mrf.mxu2  ;;  %5050 = vmatpush.bf16.msra.mxu0 %v6508_v29  ;;  %v1539_v26 = vrot.slane %v1537_v58, 4  ;;  %v2532_v27 = vrot.slane %v2531_v63, 4  ;;  %v2542_v29 = vrot.slane %v2541_v0, 4 }
  0xd0   : > { %v7197_v6 = vpop.f32.mrf.mxu3  ;;  %v1154_v54 = vpack.c.b16 %v1130_v31, %v1129_v16  ;;  %v882_v11 = vrot.slane %v881_v52, 4  ;;  %v659_v16 = vld [vmem:[%s6755_s8 + $0x70] sm:$0xf]  ;;  %v2546_v31 = vrot.slane %v2544_v61, 5  ;;  %v1538_v46 = vsel %vm6906_vm5, %v5630_v25, %v1537_v58  ;;  %v660_v61 = vld [vmem:[%s6755_s8 + $0x74] sm:$0x1] }
  0xd1   : > { %8153 = vst [vmem:[#allocation4_spill] sm:$0xff] %v7197_v6  ;;  %v7199_v14 = vpop.f32.mrf.mxu1  ;;  %v908_v17 = vshll.u32 %v659_v16, 16  ;;  %v912_v40 = vshrl.u32 %v659_v16, 16  ;;  %v897_v52 = vsel %vm6899_vm4, %v892_v22, %v896_v23  ;;  %v2537_v55 = vsel %vm6899_vm4, %v2532_v27, %v7218_v44 }
  0xd2   : > { %v887_v42 = vsel %vm6899_vm4, %v882_v11, %v7215_v35  ;;  %v2547_v35 = vsel %vm6899_vm4, %v2542_v29, %v2546_v31  ;;  %v901_v58 = vrot.slane %v899_v32, 4  ;;  %v2562_v11 = vshrl.u32 %v5858_v49, 16  ;;  %v1408_v29 = vld [vmem:[%s6755_s8 + $0x70] sm:$0xf]  ;;  %v1407_v31 = vld [vmem:[%s6755_s8 + $0x6c] sm:$0xe] }
  0xd3   : > { %v7201_v20 = vpop.f32.mrf.mxu0  ;;  %v7258_v62 = vrot.slane %v908_v17, 5  ;;  %v914_v63 = vrot.slane %v912_v40, 4  ;;  %v1131_v44 = vunpack.c.l.b16 %v887_v42  ;;  %v1656_v13 = vunpack.c.l.b16 %v1538_v46  ;;  %v5859_v46 = vld [vmem:[%s6755_s8 + $0x80] sm:$0x1] }
  0xd4   : > { %v1132_v16 = vunpack.c.l.b16 %v897_v52  ;;  %v2781_v23 = vunpack.c.l.b16 %v2537_v55  ;;  %v2782_v25 = vunpack.c.l.b16 %v2547_v35  ;;  %v918_v27 = vshll.u32 %v660_v61, 16 }
  0xd5   : > { %v7266_v17 = vrot.slane %v2558_v8, 5  ;;  %v2564_v40 = vrot.slane %v2562_v11, 4  ;;  %v1544_v35 = vrot.slane %v1408_v29, 5 }
  0xd6   : > { %v1155_v49 = vpack.c.b16 %v1132_v16, %v1131_v44  ;;  %v2805_v55 = vpack.c.b16 %v2782_v25, %v2781_v23  ;;  %v920_v61 = vrot.slane %v918_v27, 5  ;;  %v661_v16 = vld [vmem:[%s6755_s8 + $0x78] sm:$0xf]  ;;  %v662_v25 = vld [vmem:[%s6755_s8 + $0x7c] sm:$0xf] }
  0xd7   : > { %v7221_v53 = vpop.f32.mrf.mxu2  ;;  %v2565_v44 = vor.u32 %v2564_v40, %v7266_v17  ;;  %v923_v27 = vshrl.u32 %v661_v16, 16  ;;  %v926_v29 = vshll.u32 %v661_v16, 16 }
  0xd8   : > { %v7224_v59 = vpop.f32.mrf.mxu3 }
  0xd9   : > { %8154 = vst [vmem:[#allocation5_spill] sm:$0xff] %v7224_v59  ;;  %v7228_v2 = vpop.f32.mrf.mxu1 }
  0xdb   : > { %v7232_v10 = vpop.f32.mrf.mxu0 }
  0xdc   : > { %1270 = vmatmul.bf16.gmra.mxu1 %v1154_v54  ;;  %1795 = vmatmul.bf16.gmra.mxu2 %v1679_v60  ;;  %v1541_v54 = vsel %vm6906_vm5, %v1539_v26, %v1540_v18  ;;  %v904_v60 = vrot.slane %v902_v34, 5  ;;  %v915_v18 = vor.u32 %v914_v63, %v7258_v62 }
  0xdd   : > { %2174 = vmatmul.bf16.gmra.mxu3 %v6440_v4  ;;  %v2549_v4 = vshrl.u32 %v5857_v47, 16  ;;  %v1657_v22 = vunpack.c.l.b16 %v1541_v54  ;;  %v6441_v54 = vld [vmem:[%s6755_s8 + $0x6c] sm:$0xff] }
  0xde   : > { %2920 = vmatmul.bf16.gmra.mxu0 %v2804_v5  ;;  %v2552_v5 = vshll.u32 %v5857_v47, 16  ;;  %v905_v26 = vor.u32 %v904_v60, %v901_v58  ;;  %v916_v63 = vrot.slane %v915_v18, 4 }
  0xdf   : > { %v7236_v41 = vpop.f32.mrf.mxu2  ;;  %v2551_v32 = vrot.slane %v2549_v4, 4  ;;  %v1680_v52 = vpack.c.b16 %v1657_v22, %v1656_v13  ;;  %v1409_v4 = vld [vmem:[%s6755_s8 + $0x74] sm:$0x1]  ;;  %v2568_v13 = vshll.u32 %v5859_v46, 16  ;;  %v1546_v22 = vrot.slane %v1544_v35, 4 }
  0xe0   : > { %v7245_v50 = vpop.f32.mrf.mxu3  ;;  %v2554_v34 = vrot.slane %v2552_v5, 5  ;;  %v906_v60 = vrot.slane %v905_v26, 4  ;;  %v5631_v5 = vrot.slane %v1407_v31, 9  ;;  %v1547_v23 = vrot.slane %v1409_v4, 5  ;;  %v5860_v26 = vld [vmem:[%s6755_s8 + $0x84] sm:$0xf] }
  0xe1   : > { %8155 = vst [vmem:[#allocation6_spill] sm:$0xff] %v7245_v50  ;;  %v7256_v57 = vpop.f32.mrf.mxu1  ;;  %v6491_v31 = vld [vmem:[%s8145_s1 + $0x190] sm:$0xff]  ;;  %v921_v40 = vsel %vm6899_vm4, %v916_v63, %v920_v61  ;;  %v925_v63 = vrot.slane %v923_v27, 4  ;;  %v928_v61 = vrot.slane %v926_v29, 5 }
  0xe2   : > { %v2555_v50 = vor.u32 %v2554_v34, %v2551_v32  ;;  %v1545_v18 = vsel %vm6906_vm5, %v5631_v5, %v1544_v35  ;;  %v5861_v32 = vld [vmem:[%s6755_s8 + $0x88] sm:$0xf]  ;;  %v6499_v34 = vld [vmem:[%s8145_s1 + $0x1d0] sm:$0xff]  ;;  %3783 = vmatpush.bf16.msra.mxu2 %v6491_v31  ;;  %v2573_v35 = vshrl.u32 %v5860_v26, 16  ;;  %v1134_v6 = vunpack.c.l.b16 %v921_v40 }
  0xe3   : > { %v7260_v0 = vpop.f32.mrf.mxu0  ;;  %4529 = vmatpush.bf16.msra.mxu3 %v6499_v34  ;;  %v2582_v16 = vshll.u32 %v5861_v32, 16 }
  0xe4   : > { %v2556_v46 = vrot.slane %v2555_v50, 4  ;;  %v1548_v50 = vsel %vm6906_vm5, %v1546_v22, %v1547_v23  ;;  %v6507_v22 = vld [vmem:[%s8145_s1 + $0x210] sm:$0xff]  ;;  %v663_v23 = vld [vmem:[%s6755_s8 + $0x80] sm:$0x1] }
  0xe5   : > { %v1659_v31 = vunpack.c.l.b16 %v1548_v50  ;;  %v7314_v34 = vrot.slane %v2582_v16, 5  ;;  %5051 = vmatpush.bf16.msra.mxu0 %v6507_v22 }
  0xe7   : > { %v7268_v42 = vpop.f32.mrf.mxu2 }
  0xe8   : > { %v7271_v47 = vpop.f32.mrf.mxu3 }
  0xe9   : > { %8156 = vst [vmem:[#allocation7_spill] sm:$0xff] %v7271_v47  ;;  %v1236_v58 = vpop.f32.mrf.mxu1  ;;  %v2586_v47 = vshrl.u32 %v5861_v32, 16  ;;  %v1411_v32 = vld [vmem:[%s6755_s8 + $0x7c] sm:$0xf] }
  0xea   : > { %v1316_v8 = vadd.f32 %v1236_v58, %v7070_v12  ;;  %v911_v12 = vsel %vm6899_vm4, %v906_v60, %v7258_v62  ;;  %v2570_v62 = vrot.slane %v2568_v13, 5  ;;  %v2576_v58 = vshll.u32 %v5860_v26, 16 }
  0xeb   : > { %v7276_v11 = vpop.f32.mrf.mxu0  ;;  %v1133_v5 = vunpack.c.l.b16 %v911_v12  ;;  %v6467_v12 = vld [vmem:[%s8145_s1 + $0x150] sm:$0xff]  ;;  %v2588_v40 = vrot.slane %v2586_v47, 4 }
  0xec   : > { %1275 = vmatmul.bf16.gmra.mxu1 %v1155_v49  ;;  %1800 = vmatmul.bf16.gmra.mxu2 %v1680_v52  ;;  %v2566_v49 = vrot.slane %v2565_v44, 4  ;;  %v2578_v29 = vrot.slane %v2576_v58, 5  ;;  %v1410_v58 = vld [vmem:[%s6755_s8 + $0x78] sm:$0xe] }
  0xed   : > { %2179 = vmatmul.bf16.gmra.mxu3 %v6441_v54  ;;  %v932_v54 = vshll.u32 %v662_v25, 16  ;;  %3404 = vmatpush.bf16.msra.mxu1 %v6467_v12  ;;  %v1412_v12 = vld [vmem:[%s6755_s8 + $0x80] sm:$0x1]  ;;  %v2589_v22 = vor.u32 %v2588_v40, %v7314_v34  ;;  %v665_v40 = vld [vmem:[%s6755_s8 + $0x88] sm:$0xf] }
  0xee   : > { %2925 = vmatmul.bf16.gmra.mxu0 %v2805_v55  ;;  %v936_v55 = vshrl.u32 %v662_v25, 16  ;;  %v2571_v26 = vsel %vm6899_vm4, %v2566_v49, %v2570_v62  ;;  %v929_v62 = vor.u32 %v928_v61, %v925_v63  ;;  %v6442_v61 = vld [vmem:[%s6755_s8 + $0x78] sm:$0xff] }
  0xef   : > { %v1761_v52 = vpop.f32.mrf.mxu2  ;;  %v7311_v27 = vrot.slane %v932_v54, 5  ;;  %v2784_v49 = vunpack.c.l.b16 %v2571_v26  ;;  %v942_v54 = vshll.u32 %v663_v23, 16 }
  0xf0   : > { %v1841_v60 = vadd.f32 %v1761_v52, %v1316_v8  ;;  %v2140_v4 = vpop.f32.mrf.mxu3  ;;  %v2561_v8 = vsel %vm6899_vm4, %v2556_v46, %v7266_v17  ;;  %v1658_v17 = vunpack.c.l.b16 %v1545_v18  ;;  %v5862_v52 = vld [vmem:[%s6755_s8 + $0x8c] sm:$0x1]  ;;  %v1551_v18 = vrot.slane %v1411_v32, 5 }
  0xf1   : > { %v1238_v59 = vpop.f32.mrf.mxu1  ;;  %v2783_v46 = vunpack.c.l.b16 %v2561_v8  ;;  %v2592_v8 = vshll.u32 %v5862_v52, 16  ;;  %v930_v23 = vrot.slane %v929_v62, 4  ;;  %v2590_v52 = vrot.slane %v2589_v22, 4 }
  0xf2   : > { %v2220_v44 = vadd.f32 %v2140_v4, %v1841_v60  ;;  %v1317_v13 = vadd.f32 %v1238_v59, %v7105_v48  ;;  %v938_v48 = vrot.slane %v936_v55, 4  ;;  %v2575_v59 = vrot.slane %v2573_v35, 4 }
  0xf3   : > { %v2888_v25 = vpop.f32.mrf.mxu0  ;;  %v1156_v55 = vpack.c.b16 %v1134_v6, %v1133_v5  ;;  %v1681_v47 = vpack.c.b16 %v1659_v31, %v1658_v17  ;;  %v2806_v26 = vpack.c.b16 %v2784_v49, %v2783_v46  ;;  %v1553_v17 = vrot.slane %v1551_v18, 4 }
  0xf4   : > { %v939_v35 = vor.u32 %v938_v48, %v7311_v27  ;;  %v2579_v4 = vor.u32 %v2578_v29, %v2575_v59  ;;  %v944_v48 = vrot.slane %v942_v54, 5  ;;  %v5632_v59 = vrot.slane %v1410_v58, 9  ;;  %v664_v29 = vld [vmem:[%s6755_s8 + $0x84] sm:$0xf] }
  0xf5   : > { %v1554_v31 = vrot.slane %v1412_v12, 5  ;;  %v2594_v46 = vrot.slane %v2592_v8, 5  ;;  %v7328_v49 = vadd.f32 %v7276_v11, %v2220_v44  ;;  %v947_v62 = vshrl.u32 %v664_v29, 16 }
  0xf6   : > { %v2580_v32 = vrot.slane %v2579_v4, 4  ;;  %v950_v54 = vshll.u32 %v664_v29, 16  ;;  %v956_v58 = vshll.u32 %v665_v40, 16  ;;  %v960_v4 = vshrl.u32 %v665_v40, 16  ;;  %v666_v29 = vld [vmem:[%s6755_s8 + $0x8c] sm:$0x1] }
  0xf7   : > { %v1763_v60 = vpop.f32.mrf.mxu2  ;;  %v1555_v11 = vsel %vm6906_vm5, %v1553_v17, %v1554_v31 }
  0xf8   : > { %v1842_v16 = vadd.f32 %v1763_v60, %v1317_v13  ;;  %v2142_v50 = vpop.f32.mrf.mxu3  ;;  %v940_v13 = vrot.slane %v939_v35, 4  ;;  %v5863_v60 = vld [vmem:[%s6755_s8 + $0x90] sm:$0xf]  ;;  %v935_v35 = vsel %vm6899_vm4, %v930_v23, %v7311_v27  ;;  %v2585_v44 = vsel %vm6899_vm4, %v2580_v32, %v7314_v34 }
  0xf9   : > { %v1241_v63 = vpop.f32.mrf.mxu1  ;;  %v2597_v12 = vshrl.u32 %v5863_v60, 16  ;;  %v2600_v22 = vshll.u32 %v5863_v60, 16  ;;  %v962_v34 = vrot.slane %v960_v4, 4  ;;  %v1661_v32 = vunpack.c.l.b16 %v1555_v11  ;;  %v1414_v60 = vld [vmem:[%s6755_s8 + $0x88] sm:$0xf] }
  0xfa   : > { %v2221_v24 = vadd.f32 %v2142_v50, %v1842_v16  ;;  %v1318_v6 = vadd.f32 %v1241_v63, %v7128_v21  ;;  %v945_v50 = vsel %vm6899_vm4, %v940_v13, %v944_v48  ;;  %v949_v63 = vrot.slane %v947_v62, 4  ;;  %v1413_v4 = vld [vmem:[%s6755_s8 + $0x84] sm:$0xe] }
  0xfb   : > { %v7323_v5 = vpop.f32.mrf.mxu0  ;;  %v7350_v13 = vrot.slane %v956_v58, 5  ;;  %v1136_v17 = vunpack.c.l.b16 %v945_v50  ;;  %v2785_v40 = vunpack.c.l.b16 %v2585_v44  ;;  %v2602_v62 = vrot.slane %v2600_v22, 5 }
  0xfc   : > { %1280 = vmatmul.bf16.gmra.mxu1 %v1156_v55  ;;  %1805 = vmatmul.bf16.gmra.mxu2 %v1681_v47  ;;  %v7330_v21 = vadd.f32 %v2888_v25, %v2221_v24  ;;  %v5864_v55 = vld [vmem:[%s6755_s8 + $0x94] sm:$0xf]  ;;  %v1552_v24 = vsel %vm6906_vm5, %v5632_v59, %v1551_v18  ;;  %v2595_v47 = vsel %vm6899_vm4, %v2590_v52, %v2594_v46  ;;  %v2599_v46 = vrot.slane %v2597_v12, 4 }
  0xfd   : > { %2184 = vmatmul.bf16.gmra.mxu3 %v6442_v61  ;;  %v952_v61 = vrot.slane %v950_v54, 5  ;;  %v2610_v18 = vshrl.u32 %v5864_v55, 16  ;;  %v1660_v31 = vunpack.c.l.b16 %v1552_v24  ;;  %v2786_v52 = vunpack.c.l.b16 %v2595_v47  ;;  %v1415_v47 = vld [vmem:[%s6755_s8 + $0x8c] sm:$0x1] }
  0xfe   : > { %2930 = vmatmul.bf16.gmra.mxu0 %v2806_v26  ;;  %v2606_v26 = vshll.u32 %v5864_v55, 16  ;;  %v966_v54 = vshll.u32 %v666_v29, 16  ;;  %v1558_v12 = vrot.slane %v1414_v60, 5  ;;  %v2603_v22 = vor.u32 %v2602_v62, %v2599_v46  ;;  %v668_v62 = vld [vmem:[%s6755_s8 + $0x94] sm:$0xf] }
  0xff   : > { %v1766_v16 = vpop.f32.mrf.mxu2  ;;  %v953_v58 = vor.u32 %v952_v61, %v949_v63  ;;  %v1682_v24 = vpack.c.b16 %v1661_v32, %v1660_v31  ;;  %v5633_v63 = vrot.slane %v1413_v4, 9  ;;  %v1561_v32 = vrot.slane %v1415_v47, 5  ;;  %v6490_v4 = vld [vmem:[%s8145_s1 + $0x188] sm:$0xff] }
 0x100   : > { %v1843_v25 = vadd.f32 %v1766_v16, %v1318_v6  ;;  %v2145_v27 = vpop.f32.mrf.mxu3  ;;  %v1135_v6 = vunpack.c.l.b16 %v935_v35  ;;  %v7353_v55 = vrot.slane %v2606_v26, 5  ;;  %v963_v16 = vor.u32 %v962_v34, %v7350_v13  ;;  %v6443_v26 = vld [vmem:[%s6755_s8 + $0x84] sm:$0xff]  ;;  %3784 = vmatpush.bf16.msra.mxu2 %v6490_v4 }
 0x101   : > { %v1243_v8 = vpop.f32.mrf.mxu1  ;;  %v968_v29 = vrot.slane %v966_v54, 5  ;;  %v2604_v46 = vrot.slane %v2603_v22, 4  ;;  %v5866_v54 = vld [vmem:[%s6755_s8 + $0x9c] sm:$0xf] }
 0x102   : > { %v2222_v23 = vadd.f32 %v2145_v27, %v1843_v25  ;;  %v1319_v48 = vadd.f32 %v1243_v8, %v7154_v56  ;;  %v2612_v56 = vrot.slane %v2610_v18, 4  ;;  %v5865_v25 = vld [vmem:[%s6755_s8 + $0x98] sm:$0x1]  ;;  %v1157_v50 = vpack.c.b16 %v1136_v17, %v1135_v6 }
 0x103   : > { %v2893_v59 = vpop.f32.mrf.mxu0  ;;  %v2807_v27 = vpack.c.b16 %v2786_v52, %v2785_v40  ;;  %v2616_v18 = vshll.u32 %v5865_v25, 16  ;;  %v964_v31 = vrot.slane %v963_v16, 4  ;;  %v667_v40 = vld [vmem:[%s6755_s8 + $0x90] sm:$0xf]  ;;  %v1560_v52 = vrot.slane %v1558_v12, 4 }
 0x104   : > { %v2613_v61 = vor.u32 %v2612_v56, %v7353_v55  ;;  %v7368_v60 = vadd.f32 %v7323_v5, %v2222_v23  ;;  %v5867_v25 = vld [vmem:[%s6755_s8 + $0xa0] sm:$0xf]  ;;  %v2624_v47 = vshll.u32 %v5866_v54, 16 }
 0x105   : > { %v2618_v16 = vrot.slane %v2616_v18, 5  ;;  %v969_v23 = vsel %vm6899_vm4, %v964_v31, %v968_v29  ;;  %v2609_v18 = vsel %vm6899_vm4, %v2604_v46, %v7353_v55  ;;  %v6506_v55 = vld [vmem:[%s8145_s1 + $0x208] sm:$0xff] }
 0x106   : > { %v1138_v29 = vunpack.c.l.b16 %v969_v23  ;;  %5052 = vmatpush.bf16.msra.mxu0 %v6506_v55  ;;  %v2787_v23 = vunpack.c.l.b16 %v2609_v18 }
 0x107   : > { %v1768_v35 = vpop.f32.mrf.mxu2 }
 0x108   : > { %v1844_v11 = vadd.f32 %v1768_v35, %v1319_v48  ;;  %v2147_v44 = vpop.f32.mrf.mxu3  ;;  %v954_v48 = vrot.slane %v953_v58, 4  ;;  %v2614_v58 = vrot.slane %v2613_v61, 4  ;;  %v6498_v35 = vld [vmem:[%s8145_s1 + $0x1c8] sm:$0xff] }
 0x109   : > { %v1246_v8 = vpop.f32.mrf.mxu1  ;;  %4530 = vmatpush.bf16.msra.mxu3 %v6498_v35 }
 0x10a   : > { %v2223_v34 = vadd.f32 %v2147_v44, %v1844_v11  ;;  %v1320_v6 = vadd.f32 %v1246_v8, %v7173_v37  ;;  %v1559_v37 = vsel %vm6906_vm5, %v5633_v63, %v1558_v12  ;;  %v959_v5 = vsel %vm6899_vm4, %v954_v48, %v7350_v13 }
 0x10b   : > { %v7362_v17 = vpop.f32.mrf.mxu0  ;;  %v980_v11 = vshll.u32 %v668_v62, 16  ;;  %v984_v44 = vshrl.u32 %v668_v62, 16  ;;  %v1562_v8 = vsel %vm6906_vm5, %v1560_v52, %v1561_v32  ;;  %v2634_v13 = vshrl.u32 %v5867_v25, 16  ;;  %v6466_v52 = vld [vmem:[%s8145_s1 + $0x148] sm:$0xff] }
 0x10c   : > { %1285 = vmatmul.bf16.gmra.mxu1 %v1157_v50  ;;  %1810 = vmatmul.bf16.gmra.mxu2 %v1682_v24  ;;  %v7370_v56 = vadd.f32 %v2893_v59, %v2223_v34  ;;  %v971_v59 = vshrl.u32 %v667_v40, 16  ;;  %v974_v50 = vshll.u32 %v667_v40, 16  ;;  %v1137_v61 = vunpack.c.l.b16 %v959_v5  ;;  %v669_v40 = vld [vmem:[%s6755_s8 + $0x98] sm:$0x1] }
 0x10d   : > { %2189 = vmatmul.bf16.gmra.mxu3 %v6443_v26  ;;  %v2630_v26 = vshll.u32 %v5867_v25, 16  ;;  %v2619_v34 = vsel %vm6899_vm4, %v2614_v58, %v2618_v16  ;;  %v7401_v46 = vrot.slane %v980_v11, 5  ;;  %v2626_v16 = vrot.slane %v2624_v47, 5  ;;  %v1417_v25 = vld [vmem:[%s6755_s8 + $0x94] sm:$0xf]  ;;  %3405 = vmatpush.bf16.msra.mxu1 %v6466_v52 }
 0x10e   : > { %8157 = vst [vmem:[#allocation8_spill] sm:$0xff] %v7370_v56  ;;  %2935 = vmatmul.bf16.gmra.mxu0 %v2807_v27  ;;  %v2621_v27 = vshrl.u32 %v5866_v54, 16  ;;  %v973_v62 = vrot.slane %v971_v59, 4  ;;  %v976_v32 = vrot.slane %v974_v50, 5  ;;  %v986_v54 = vrot.slane %v984_v44, 4 }
 0x10f   : > { %v1771_v24 = vpop.f32.mrf.mxu2  ;;  %v1663_v4 = vunpack.c.l.b16 %v1562_v8  ;;  %v7404_v35 = vrot.slane %v2630_v26, 5  ;;  %v2636_v5 = vrot.slane %v2634_v13, 4  ;;  %v2788_v59 = vunpack.c.l.b16 %v2619_v34  ;;  %v1416_v47 = vld [vmem:[%s6755_s8 + $0x90] sm:$0xe] }
 0x110   : > { %v1845_v12 = vadd.f32 %v1771_v24, %v1320_v6  ;;  %v2150_v22 = vpop.f32.mrf.mxu3  ;;  %v2623_v58 = vrot.slane %v2621_v27, 4  ;;  %v990_v50 = vshll.u32 %v669_v40, 16  ;;  %v5868_v24 = vld [vmem:[%s6755_s8 + $0xa4] sm:$0x1]  ;;  %v1158_v11 = vpack.c.b16 %v1138_v29, %v1137_v61  ;;  %v6444_v40 = vld [vmem:[%s6755_s8 + $0x90] sm:$0xff] }
 0x111   : > { %v1248_v63 = vpop.f32.mrf.mxu1  ;;  %v977_v44 = vor.u32 %v976_v32, %v973_v62  ;;  %v987_v27 = vor.u32 %v986_v54, %v7401_v46  ;;  %v2637_v52 = vor.u32 %v2636_v5, %v7404_v35  ;;  %v2640_v18 = vshll.u32 %v5868_v24, 16 }
 0x112   : > { %v2224_v48 = vadd.f32 %v2150_v22, %v1845_v12  ;;  %v1321_v6 = vadd.f32 %v1248_v63, %v7201_v20  ;;  %v1662_v20 = vunpack.c.l.b16 %v1559_v37  ;;  %v1418_v37 = vld [vmem:[%s6755_s8 + $0x98] sm:$0x1]  ;;  %v1565_v22 = vrot.slane %v1417_v25, 5  ;;  %v670_v25 = vld [vmem:[%s6755_s8 + $0x9c] sm:$0xf] }
 0x113   : > { %v2898_v31 = vpop.f32.mrf.mxu0  ;;  %v2627_v8 = vor.u32 %v2626_v16, %v2623_v58  ;;  %v2808_v55 = vpack.c.b16 %v2788_v59, %v2787_v23  ;;  %v992_v56 = vrot.slane %v990_v50, 5  ;;  %v5634_v32 = vrot.slane %v1416_v47, 9  ;;  %v671_v59 = vld [vmem:[%s6755_s8 + $0xa0] sm:$0xf]  ;;  %v5870_v47 = vld [vmem:[%s6755_s8 + $0xac] sm:$0xf] }
 0x114   : > { %v1683_v13 = vpack.c.b16 %v1663_v4, %v1662_v20  ;;  %v1568_v54 = vrot.slane %v1418_v37, 5  ;;  %v978_v58 = vrot.slane %v977_v44, 4  ;;  %v1567_v16 = vrot.slane %v1565_v22, 4  ;;  %v5869_v44 = vld [vmem:[%s6755_s8 + $0xa8] sm:$0xf] }
 0x115   : > { %v2628_v20 = vrot.slane %v2627_v8, 4  ;;  %v2638_v4 = vrot.slane %v2637_v52, 4  ;;  %v2642_v5 = vrot.slane %v2640_v18, 5  ;;  %v7417_v23 = vadd.f32 %v7362_v17, %v2224_v48 }
 0x116   : > { %v995_v50 = vshrl.u32 %v670_v25, 16  ;;  %v998_v24 = vshll.u32 %v670_v25, 16  ;;  %v1569_v48 = vsel %vm6906_vm5, %v1567_v16, %v1568_v54  ;;  %v2648_v18 = vshll.u32 %v5869_v44, 16 }
 0x117   : > { %v1773_v12 = vpop.f32.mrf.mxu2  ;;  %v1665_v25 = vunpack.c.l.b16 %v1569_v48 }
 0x118   : > { %v1846_v26 = vadd.f32 %v1773_v12, %v1321_v6  ;;  %v2152_v63 = vpop.f32.mrf.mxu3  ;;  %v988_v6 = vrot.slane %v987_v27, 4  ;;  %v1566_v12 = vsel %vm6906_vm5, %v5634_v32, %v1565_v22  ;;  %v2643_v22 = vsel %vm6899_vm4, %v2638_v4, %v2642_v5  ;;  %v672_v4 = vld [vmem:[%s6755_s8 + $0xa4] sm:$0x1] }
 0x119   : > { %v1251_v34 = vpop.f32.mrf.mxu1  ;;  %v1000_v52 = vrot.slane %v998_v24, 5  ;;  %v1664_v54 = vunpack.c.l.b16 %v1566_v12 }
 0x11a   : > { %v2225_v61 = vadd.f32 %v2152_v63, %v1846_v26  ;;  %v1322_v29 = vadd.f32 %v1251_v34, %v7232_v10  ;;  %v993_v17 = vsel %vm6899_vm4, %v988_v6, %v992_v56  ;;  %v1004_v26 = vshll.u32 %v671_v59, 16 }
 0x11b   : > { %v7413_v62 = vpop.f32.mrf.mxu0  ;;  %v1008_v63 = vshrl.u32 %v671_v59, 16  ;;  %v2645_v56 = vshrl.u32 %v5869_v44, 16  ;;  %v1140_v32 = vunpack.c.l.b16 %v993_v17  ;;  %v1420_v59 = vld [vmem:[%s6755_s8 + $0xa0] sm:$0xf]  ;;  %v5871_v17 = vld [vmem:[%s6755_s8 + $0xb0] sm:$0x1] }
 0x11c   : > { %1290 = vmatmul.bf16.gmra.mxu1 %v1158_v11  ;;  %1815 = vmatmul.bf16.gmra.mxu2 %v1683_v13  ;;  %v7419_v10 = vadd.f32 %v2898_v31, %v2225_v61  ;;  %v983_v11 = vsel %vm6899_vm4, %v978_v58, %v7401_v46  ;;  %v2633_v31 = vsel %vm6899_vm4, %v2628_v20, %v7404_v35  ;;  %v997_v46 = vrot.slane %v995_v50, 4  ;;  %v1419_v50 = vld [vmem:[%s6755_s8 + $0x9c] sm:$0xe] }
 0x11d   : > { %2194 = vmatmul.bf16.gmra.mxu3 %v6444_v40  ;;  %v2658_v61 = vshrl.u32 %v5870_v47, 16  ;;  %v7439_v58 = vrot.slane %v1004_v26, 5  ;;  %v1010_v6 = vrot.slane %v1008_v63, 4  ;;  %v2789_v16 = vunpack.c.l.b16 %v2633_v31  ;;  %v6445_v26 = vld [vmem:[%s6755_s8 + $0x9c] sm:$0xff] }
 0x11e   : > { %2940 = vmatmul.bf16.gmra.mxu0 %v2808_v55  ;;  %v2654_v55 = vshll.u32 %v5870_v47, 16  ;;  %v2790_v20 = vunpack.c.l.b16 %v2643_v22  ;;  %v1001_v5 = vor.u32 %v1000_v52, %v997_v46  ;;  %v2647_v24 = vrot.slane %v2645_v56, 4 }
 0x11f   : > { %v1776_v27 = vpop.f32.mrf.mxu2  ;;  %v1011_v31 = vor.u32 %v1010_v6, %v7439_v58  ;;  %v5635_v46 = vrot.slane %v1419_v50, 9  ;;  %v1572_v52 = vrot.slane %v1420_v59, 5  ;;  %v674_v6 = vld [vmem:[%s6755_s8 + $0xac] sm:$0xf] }
 0x120   : > { %v1847_v37 = vadd.f32 %v1776_v27, %v1322_v29  ;;  %v2155_v8 = vpop.f32.mrf.mxu3  ;;  %v1139_v29 = vunpack.c.l.b16 %v983_v11  ;;  %v7444_v44 = vrot.slane %v2654_v55, 5  ;;  %v2660_v27 = vrot.slane %v2658_v61, 4  ;;  %v1421_v55 = vld [vmem:[%s6755_s8 + $0xa4] sm:$0x1] }
 0x121   : > { %v1253_v13 = vpop.f32.mrf.mxu1  ;;  %v2809_v63 = vpack.c.b16 %v2790_v20, %v2789_v16  ;;  %v1574_v59 = vrot.slane %v1572_v52, 4  ;;  %v1575_v50 = vrot.slane %v1421_v55, 5 }
 0x122   : > { %v2226_v34 = vadd.f32 %v2155_v8, %v1847_v37  ;;  %v1323_v40 = vadd.f32 %v1253_v13, %v7260_v0  ;;  %v2650_v0 = vrot.slane %v2648_v18, 5  ;;  %v1159_v12 = vpack.c.b16 %v1140_v32, %v1139_v29 }
 0x123   : > { %v2903_v35 = vpop.f32.mrf.mxu0  ;;  %v1684_v37 = vpack.c.b16 %v1665_v25, %v1664_v54  ;;  %v1014_v8 = vshll.u32 %v672_v4, 16  ;;  %v1002_v13 = vrot.slane %v1001_v5, 4  ;;  %v2664_v29 = vshll.u32 %v5871_v17, 16  ;;  %v673_v25 = vld [vmem:[%s6755_s8 + $0xa8] sm:$0xf] }
 0x124   : > { %v2651_v61 = vor.u32 %v2650_v0, %v2647_v24  ;;  %v1012_v32 = vrot.slane %v1011_v31, 4  ;;  %v7456_v16 = vadd.f32 %v7413_v62, %v2226_v34  ;;  %v7465_v5 = vsel %vm6906_vm5, %v5635_v46, %v1572_v52  ;;  %v6489_v24 = vld [vmem:[%s8145_s1 + $0x180] sm:$0xff]  ;;  %v5872_v62 = vld [vmem:[%s6755_s8 + $0xb4] sm:$0xf] }
 0x125   : > { %v1016_v54 = vrot.slane %v1014_v8, 5  ;;  %v1007_v4 = vsel %vm6899_vm4, %v1002_v13, %v7439_v58  ;;  %v6497_v34 = vld [vmem:[%s8145_s1 + $0x1c0] sm:$0xff]  ;;  %v2666_v58 = vrot.slane %v2664_v29, 5  ;;  %v1019_v17 = vshrl.u32 %v673_v25, 16  ;;  %3785 = vmatpush.bf16.msra.mxu2 %v6489_v24 }
 0x126   : > { %v2652_v0 = vrot.slane %v2651_v61, 4  ;;  %4531 = vmatpush.bf16.msra.mxu3 %v6497_v34  ;;  %v2672_v13 = vshll.u32 %v5872_v62, 16  ;;  %v1666_v46 = vunpack.c.l.b16 %v7465_v5 }
 0x127   : > { %v1778_v11 = vpop.f32.mrf.mxu2  ;;  %v1021_v5 = vrot.slane %v1019_v17, 4 }
 0x128   : > { %v1848_v48 = vadd.f32 %v1778_v11, %v1323_v40  ;;  %v2157_v47 = vpop.f32.mrf.mxu3  ;;  %v2661_v40 = vor.u32 %v2660_v27, %v7444_v44  ;;  %v5873_v11 = vld [vmem:[%s6755_s8 + $0xb8] sm:$0xf]  ;;  %v2657_v29 = vsel %vm6899_vm4, %v2652_v0, %v7444_v44 }
 0x129   : > { %v1256_v22 = vpop.f32.mrf.mxu1  ;;  %v2678_v52 = vshll.u32 %v5873_v11, 16  ;;  %v2791_v0 = vunpack.c.l.b16 %v2657_v29 }
 0x12a   : > { %v2227_v56 = vadd.f32 %v2157_v47, %v1848_v48  ;;  %v2662_v27 = vrot.slane %v2661_v40, 4  ;;  %v1022_v48 = vshll.u32 %v673_v25, 16  ;;  %v1028_v47 = vshll.u32 %v674_v6, 16  ;;  %v6505_v25 = vld [vmem:[%s8145_s1 + $0x200] sm:$0xff] }
 0x12b   : > { %v7449_v18 = vpop.f32.mrf.mxu0  ;;  %v1141_v40 = vunpack.c.l.b16 %v1007_v4  ;;  %5053 = vmatpush.bf16.msra.mxu0 %v6505_v25  ;;  %v6446_v25 = vld [vmem:[%s6755_s8 + $0xa8] sm:$0xff] }
 0x12c   : > { %1295 = vmatmul.bf16.gmra.mxu1 %v1159_v12  ;;  %1820 = vmatmul.bf16.gmra.mxu2 %v1684_v37  ;;  %v7458_v20 = vadd.f32 %v2903_v35, %v2227_v56  ;;  %v1324_v35 = vadd.f32 %v1256_v22, %v7067_v9  ;;  %v1032_v37 = vshrl.u32 %v674_v6, 16  ;;  %v1576_v22 = vsel %vm6906_vm5, %v1574_v59, %v1575_v50  ;;  %v675_v6 = vld [vmem:[%s6755_s8 + $0xb0] sm:$0x1] }
 0x12d   : > { %2199 = vmatmul.bf16.gmra.mxu3 %v6445_v26  ;;  %v1017_v26 = vsel %vm6899_vm4, %v1012_v32, %v1016_v54  ;;  %v2682_v56 = vshrl.u32 %v5873_v11, 16  ;;  %v2667_v32 = vsel %vm6899_vm4, %v2662_v27, %v2666_v58  ;;  %v6465_v54 = vld [vmem:[%s8145_s1 + $0x140] sm:$0xff]  ;;  %v1024_v59 = vrot.slane %v1022_v48, 5  ;;  %v5874_v48 = vld [vmem:[%s6755_s8 + $0xbc] sm:$0x1] }
 0x12e   : > { %8158 = vst [vmem:[#allocation9_spill] sm:$0xff] %v7458_v20  ;;  %2945 = vmatmul.bf16.gmra.mxu0 %v2809_v63  ;;  %v2669_v63 = vshrl.u32 %v5872_v62, 16  ;;  %v7493_v4 = vrot.slane %v1028_v47, 5  ;;  %v1034_v50 = vrot.slane %v1032_v37, 4  ;;  %v1142_v24 = vunpack.c.l.b16 %v1017_v26  ;;  %v1423_v62 = vld [vmem:[%s6755_s8 + $0xac] sm:$0xf]  ;;  %3406 = vmatpush.bf16.msra.mxu1 %v6465_v54 }
 0x12f   : > { %v1781_v12 = vpop.f32.mrf.mxu2  ;;  %v1667_v44 = vunpack.c.l.b16 %v1576_v22  ;;  %v2792_v27 = vunpack.c.l.b16 %v2667_v32  ;;  %v7496_v58 = vrot.slane %v2678_v52, 5  ;;  %v2684_v11 = vrot.slane %v2682_v56, 4  ;;  %v1424_v54 = vld [vmem:[%s6755_s8 + $0xb0] sm:$0x1] }
 0x130   : > { %v1849_v31 = vadd.f32 %v1781_v12, %v1324_v35  ;;  %v2160_v8 = vpop.f32.mrf.mxu3  ;;  %v2671_v34 = vrot.slane %v2669_v63, 4  ;;  %v2674_v35 = vrot.slane %v2672_v13, 5  ;;  %v1038_v17 = vshll.u32 %v675_v6, 16 }
 0x131   : > { %v1258_v9 = vpop.f32.mrf.mxu1  ;;  %v1025_v37 = vor.u32 %v1024_v59, %v1021_v5  ;;  %v1579_v26 = vrot.slane %v1423_v62, 5  ;;  %v1160_v22 = vpack.c.b16 %v1142_v24, %v1141_v40  ;;  %v1685_v29 = vpack.c.b16 %v1667_v44, %v1666_v46 }
 0x132   : > { %v2228_v55 = vadd.f32 %v2160_v8, %v1849_v31  ;;  %v1325_v12 = vadd.f32 %v1258_v9, %v7103_v43  ;;  %v1035_v31 = vor.u32 %v1034_v50, %v7493_v4  ;;  %v1422_v8 = vld [vmem:[%s6755_s8 + $0xa8] sm:$0xe]  ;;  %v2675_v32 = vor.u32 %v2674_v35, %v2671_v34 }
 0x133   : > { %v2908_v61 = vpop.f32.mrf.mxu0  ;;  %v2810_v56 = vpack.c.b16 %v2792_v27, %v2791_v0  ;;  %v2685_v20 = vor.u32 %v2684_v11, %v7496_v58  ;;  %v2688_v43 = vshll.u32 %v5874_v48, 16  ;;  %v1040_v5 = vrot.slane %v1038_v17, 5  ;;  %v676_v0 = vld [vmem:[%s6755_s8 + $0xb4] sm:$0xf]  ;;  %v677_v11 = vld [vmem:[%s6755_s8 + $0xb8] sm:$0xf] }
 0x134   : > { %v5636_v59 = vrot.slane %v1422_v8, 9  ;;  %v1026_v50 = vrot.slane %v1025_v37, 4  ;;  %v1036_v62 = vrot.slane %v1035_v31, 4  ;;  %v1582_v40 = vrot.slane %v1424_v54, 5  ;;  %v5875_v17 = vld [vmem:[%s6755_s8 + $0xc0] sm:$0xf] }
 0x135   : > { %v2676_v46 = vrot.slane %v2675_v32, 4  ;;  %v7506_v24 = vadd.f32 %v7449_v18, %v2228_v55  ;;  %v2686_v34 = vrot.slane %v2685_v20, 4  ;;  %v2690_v35 = vrot.slane %v2688_v43, 5 }
 0x136   : > { %v1041_v18 = vsel %vm6899_vm4, %v1036_v62, %v1040_v5  ;;  %v1580_v55 = vsel %vm6906_vm5, %v5636_v59, %v1579_v26  ;;  %v1043_v8 = vshrl.u32 %v676_v0, 16  ;;  %v678_v62 = vld [vmem:[%s6755_s8 + $0xbc] sm:$0x1] }
 0x137   : > { %v1783_v47 = vpop.f32.mrf.mxu2 }
 0x138   : > { %v1850_v63 = vadd.f32 %v1783_v47, %v1325_v12  ;;  %v2162_v13 = vpop.f32.mrf.mxu3  ;;  %v1581_v12 = vrot.slane %v1579_v26, 4  ;;  %v1031_v47 = vsel %vm6899_vm4, %v1026_v50, %v7493_v4  ;;  %v2691_v4 = vsel %vm6899_vm4, %v2686_v34, %v2690_v35  ;;  %v1426_v35 = vld [vmem:[%s6755_s8 + $0xb8] sm:$0xf] }
 0x139   : > { %v1261_v52 = vpop.f32.mrf.mxu1  ;;  %v2693_v26 = vshrl.u32 %v5875_v17, 16  ;;  %v1143_v43 = vunpack.c.l.b16 %v1031_v47  ;;  %v2794_v50 = vunpack.c.l.b16 %v2691_v4 }
 0x13a   : > { %v2229_v9 = vadd.f32 %v2162_v13, %v1850_v63  ;;  %v1326_v27 = vadd.f32 %v1261_v52, %v7123_v15  ;;  %v1583_v20 = vsel %vm6906_vm5, %v1581_v12, %v1582_v40  ;;  %v2681_v15 = vsel %vm6899_vm4, %v2676_v46, %v7496_v58 }
 0x13b   : > { %v2911_v6 = vpop.f32.mrf.mxu0  ;;  %v1046_v63 = vshll.u32 %v676_v0, 16  ;;  %v2696_v52 = vshll.u32 %v5875_v17, 16  ;;  %v1668_v58 = vunpack.c.l.b16 %v1580_v55  ;;  %v1669_v5 = vunpack.c.l.b16 %v1583_v20  ;;  %v1425_v17 = vld [vmem:[%s6755_s8 + $0xb4] sm:$0xe] }
 0x13c   : > { %1300 = vmatmul.bf16.gmra.mxu1 %v1160_v22  ;;  %1825 = vmatmul.bf16.gmra.mxu2 %v1685_v29  ;;  %v7508_v44 = vadd.f32 %v2908_v61, %v2229_v9  ;;  %v5876_v61 = vld [vmem:[%s6755_s8 + $0xc4] sm:$0xf]  ;;  %v1052_v22 = vshll.u32 %v677_v11, 16  ;;  %v1056_v29 = vshrl.u32 %v677_v11, 16  ;;  %v1144_v9 = vunpack.c.l.b16 %v1041_v18 }
 0x13d   : > { %2204 = vmatmul.bf16.gmra.mxu3 %v6446_v25  ;;  %v2702_v25 = vshll.u32 %v5876_v61, 16  ;;  %v2793_v59 = vunpack.c.l.b16 %v2681_v15  ;;  %v1045_v12 = vrot.slane %v1043_v8, 4  ;;  %v1048_v40 = vrot.slane %v1046_v63, 5 }
 0x13e   : > { %2950 = vmatmul.bf16.gmra.mxu0 %v2810_v56  ;;  %v2706_v56 = vshrl.u32 %v5876_v61, 16  ;;  %v7530_v46 = vrot.slane %v1052_v22, 5  ;;  %v1058_v34 = vrot.slane %v1056_v29, 4  ;;  %v2695_v0 = vrot.slane %v2693_v26, 4  ;;  %v5877_v61 = vld [vmem:[%s6755_s8 + $0xc8] sm:$0x1] }
 0x13f   : > { %v1786_v48 = vpop.f32.mrf.mxu2  ;;  %v7537_v47 = vrot.slane %v2702_v25, 5  ;;  %v1161_v20 = vpack.c.b16 %v1144_v9, %v1143_v43  ;;  %v1686_v15 = vpack.c.b16 %v1669_v5, %v1668_v58  ;;  %v2811_v8 = vpack.c.b16 %v2794_v50, %v2793_v59  ;;  %v6182_v5 = vld [vmem:[%s6755_s8 + $0x18] sm:$0xf]  ;;  %v6183_v59 = vld [vmem:[%s6755_s8 + $0x1c] sm:$0xf] }
 0x140   : > { %v1851_v37 = vadd.f32 %v1786_v48, %v1326_v27  ;;  %v2165_v31 = vpop.f32.mrf.mxu3  ;;  %v2698_v48 = vrot.slane %v2696_v52, 5  ;;  %v2708_v18 = vrot.slane %v2706_v56, 4  ;;  %v1062_v63 = vshll.u32 %v678_v62, 16 }
 0x141   : > { %v1263_v13 = vpop.f32.mrf.mxu1  ;;  %v1049_v22 = vor.u32 %v1048_v40, %v1045_v12  ;;  %v5637_v29 = vrot.slane %v1425_v17, 9  ;;  %v1586_v26 = vrot.slane %v1426_v35, 5  ;;  %v2712_v43 = vshll.u32 %v5877_v61, 16 }
 0x142   : > { %v2230_v54 = vadd.f32 %v2165_v31, %v1851_v37  ;;  %v1327_v11 = vadd.f32 %v1263_v13, %v7147_v51  ;;  %v1059_v51 = vor.u32 %v1058_v34, %v7530_v46  ;;  %v1427_v13 = vld [vmem:[%s6755_s8 + $0xbc] sm:$0x1]  ;;  %v2699_v25 = vor.u32 %v2698_v48, %v2695_v0 }
 0x143   : > { %v2913_v32 = vpop.f32.mrf.mxu0  ;;  %v2709_v56 = vor.u32 %v2708_v18, %v7537_v47  ;;  %v1064_v9 = vrot.slane %v1062_v63, 5  ;;  %v1589_v58 = vrot.slane %v1427_v13, 5  ;;  %v1050_v62 = vrot.slane %v1049_v22, 4  ;;  %v5927_v13 = vld [vmem:[%s6755_s8 + $0x10] sm:$0xf] }
 0x144   : > { %v7533_v27 = vadd.f32 %v2911_v6, %v2230_v54  ;;  %v6447_v6 = vld [vmem:[%s6755_s8 + $0xb4] sm:$0xff]  ;;  %v1060_v12 = vrot.slane %v1059_v51, 4  ;;  %v1587_v40 = vsel %vm6906_vm5, %v5637_v29, %v1586_v26  ;;  %v1588_v34 = vrot.slane %v1586_v26, 4 }
 0x145   : > { %v2700_v0 = vrot.slane %v2699_v25, 4  ;;  %v2714_v17 = vrot.slane %v2712_v43, 5  ;;  %v3980_v18 = vshrl.u32 %v6182_v5, 16 }
 0x147   : > { %v1788_v55 = vpop.f32.mrf.mxu2  ;;  %v2705_v22 = vsel %vm6899_vm4, %v2700_v0, %v7537_v47  ;;  %v6279_v47 = vld [vmem:[%s6755_s8 + $0x1c] sm:$0xf] }
 0x148   : > { %v1852_v37 = vadd.f32 %v1788_v55, %v1327_v11  ;;  %v2167_v31 = vpop.f32.mrf.mxu3  ;;  %v2710_v11 = vrot.slane %v2709_v56, 4  ;;  %v3983_v55 = vshll.u32 %v6182_v5, 16  ;;  %v2795_v5 = vunpack.c.l.b16 %v2705_v22 }
 0x149   : > { %v1266_v4 = vpop.f32.mrf.mxu1 }
 0x14a   : > { %v2231_v54 = vadd.f32 %v2167_v31, %v1852_v37  ;;  %v1328_v35 = vadd.f32 %v1266_v4, %v7170_v28  ;;  %v1065_v28 = vsel %vm6899_vm4, %v1060_v12, %v1064_v9  ;;  %v2715_v51 = vsel %vm6899_vm4, %v2710_v11, %v2714_v17  ;;  %v6184_v9 = vld [vmem:[%s6755_s8 + $0x20] sm:$0x1] }
 0x14b   : > { %v2916_v52 = vpop.f32.mrf.mxu0  ;;  %v3985_v29 = vrot.slane %v3983_v55, 5  ;;  %v1146_v56 = vunpack.c.l.b16 %v1065_v28  ;;  %v3128_v12 = vrot.slane %v5927_v13, 5  ;;  %v3999_v11 = vshll.u32 %v6184_v9, 16  ;;  %v5928_v55 = vld [vmem:[%s6755_s8 + $0x14] sm:$0x1] }
 0x14c   : > { %1305 = vmatmul.bf16.gmra.mxu1 %v1161_v20  ;;  %1830 = vmatmul.bf16.gmra.mxu2 %v1686_v15  ;;  %v7546_v50 = vadd.f32 %v2913_v32, %v2231_v54  ;;  %v3989_v20 = vshll.u32 %v6183_v59, 16  ;;  %v3993_v32 = vshrl.u32 %v6183_v59, 16  ;;  %v1055_v15 = vsel %vm6899_vm4, %v1050_v62, %v7530_v46  ;;  %v6186_v9 = vld [vmem:[%s6755_s8 + $0x28] sm:$0xf] }
 0x14d   : > { %2209 = vmatmul.bf16.gmra.mxu3 %v6447_v6  ;;  %v1670_v6 = vunpack.c.l.b16 %v1587_v40  ;;  %v3982_v46 = vrot.slane %v3980_v18, 4  ;;  %v1145_v25 = vunpack.c.l.b16 %v1055_v15  ;;  %v2796_v59 = vunpack.c.l.b16 %v2715_v51  ;;  %v6278_v15 = vld [vmem:[%s6755_s8 + $0x18] sm:$0xe] }
 0x14e   : > { %2955 = vmatmul.bf16.gmra.mxu0 %v2811_v8  ;;  %v1590_v8 = vsel %vm6906_vm5, %v1588_v34, %v1589_v58  ;;  %v7564_v26 = vrot.slane %v3989_v20, 5  ;;  %v3995_v54 = vrot.slane %v3993_v32, 4  ;;  %v5926_v34 = vld [vmem:[%s6755_s8 + $0xc] sm:$0xe]  ;;  %v4775_v20 = vrot.slane %v6279_v47, 5 }
 0x14f   : > { %v1791_v48 = vpop.f32.mrf.mxu2  ;;  %v1671_v43 = vunpack.c.l.b16 %v1590_v8  ;;  %v1162_v18 = vpack.c.b16 %v1146_v56, %v1145_v25  ;;  %v5974_v8 = vrot.slane %v5926_v34, 9  ;;  %v3131_v22 = vrot.slane %v5928_v55, 5 }
 0x150   : > { %v1853_v61 = vadd.f32 %v1791_v48, %v1328_v35  ;;  %v2170_v37 = vpop.f32.mrf.mxu3  ;;  %v3986_v35 = vor.u32 %v3985_v29, %v3982_v46  ;;  %v3996_v0 = vor.u32 %v3995_v54, %v7564_v26  ;;  %v4001_v46 = vrot.slane %v3999_v11, 5 }
 0x151   : > { %v1268_v31 = vpop.f32.mrf.mxu1  ;;  %v4777_v29 = vrot.slane %v4775_v20, 4 }
 0x152   : > { %v2232_v63 = vadd.f32 %v2170_v37, %v1853_v61  ;;  %v1329_v62 = vadd.f32 %v1268_v31, %v7199_v14  ;;  %v6448_v61 = vld [vmem:[%s6755_s8 + $0xc0] sm:$0xff]  ;;  %v2812_v37 = vpack.c.b16 %v2796_v59, %v2795_v5  ;;  %v3987_v51 = vrot.slane %v3986_v35, 4 }
 0x153   : > { %v2918_v4 = vpop.f32.mrf.mxu0  ;;  %v6280_v14 = vld [vmem:[%s6755_s8 + $0x20] sm:$0x1]  ;;  %v3997_v13 = vrot.slane %v3996_v0, 4  ;;  %v3129_v59 = vsel %vm6906_vm5, %v5974_v8, %v3128_v12 }
 0x154   : > { %v7567_v58 = vadd.f32 %v2916_v52, %v2232_v63  ;;  %v1687_v52 = vpack.c.b16 %v1671_v43, %v1670_v6  ;;  %v3130_v63 = vrot.slane %v3128_v12, 4  ;;  %v6326_v6 = vrot.slane %v6278_v15, 9  ;;  %v6185_v43 = vld [vmem:[%s6755_s8 + $0x24] sm:$0xf] }
 0x155   : > { %v4778_v54 = vrot.slane %v6280_v14, 5  ;;  %v4002_v34 = vsel %vm6899_vm4, %v3997_v13, %v4001_v46  ;;  %v4004_v0 = vshrl.u32 %v6185_v43, 16  ;;  %v4007_v11 = vshll.u32 %v6185_v43, 16  ;;  %v5930_v14 = vld [vmem:[%s6755_s8 + $0x1c] sm:$0xf] }
 0x156   : > { %v3132_v47 = vsel %vm6906_vm5, %v3130_v63, %v3131_v22  ;;  %v6187_v13 = vld [vmem:[%s6755_s8 + $0x2c] sm:$0x1] }
 0x157   : > { %v1793_v40 = vpop.f32.mrf.mxu2  ;;  %v4779_v35 = vsel %vm6906_vm5, %v4777_v29, %v4778_v54  ;;  %v3288_v55 = vunpack.c.l.b16 %v3132_v47  ;;  %v4009_v8 = vrot.slane %v4007_v11, 5  ;;  %v5929_v47 = vld [vmem:[%s6755_s8 + $0x18] sm:$0xe] }
 0x158   : > { %v1854_v17 = vadd.f32 %v1793_v40, %v1329_v62  ;;  %v2172_v48 = vpop.f32.mrf.mxu3  ;;  %v3992_v62 = vsel %vm6899_vm4, %v3987_v51, %v7564_v26  ;;  %v5975_v11 = vrot.slane %v5929_v47, 9 }
 0x159   : > { %v1271_v32 = vpop.f32.mrf.mxu1 }
 0x15a   : > { %v2233_v31 = vadd.f32 %v2172_v48, %v1854_v17  ;;  %v1330_v56 = vadd.f32 %v1271_v32, %v7228_v2  ;;  %v4776_v2 = vsel %vm6906_vm5, %v6326_v6, %v4775_v20  ;;  %v4013_v17 = vshll.u32 %v6186_v9, 16  ;;  %v6282_v6 = vld [vmem:[%s6755_s8 + $0x28] sm:$0xf] }
 0x15b   : > { %v2921_v28 = vpop.f32.mrf.mxu0  ;;  %v4017_v48 = vshrl.u32 %v6186_v9, 16  ;;  %v4412_v32 = vunpack.c.l.b16 %v3992_v62  ;;  %v4935_v20 = vunpack.c.l.b16 %v4779_v35  ;;  %v3135_v9 = vrot.slane %v5930_v14, 5 }
 0x15c   : > { %1310 = vmatmul.bf16.gmra.mxu1 %v1162_v18  ;;  %1835 = vmatmul.bf16.gmra.mxu2 %v1687_v52  ;;  %v7577_v25 = vadd.f32 %v2918_v4, %v2233_v31  ;;  %v3287_v52 = vunpack.c.l.b16 %v3129_v59  ;;  %v4006_v31 = vrot.slane %v4004_v0, 4  ;;  %v7598_v63 = vrot.slane %v4013_v17, 5  ;;  %v6283_v0 = vld [vmem:[%s6755_s8 + $0x2c] sm:$0x1] }
 0x15d   : > { %2214 = vmatmul.bf16.gmra.mxu3 %v6448_v61  ;;  %v4413_v61 = vunpack.c.l.b16 %v4002_v34  ;;  %v4019_v22 = vrot.slane %v4017_v48, 4  ;;  %v4782_v35 = vrot.slane %v6282_v6, 5  ;;  %v3137_v17 = vrot.slane %v3135_v9, 4  ;;  %v6188_v48 = vld [vmem:[%s6755_s8 + $0x30] sm:$0xf] }
 0x15e   : > { %2960 = vmatmul.bf16.gmra.mxu0 %v2812_v37  ;;  %v4934_v37 = vunpack.c.l.b16 %v4776_v2  ;;  %v4010_v62 = vor.u32 %v4009_v8, %v4006_v31  ;;  %v5931_v2 = vld [vmem:[%s6755_s8 + $0x20] sm:$0x1]  ;;  %v4785_v8 = vrot.slane %v6283_v0, 5  ;;  %v6190_v0 = vld [vmem:[%s6755_s8 + $0x38] sm:$0x1] }
 0x15f   : > { %v1796_v5 = vpop.f32.mrf.mxu2  ;;  %v4444_v43 = vpack.c.b16 %v4413_v61, %v4412_v32  ;;  %v4784_v31 = vrot.slane %v4782_v35, 4 }
 0x160   : > { %v1855_v40 = vadd.f32 %v1796_v5, %v1330_v56  ;;  %v2175_v4 = vpop.f32.mrf.mxu3  ;;  %v3319_v56 = vpack.c.b16 %v3288_v55, %v3287_v52  ;;  %v4966_v59 = vpack.c.b16 %v4935_v20, %v4934_v37  ;;  %v3138_v55 = vrot.slane %v5931_v2, 5 }
 0x161   : > { %v1273_v12 = vpop.f32.mrf.mxu1  ;;  %v4011_v32 = vrot.slane %v4010_v62, 4  ;;  %v4786_v62 = vsel %vm6906_vm5, %v4784_v31, %v4785_v8  ;;  %v4047_v8 = vshll.u32 %v6190_v0, 16 }
 0x162   : > { %v2234_v18 = vadd.f32 %v2175_v4, %v1855_v40  ;;  %v1331_v51 = vadd.f32 %v1273_v12, %v7256_v57  ;;  %v4020_v57 = vor.u32 %v4019_v22, %v7598_v63  ;;  %v4023_v40 = vshll.u32 %v6187_v13, 16  ;;  %v6281_v12 = vld [vmem:[%s6755_s8 + $0x24] sm:$0xe] }
 0x163   : > { %v2923_v26 = vpop.f32.mrf.mxu0  ;;  %v6327_v14 = vrot.slane %v6281_v12, 9  ;;  %v4031_v13 = vshll.u32 %v6188_v48, 16 }
 0x164   : > { %v7595_v15 = vadd.f32 %v2921_v28, %v2234_v18  ;;  %v6473_v28 = vld [vmem:[%s6755_s8 + $0x18] sm:$0xff]  ;;  %v6189_v18 = vld [vmem:[%s6755_s8 + $0x34] sm:$0xf]  ;;  %v4021_v61 = vrot.slane %v4020_v57, 4  ;;  %v4025_v37 = vrot.slane %v4023_v40, 5 }
 0x165   : > { %v4041_v6 = vshrl.u32 %v6189_v18, 16  ;;  %v4783_v47 = vsel %vm6906_vm5, %v6327_v14, %v4782_v35  ;;  %v4033_v40 = vrot.slane %v4031_v13, 5  ;;  %v6474_v13 = vld [vmem:[%s6755_s8 + $0x24] sm:$0xff] }
 0x166   : > { %v4936_v35 = vunpack.c.l.b16 %v4783_v47 }
 0x167   : > { %v1798_v46 = vpop.f32.mrf.mxu2  ;;  %v4043_v2 = vrot.slane %v4041_v6, 4 }
 0x168   : > { %v1856_v29 = vadd.f32 %v1798_v46, %v1331_v51  ;;  %v2177_v54 = vpop.f32.mrf.mxu3  ;;  %v4028_v51 = vshrl.u32 %v6188_v48, 16  ;;  %v4037_v46 = vshll.u32 %v6189_v18, 16  ;;  %v4937_v18 = vunpack.c.l.b16 %v4786_v62 }
 0x169   : > { %v1276_v5 = vpop.f32.mrf.mxu1 }
 0x16a   : > { %v2235_v4 = vadd.f32 %v2177_v54, %v1856_v29  ;;  %v1332_v20 = vadd.f32 %v1276_v5, %v7087_v30  ;;  %v4016_v30 = vsel %vm6899_vm4, %v4011_v32, %v7598_v63  ;;  %v4030_v57 = vrot.slane %v4028_v51, 4 }
 0x16b   : > { %v2926_v34 = vpop.f32.mrf.mxu0 }
 0x16c   : > { %3407 = vmatmul.bf16.vlgmr.msra.gmra.mxu1 %v3319_v56  ;;  %3786 = vmatmul.bf16.vlgmr.msra.gmra.mxu2 %v6473_v28  ;;  %v7611_v52 = vadd.f32 %v2923_v26, %v2235_v4  ;;  %v3136_v56 = vsel %vm6906_vm5, %v5975_v11, %v3135_v9  ;;  %v3139_v28 = vsel %vm6906_vm5, %v3137_v17, %v3138_v55  ;;  %v5933_v9 = vld [vmem:[%s6755_s8 + $0x28] sm:$0xf]  ;;  %v7628_v4 = vrot.slane %v4037_v46, 5  ;;  %v6285_v55 = vld [vmem:[%s6755_s8 + $0x34] sm:$0xf] }
 0x16d   : > { %4532 = vmatmul.bf16.vlgmr.msra.gmra.mxu3 %v4444_v43  ;;  %v3289_v63 = vunpack.c.l.b16 %v3136_v56  ;;  %v3290_v12 = vunpack.c.l.b16 %v3139_v28  ;;  %v4414_v17 = vunpack.c.l.b16 %v4016_v30  ;;  %v4034_v14 = vor.u32 %v4033_v40, %v4030_v57  ;;  %v5934_v46 = vld [vmem:[%s6755_s8 + $0x2c] sm:$0x1]  ;;  %v6284_v28 = vld [vmem:[%s6755_s8 + $0x30] sm:$0xe] }
 0x16e   : > { %5054 = vmatmul.bf16.vlgmr.msra.gmra.mxu0 %v4966_v59  ;;  %v4026_v59 = vsel %vm6899_vm4, %v4021_v61, %v4025_v37  ;;  %v3142_v61 = vrot.slane %v5933_v9, 5  ;;  %v4044_v31 = vor.u32 %v4043_v2, %v7628_v4  ;;  %v4789_v6 = vrot.slane %v6285_v55, 5 }
 0x16f   : > { %v1801_v22 = vpop.f32.mrf.mxu2  ;;  %v4415_v48 = vunpack.c.l.b16 %v4026_v59  ;;  %v3320_v51 = vpack.c.b16 %v3290_v12, %v3289_v63  ;;  %v4967_v56 = vpack.c.b16 %v4937_v18, %v4936_v35  ;;  %v3145_v47 = vrot.slane %v5934_v46, 5 }
 0x170   : > { %v1857_v29 = vadd.f32 %v1801_v22, %v1332_v20  ;;  %v2180_v26 = vpop.f32.mrf.mxu3  ;;  %v5932_v20 = vld [vmem:[%s6755_s8 + $0x24] sm:$0xe]  ;;  %v3144_v59 = vrot.slane %v3142_v61, 4  ;;  %v4035_v62 = vrot.slane %v4034_v14, 4  ;;  %v4045_v9 = vrot.slane %v4044_v31, 4 }
 0x171   : > { %v1278_v54 = vpop.f32.mrf.mxu1  ;;  %v4049_v57 = vrot.slane %v4047_v8, 5  ;;  %v6328_v40 = vrot.slane %v6284_v28, 9  ;;  %v4791_v2 = vrot.slane %v4789_v6, 4 }
 0x172   : > { %v2236_v43 = vadd.f32 %v2180_v26, %v1857_v29  ;;  %v1333_v32 = vadd.f32 %v1278_v54, %v7117_v3  ;;  %v4445_v26 = vpack.c.b16 %v4415_v48, %v4414_v17  ;;  %v6286_v3 = vld [vmem:[%s6755_s8 + $0x38] sm:$0x1]  ;;  %v6191_v17 = vld [vmem:[%s6755_s8 + $0x3c] sm:$0xf]  ;;  %v6192_v48 = vld [vmem:[%s6755_s8 + $0x40] sm:$0xf]  ;;  %v3146_v55 = vsel %vm6906_vm5, %v3144_v59, %v3145_v47 }
 0x173   : > { %v2928_v5 = vpop.f32.mrf.mxu0  ;;  %v4792_v63 = vrot.slane %v6286_v3, 5  ;;  %v4052_v31 = vshrl.u32 %v6191_v17, 16  ;;  %v4055_v8 = vshll.u32 %v6191_v17, 16  ;;  %v3292_v46 = vunpack.c.l.b16 %v3146_v55  ;;  %v5936_v3 = vld [vmem:[%s6755_s8 + $0x34] sm:$0xf] }
 0x174   : > { %v7631_v11 = vadd.f32 %v2926_v34, %v2236_v43  ;;  %v5976_v43 = vrot.slane %v5932_v20, 9  ;;  %v4050_v20 = vsel %vm6899_vm4, %v4045_v9, %v4049_v57  ;;  %v6193_v9 = vld [vmem:[%s6755_s8 + $0x44] sm:$0x1]  ;;  %v5935_v55 = vld [vmem:[%s6755_s8 + $0x30] sm:$0xe] }
 0x175   : > { %v4793_v14 = vsel %vm6906_vm5, %v4791_v2, %v4792_v63 }
 0x176   : > { %v3143_v18 = vsel %vm6906_vm5, %v5976_v43, %v3142_v61  ;;  %v4057_v43 = vrot.slane %v4055_v8, 5  ;;  %v5977_v8 = vrot.slane %v5935_v55, 9 }
 0x177   : > { %v1803_v37 = vpop.f32.mrf.mxu2 }
 0x178   : > { %v1858_v34 = vadd.f32 %v1803_v37, %v1333_v32  ;;  %v2182_v22 = vpop.f32.mrf.mxu3  ;;  %v4040_v32 = vsel %vm6899_vm4, %v4035_v62, %v7628_v4 }
 0x179   : > { %v1281_v29 = vpop.f32.mrf.mxu1 }
 0x17a   : > { %v2237_v54 = vadd.f32 %v2182_v22, %v1858_v34  ;;  %v1334_v0 = vadd.f32 %v1281_v29, %v7132_v39  ;;  %v4790_v39 = vsel %vm6906_vm5, %v6328_v40, %v4789_v6  ;;  %v4061_v34 = vshll.u32 %v6192_v48, 16  ;;  %v6288_v40 = vld [vmem:[%s6755_s8 + $0x40] sm:$0xf] }
 0x17b   : > { %v2931_v30 = vpop.f32.mrf.mxu0  ;;  %v4065_v22 = vshrl.u32 %v6192_v48, 16  ;;  %v4416_v29 = vunpack.c.l.b16 %v4040_v32  ;;  %v4939_v6 = vunpack.c.l.b16 %v4793_v14  ;;  %v3149_v48 = vrot.slane %v5936_v3, 5 }
 0x17c   : > { %3412 = vmatmul.bf16.gmra.mxu1 %v3320_v51  ;;  %3791 = vmatmul.bf16.gmra.mxu2 %v6474_v13  ;;  %v7641_v12 = vadd.f32 %v2928_v5, %v2237_v54  ;;  %v3291_v13 = vunpack.c.l.b16 %v3143_v18  ;;  %v4054_v54 = vrot.slane %v4052_v31, 4  ;;  %v7662_v59 = vrot.slane %v4061_v34, 5  ;;  %v6289_v31 = vld [vmem:[%s6755_s8 + $0x44] sm:$0x1] }
 0x17d   : > { %4537 = vmatmul.bf16.gmra.mxu3 %v4445_v26  ;;  %v4417_v26 = vunpack.c.l.b16 %v4050_v20  ;;  %v4067_v47 = vrot.slane %v4065_v22, 4  ;;  %v4796_v14 = vrot.slane %v6288_v40, 5  ;;  %v3151_v34 = vrot.slane %v3149_v48, 4  ;;  %v6194_v22 = vld [vmem:[%s6755_s8 + $0x48] sm:$0xf] }
 0x17e   : > { %5059 = vmatmul.bf16.gmra.mxu0 %v4967_v56  ;;  %v4938_v56 = vunpack.c.l.b16 %v4790_v39  ;;  %v4058_v32 = vor.u32 %v4057_v43, %v4054_v54  ;;  %v5937_v39 = vld [vmem:[%s6755_s8 + $0x38] sm:$0x1]  ;;  %v4799_v43 = vrot.slane %v6289_v31, 5  ;;  %v6196_v31 = vld [vmem:[%s6755_s8 + $0x50] sm:$0x1] }
 0x17f   : > { %v1806_v35 = vpop.f32.mrf.mxu2  ;;  %v4446_v17 = vpack.c.b16 %v4417_v26, %v4416_v29  ;;  %v4798_v54 = vrot.slane %v4796_v14, 4 }
 0x180   : > { %v1859_v37 = vadd.f32 %v1806_v35, %v1334_v0  ;;  %v2185_v5 = vpop.f32.mrf.mxu3  ;;  %v3321_v0 = vpack.c.b16 %v3292_v46, %v3291_v13  ;;  %v4968_v18 = vpack.c.b16 %v4939_v6, %v4938_v56  ;;  %v3152_v46 = vrot.slane %v5937_v39, 5 }
 0x181   : > { %v1283_v61 = vpop.f32.mrf.mxu1  ;;  %v4059_v29 = vrot.slane %v4058_v32, 4  ;;  %v4800_v32 = vsel %vm6906_vm5, %v4798_v54, %v4799_v43  ;;  %v4095_v43 = vshll.u32 %v6196_v31, 16 }
 0x182   : > { %v2238_v51 = vadd.f32 %v2185_v5, %v1859_v37  ;;  %v1335_v62 = vadd.f32 %v1283_v61, %v7164_v19  ;;  %v4068_v19 = vor.u32 %v4067_v47, %v7662_v59  ;;  %v4071_v37 = vshll.u32 %v6193_v9, 16  ;;  %v6287_v61 = vld [vmem:[%s6755_s8 + $0x3c] sm:$0xe] }
 0x183   : > { %v2933_v4 = vpop.f32.mrf.mxu0  ;;  %v6329_v3 = vrot.slane %v6287_v61, 9  ;;  %v4079_v9 = vshll.u32 %v6194_v22, 16 }
 0x184   : > { %v7659_v28 = vadd.f32 %v2931_v30, %v2238_v51  ;;  %v6475_v30 = vld [vmem:[%s6755_s8 + $0x30] sm:$0xff]  ;;  %v6195_v51 = vld [vmem:[%s6755_s8 + $0x4c] sm:$0xf]  ;;  %v4069_v26 = vrot.slane %v4068_v19, 4  ;;  %v4073_v56 = vrot.slane %v4071_v37, 5 }
 0x185   : > { %v4089_v40 = vshrl.u32 %v6195_v51, 16  ;;  %v4797_v55 = vsel %vm6906_vm5, %v6329_v3, %v4796_v14  ;;  %v4081_v37 = vrot.slane %v4079_v9, 5  ;;  %v6476_v9 = vld [vmem:[%s6755_s8 + $0x3c] sm:$0xff] }
 0x186   : > { %v4940_v14 = vunpack.c.l.b16 %v4797_v55 }
 0x187   : > { %v1808_v57 = vpop.f32.mrf.mxu2  ;;  %v4091_v39 = vrot.slane %v4089_v40, 4 }
 0x188   : > { %v1860_v2 = vadd.f32 %v1808_v57, %v1335_v62  ;;  %v2187_v63 = vpop.f32.mrf.mxu3  ;;  %v4076_v62 = vshrl.u32 %v6194_v22, 16  ;;  %v4085_v57 = vshll.u32 %v6195_v51, 16  ;;  %v4941_v51 = vunpack.c.l.b16 %v4800_v32 }
 0x189   : > { %v1286_v35 = vpop.f32.mrf.mxu1 }
 0x18a   : > { %v2239_v5 = vadd.f32 %v2187_v63, %v1860_v2  ;;  %v1336_v6 = vadd.f32 %v1286_v35, %v7191_v1  ;;  %v4064_v1 = vsel %vm6899_vm4, %v4059_v29, %v7662_v59  ;;  %v4078_v19 = vrot.slane %v4076_v62, 4 }
 0x18b   : > { %v2936_v20 = vpop.f32.mrf.mxu0 }
 0x18c   : > { %3417 = vmatmul.bf16.gmra.mxu1 %v3321_v0  ;;  %3796 = vmatmul.bf16.gmra.mxu2 %v6475_v30  ;;  %v7675_v13 = vadd.f32 %v2933_v4, %v2239_v5  ;;  %v3150_v0 = vsel %vm6906_vm5, %v5977_v8, %v3149_v48  ;;  %v3153_v30 = vsel %vm6906_vm5, %v3151_v34, %v3152_v46  ;;  %v5939_v48 = vld [vmem:[%s6755_s8 + $0x40] sm:$0xf]  ;;  %v7692_v5 = vrot.slane %v4085_v57, 5  ;;  %v6291_v46 = vld [vmem:[%s6755_s8 + $0x4c] sm:$0xf] }
 0x18d   : > { %4542 = vmatmul.bf16.gmra.mxu3 %v4446_v17  ;;  %v3293_v59 = vunpack.c.l.b16 %v3150_v0  ;;  %v3294_v61 = vunpack.c.l.b16 %v3153_v30  ;;  %v4418_v34 = vunpack.c.l.b16 %v4064_v1  ;;  %v4082_v3 = vor.u32 %v4081_v37, %v4078_v19  ;;  %v5940_v57 = vld [vmem:[%s6755_s8 + $0x44] sm:$0x1]  ;;  %v6290_v30 = vld [vmem:[%s6755_s8 + $0x48] sm:$0xe] }
 0x18e   : > { %5064 = vmatmul.bf16.gmra.mxu0 %v4968_v18  ;;  %v4074_v18 = vsel %vm6899_vm4, %v4069_v26, %v4073_v56  ;;  %v3156_v26 = vrot.slane %v5939_v48, 5  ;;  %v4092_v54 = vor.u32 %v4091_v39, %v7692_v5  ;;  %v4803_v40 = vrot.slane %v6291_v46, 5 }
 0x18f   : > { %v1811_v47 = vpop.f32.mrf.mxu2  ;;  %v4419_v22 = vunpack.c.l.b16 %v4074_v18  ;;  %v3322_v62 = vpack.c.b16 %v3294_v61, %v3293_v59  ;;  %v4969_v0 = vpack.c.b16 %v4941_v51, %v4940_v14  ;;  %v3159_v55 = vrot.slane %v5940_v57, 5 }
 0x190   : > { %v1861_v2 = vadd.f32 %v1811_v47, %v1336_v6  ;;  %v2190_v4 = vpop.f32.mrf.mxu3  ;;  %v5938_v6 = vld [vmem:[%s6755_s8 + $0x3c] sm:$0xe]  ;;  %v3158_v18 = vrot.slane %v3156_v26, 4  ;;  %v4083_v32 = vrot.slane %v4082_v3, 4  ;;  %v4093_v48 = vrot.slane %v4092_v54, 4 }
 0x191   : > { %v1288_v63 = vpop.f32.mrf.mxu1  ;;  %v4097_v19 = vrot.slane %v4095_v43, 5  ;;  %v6330_v37 = vrot.slane %v6290_v30, 9  ;;  %v4805_v39 = vrot.slane %v4803_v40, 4 }
 0x192   : > { %v2240_v17 = vadd.f32 %v2190_v4, %v1861_v2  ;;  %v1337_v29 = vadd.f32 %v1288_v63, %v7221_v53  ;;  %v4447_v4 = vpack.c.b16 %v4419_v22, %v4418_v34  ;;  %v6292_v53 = vld [vmem:[%s6755_s8 + $0x50] sm:$0x1]  ;;  %v6197_v34 = vld [vmem:[%s6755_s8 + $0x54] sm:$0xf]  ;;  %v6198_v22 = vld [vmem:[%s6755_s8 + $0x58] sm:$0xf]  ;;  %v3160_v46 = vsel %vm6906_vm5, %v3158_v18, %v3159_v55 }
 0x193   : > { %v2938_v35 = vpop.f32.mrf.mxu0  ;;  %v4806_v59 = vrot.slane %v6292_v53, 5  ;;  %v4100_v54 = vshrl.u32 %v6197_v34, 16  ;;  %v4103_v43 = vshll.u32 %v6197_v34, 16  ;;  %v3296_v57 = vunpack.c.l.b16 %v3160_v46  ;;  %v5942_v53 = vld [vmem:[%s6755_s8 + $0x4c] sm:$0xf] }
 0x194   : > { %v7695_v8 = vadd.f32 %v2936_v20, %v2240_v17  ;;  %v5978_v17 = vrot.slane %v5938_v6, 9  ;;  %v4098_v6 = vsel %vm6899_vm4, %v4093_v48, %v4097_v19  ;;  %v6199_v48 = vld [vmem:[%s6755_s8 + $0x5c] sm:$0x1]  ;;  %v5941_v46 = vld [vmem:[%s6755_s8 + $0x48] sm:$0xe] }
 0x195   : > { %v4807_v3 = vsel %vm6906_vm5, %v4805_v39, %v4806_v59 }
 0x196   : > { %v3157_v51 = vsel %vm6906_vm5, %v5978_v17, %v3156_v26  ;;  %v4105_v17 = vrot.slane %v4103_v43, 5  ;;  %v5979_v43 = vrot.slane %v5941_v46, 9 }
 0x197   : > { %v1813_v56 = vpop.f32.mrf.mxu2 }
 0x198   : > { %v1862_v20 = vadd.f32 %v1813_v56, %v1337_v29  ;;  %v2192_v47 = vpop.f32.mrf.mxu3  ;;  %v4088_v29 = vsel %vm6899_vm4, %v4083_v32, %v7692_v5 }
 0x199   : > { %v1291_v2 = vpop.f32.mrf.mxu1 }
 0x19a   : > { %v2241_v63 = vadd.f32 %v2192_v47, %v1862_v20  ;;  %v1338_v31 = vadd.f32 %v1291_v2, %v7236_v41  ;;  %v4804_v41 = vsel %vm6906_vm5, %v6330_v37, %v4803_v40  ;;  %v4109_v20 = vshll.u32 %v6198_v22, 16  ;;  %v6294_v37 = vld [vmem:[%s6755_s8 + $0x58] sm:$0xf] }
 0x19b   : > { %v2941_v1 = vpop.f32.mrf.mxu0  ;;  %v4113_v47 = vshrl.u32 %v6198_v22, 16  ;;  %v4420_v2 = vunpack.c.l.b16 %v4088_v29  ;;  %v4943_v40 = vunpack.c.l.b16 %v4807_v3  ;;  %v3163_v22 = vrot.slane %v5942_v53, 5 }
 0x19c   : > { %3422 = vmatmul.bf16.gmra.mxu1 %v3322_v62  ;;  %3801 = vmatmul.bf16.gmra.mxu2 %v6476_v9  ;;  %v7705_v61 = vadd.f32 %v2938_v35, %v2241_v63  ;;  %v3295_v9 = vunpack.c.l.b16 %v3157_v51  ;;  %v4102_v63 = vrot.slane %v4100_v54, 4  ;;  %v7726_v18 = vrot.slane %v4109_v20, 5  ;;  %v6295_v54 = vld [vmem:[%s6755_s8 + $0x5c] sm:$0x1] }
 0x19d   : > { %4547 = vmatmul.bf16.gmra.mxu3 %v4447_v4  ;;  %v4421_v4 = vunpack.c.l.b16 %v4098_v6  ;;  %v4115_v55 = vrot.slane %v4113_v47, 4  ;;  %v4810_v3 = vrot.slane %v6294_v37, 5  ;;  %v3165_v20 = vrot.slane %v3163_v22, 4  ;;  %v6200_v47 = vld [vmem:[%s6755_s8 + $0x60] sm:$0xf] }
 0x19e   : > { %5069 = vmatmul.bf16.gmra.mxu0 %v4969_v0  ;;  %v4942_v0 = vunpack.c.l.b16 %v4804_v41  ;;  %v4106_v29 = vor.u32 %v4105_v17, %v4102_v63  ;;  %v5943_v41 = vld [vmem:[%s6755_s8 + $0x50] sm:$0x1]  ;;  %v4813_v17 = vrot.slane %v6295_v54, 5  ;;  %v6202_v54 = vld [vmem:[%s6755_s8 + $0x68] sm:$0x1] }
 0x19f   : > { %v1816_v14 = vpop.f32.mrf.mxu2  ;;  %v4448_v34 = vpack.c.b16 %v4421_v4, %v4420_v2  ;;  %v4812_v63 = vrot.slane %v4810_v3, 4 }
 0x1a0   : > { %v1863_v56 = vadd.f32 %v1816_v14, %v1338_v31  ;;  %v2195_v35 = vpop.f32.mrf.mxu3  ;;  %v3323_v31 = vpack.c.b16 %v3296_v57, %v3295_v9  ;;  %v4970_v51 = vpack.c.b16 %v4943_v40, %v4942_v0  ;;  %v3166_v57 = vrot.slane %v5943_v41, 5 }
 0x1a1   : > { %v1293_v26 = vpop.f32.mrf.mxu1  ;;  %v4107_v2 = vrot.slane %v4106_v29, 4  ;;  %v4814_v29 = vsel %vm6906_vm5, %v4812_v63, %v4813_v17  ;;  %v4143_v17 = vshll.u32 %v6202_v54, 16 }
 0x1a2   : > { %v2242_v62 = vadd.f32 %v2195_v35, %v1863_v56  ;;  %v1339_v32 = vadd.f32 %v1293_v26, %v7268_v42  ;;  %v4116_v42 = vor.u32 %v4115_v55, %v7726_v18  ;;  %v4119_v56 = vshll.u32 %v6199_v48, 16  ;;  %v6293_v26 = vld [vmem:[%s6755_s8 + $0x54] sm:$0xe] }
 0x1a3   : > { %v2943_v5 = vpop.f32.mrf.mxu0  ;;  %v6331_v53 = vrot.slane %v6293_v26, 9  ;;  %v4127_v48 = vshll.u32 %v6200_v47, 16 }
 0x1a4   : > { %v7723_v30 = vadd.f32 %v2941_v1, %v2242_v62  ;;  %v6477_v1 = vld [vmem:[%s6755_s8 + $0x48] sm:$0xff]  ;;  %v6201_v62 = vld [vmem:[%s6755_s8 + $0x64] sm:$0xf]  ;;  %v4117_v4 = vrot.slane %v4116_v42, 4  ;;  %v4121_v0 = vrot.slane %v4119_v56, 5 }
 0x1a5   : > { %v4137_v37 = vshrl.u32 %v6201_v62, 16  ;;  %v4811_v46 = vsel %vm6906_vm5, %v6331_v53, %v4810_v3  ;;  %v4129_v56 = vrot.slane %v4127_v48, 5  ;;  %v6478_v48 = vld [vmem:[%s6755_s8 + $0x54] sm:$0xff] }
 0x1a6   : > { %v4944_v3 = vunpack.c.l.b16 %v4811_v46 }
 0x1a7   : > { %v1818_v19 = vpop.f32.mrf.mxu2  ;;  %v4139_v41 = vrot.slane %v4137_v37, 4 }
 0x1a8   : > { %v1864_v39 = vadd.f32 %v1818_v19, %v1339_v32  ;;  %v2197_v59 = vpop.f32.mrf.mxu3  ;;  %v4124_v32 = vshrl.u32 %v6200_v47, 16  ;;  %v4133_v19 = vshll.u32 %v6201_v62, 16  ;;  %v4945_v62 = vunpack.c.l.b16 %v4814_v29 }
 0x1a9   : > { %v1296_v14 = vpop.f32.mrf.mxu1 }
 0x1aa   : > { %v2243_v35 = vadd.f32 %v2197_v59, %v1864_v39  ;;  %v1340_v40 = vadd.f32 %v1296_v14, %v7093_v36  ;;  %v4112_v36 = vsel %vm6899_vm4, %v4107_v2, %v7726_v18  ;;  %v4126_v42 = vrot.slane %v4124_v32, 4 }
 0x1ab   : > { %v2946_v6 = vpop.f32.mrf.mxu0 }
 0x1ac   : > { %3427 = vmatmul.bf16.gmra.mxu1 %v3323_v31  ;;  %3806 = vmatmul.bf16.gmra.mxu2 %v6477_v1  ;;  %v7739_v9 = vadd.f32 %v2943_v5, %v2243_v35  ;;  %v3164_v31 = vsel %vm6906_vm5, %v5979_v43, %v3163_v22  ;;  %v3167_v1 = vsel %vm6906_vm5, %v3165_v20, %v3166_v57  ;;  %v5945_v22 = vld [vmem:[%s6755_s8 + $0x58] sm:$0xf]  ;;  %v7756_v35 = vrot.slane %v4133_v19, 5  ;;  %v6297_v57 = vld [vmem:[%s6755_s8 + $0x64] sm:$0xf] }
 0x1ad   : > { %4552 = vmatmul.bf16.gmra.mxu3 %v4448_v34  ;;  %v3297_v18 = vunpack.c.l.b16 %v3164_v31  ;;  %v3298_v26 = vunpack.c.l.b16 %v3167_v1  ;;  %v4422_v20 = vunpack.c.l.b16 %v4112_v36  ;;  %v4130_v53 = vor.u32 %v4129_v56, %v4126_v42  ;;  %v5946_v19 = vld [vmem:[%s6755_s8 + $0x5c] sm:$0x1]  ;;  %v6296_v1 = vld [vmem:[%s6755_s8 + $0x60] sm:$0xe] }
 0x1ae   : > { %5074 = vmatmul.bf16.gmra.mxu0 %v4970_v51  ;;  %v4122_v51 = vsel %vm6899_vm4, %v4117_v4, %v4121_v0  ;;  %v3170_v4 = vrot.slane %v5945_v22, 5  ;;  %v4140_v63 = vor.u32 %v4139_v41, %v7756_v35  ;;  %v4817_v37 = vrot.slane %v6297_v57, 5 }
 0x1af   : > { %v1821_v55 = vpop.f32.mrf.mxu2  ;;  %v4423_v47 = vunpack.c.l.b16 %v4122_v51  ;;  %v3324_v32 = vpack.c.b16 %v3298_v26, %v3297_v18  ;;  %v4971_v31 = vpack.c.b16 %v4945_v62, %v4944_v3  ;;  %v3173_v46 = vrot.slane %v5946_v19, 5 }
 0x1b0   : > { %v1865_v39 = vadd.f32 %v1821_v55, %v1340_v40  ;;  %v2200_v5 = vpop.f32.mrf.mxu3  ;;  %v5944_v40 = vld [vmem:[%s6755_s8 + $0x54] sm:$0xe]  ;;  %v3172_v51 = vrot.slane %v3170_v4, 4  ;;  %v4131_v29 = vrot.slane %v4130_v53, 4  ;;  %v4141_v22 = vrot.slane %v4140_v63, 4 }
 0x1b1   : > { %v1298_v59 = vpop.f32.mrf.mxu1  ;;  %v4145_v42 = vrot.slane %v4143_v17, 5  ;;  %v6332_v56 = vrot.slane %v6296_v1, 9  ;;  %v4819_v41 = vrot.slane %v4817_v37, 4 }
 0x1b2   : > { %v2244_v34 = vadd.f32 %v2200_v5, %v1865_v39  ;;  %v1341_v2 = vadd.f32 %v1298_v59, %v7119_v7  ;;  %v4449_v5 = vpack.c.b16 %v4423_v47, %v4422_v20  ;;  %v6298_v7 = vld [vmem:[%s6755_s8 + $0x68] sm:$0x1]  ;;  %v6203_v20 = vld [vmem:[%s6755_s8 + $0x6c] sm:$0xf]  ;;  %v6204_v47 = vld [vmem:[%s6755_s8 + $0x70] sm:$0xf]  ;;  %v3174_v57 = vsel %vm6906_vm5, %v3172_v51, %v3173_v46 }
 0x1b3   : > { %v2948_v14 = vpop.f32.mrf.mxu0  ;;  %v4820_v18 = vrot.slane %v6298_v7, 5  ;;  %v4148_v63 = vshrl.u32 %v6203_v20, 16  ;;  %v4151_v17 = vshll.u32 %v6203_v20, 16  ;;  %v3300_v19 = vunpack.c.l.b16 %v3174_v57  ;;  %v5948_v7 = vld [vmem:[%s6755_s8 + $0x64] sm:$0xf] }
 0x1b4   : > { %v7759_v43 = vadd.f32 %v2946_v6, %v2244_v34  ;;  %v5980_v34 = vrot.slane %v5944_v40, 9  ;;  %v4146_v40 = vsel %vm6899_vm4, %v4141_v22, %v4145_v42  ;;  %v6205_v42 = vld [vmem:[%s6755_s8 + $0x74] sm:$0x1] }
 0x1b5   : > { %v4821_v53 = vsel %vm6906_vm5, %v4819_v41, %v4820_v18  ;;  %v6300_v41 = vld [vmem:[%s6755_s8 + $0x70] sm:$0xf] }
 0x1b6   : > { %v3171_v62 = vsel %vm6906_vm5, %v5980_v34, %v3170_v4  ;;  %v4153_v34 = vrot.slane %v4151_v17, 5  ;;  %v6299_v17 = vld [vmem:[%s6755_s8 + $0x6c] sm:$0xe] }
 0x1b7   : > { %v1823_v0 = vpop.f32.mrf.mxu2 }
 0x1b8   : > { %v1866_v6 = vadd.f32 %v1823_v0, %v1341_v2  ;;  %v2202_v55 = vpop.f32.mrf.mxu3  ;;  %v4136_v2 = vsel %vm6899_vm4, %v4131_v29, %v7756_v35  ;;  %v8159_v29 = vld [vmem:[#allocation3_spill] sm:$0xff] }
 0x1b9   : > { %v1301_v39 = vpop.f32.mrf.mxu1 }
 0x1ba   : > { %v2245_v59 = vadd.f32 %v2202_v55, %v1866_v6  ;;  %v1342_v54 = vadd.f32 %v1301_v39, %v7136_v45  ;;  %v4818_v45 = vsel %vm6906_vm5, %v6332_v56, %v4817_v37  ;;  %v4157_v6 = vshll.u32 %v6204_v47, 16 }
 0x1bb   : > { %v2951_v36 = vpop.f32.mrf.mxu0  ;;  %v4161_v55 = vshrl.u32 %v6204_v47, 16  ;;  %v4424_v39 = vunpack.c.l.b16 %v4136_v2  ;;  %v4947_v37 = vunpack.c.l.b16 %v4821_v53  ;;  %v5947_v2 = vld [vmem:[%s6755_s8 + $0x60] sm:$0xe] }
 0x1bc   : > { %3432 = vmatmul.bf16.gmra.mxu1 %v3324_v32  ;;  %3811 = vmatmul.bf16.gmra.mxu2 %v6478_v48  ;;  %v7769_v26 = vadd.f32 %v2948_v14, %v2245_v59  ;;  %v3299_v48 = vunpack.c.l.b16 %v3171_v62  ;;  %v4150_v59 = vrot.slane %v4148_v63, 4  ;;  %v7790_v51 = vrot.slane %v4157_v6, 5  ;;  %v6301_v6 = vld [vmem:[%s6755_s8 + $0x74] sm:$0x1] }
 0x1bd   : > { %4557 = vmatmul.bf16.gmra.mxu3 %v4449_v5  ;;  %v4425_v5 = vunpack.c.l.b16 %v4146_v40  ;;  %v4163_v46 = vrot.slane %v4161_v55, 4  ;;  %v4167_v40 = vshll.u32 %v6205_v42, 16  ;;  %v4824_v63 = vrot.slane %v6300_v41, 5 }
 0x1be   : > { %5079 = vmatmul.bf16.gmra.mxu0 %v4971_v31  ;;  %v4946_v31 = vunpack.c.l.b16 %v4818_v45  ;;  %v3325_v20 = vpack.c.b16 %v3300_v19, %v3299_v48  ;;  %v5981_v55 = vrot.slane %v5947_v2, 9  ;;  %v6206_v48 = vld [vmem:[%s6755_s8 + $0x78] sm:$0xf]  ;;  %v6207_v19 = vld [vmem:[%s6755_s8 + $0x7c] sm:$0xf] }
 0x1bf   : > { %v1826_v3 = vpop.f32.mrf.mxu2  ;;  %v4450_v47 = vpack.c.b16 %v4425_v5, %v4424_v39  ;;  %v4175_v41 = vshll.u32 %v6206_v48, 16 }
 0x1c0   : > { %v1867_v0 = vadd.f32 %v1826_v3, %v1342_v54  ;;  %v2205_v14 = vpop.f32.mrf.mxu3  ;;  %v3177_v3 = vrot.slane %v5948_v7, 5  ;;  %v4972_v57 = vpack.c.b16 %v4947_v37, %v4946_v31  ;;  %v4169_v7 = vrot.slane %v4167_v40, 5 }
 0x1c1   : > { %v1303_v4 = vpop.f32.mrf.mxu1 }
 0x1c2   : > { %v2246_v32 = vadd.f32 %v2205_v14, %v1867_v0  ;;  %v1343_v22 = vadd.f32 %v1303_v4, %v8159_v29  ;;  %v4154_v0 = vor.u32 %v4153_v34, %v4150_v59  ;;  %v4164_v14 = vor.u32 %v4163_v46, %v7790_v51  ;;  %v5949_v4 = vld [vmem:[%s6755_s8 + $0x68] sm:$0x1] }
 0x1c3   : > { %v2953_v35 = vpop.f32.mrf.mxu0  ;;  %v3180_v5 = vrot.slane %v5949_v4, 5  ;;  %v8160_v59 = vld [vmem:[#allocation4_spill] sm:$0xff]  ;;  %v6333_v46 = vrot.slane %v6299_v17, 9  ;;  %v4826_v29 = vrot.slane %v4824_v63, 4  ;;  %v4177_v4 = vrot.slane %v4175_v41, 5 }
 0x1c4   : > { %v7787_v1 = vadd.f32 %v2951_v36, %v2246_v32  ;;  %v6479_v36 = vld [vmem:[%s6755_s8 + $0x60] sm:$0xff]  ;;  %v3179_v32 = vrot.slane %v3177_v3, 4  ;;  %v4155_v31 = vrot.slane %v4154_v0, 4  ;;  %v4165_v37 = vrot.slane %v4164_v14, 4 }
 0x1c5   : > { %v4825_v40 = vsel %vm6906_vm5, %v6333_v46, %v4824_v63 }
 0x1c6   : > { %v4170_v14 = vsel %vm6899_vm4, %v4165_v37, %v4169_v7  ;;  %v4948_v63 = vunpack.c.l.b16 %v4825_v40  ;;  %v6303_v7 = vld [vmem:[%s6755_s8 + $0x7c] sm:$0xf] }
 0x1c7   : > { %v1828_v56 = vpop.f32.mrf.mxu2 }
 0x1c8   : > { %v1868_v18 = vadd.f32 %v1828_v56, %v1343_v22  ;;  %v2207_v54 = vpop.f32.mrf.mxu3  ;;  %v4827_v22 = vrot.slane %v6301_v6, 5  ;;  %v4172_v56 = vshrl.u32 %v6206_v48, 16  ;;  %v6208_v48 = vld [vmem:[%s6755_s8 + $0x80] sm:$0x1] }
 0x1c9   : > { %v1306_v62 = vpop.f32.mrf.mxu1 }
 0x1ca   : > { %v2247_v45 = vadd.f32 %v2207_v54, %v1868_v18  ;;  %v1344_v34 = vadd.f32 %v1306_v62, %v8160_v59  ;;  %v4181_v18 = vshll.u32 %v6207_v19, 16  ;;  %v4185_v54 = vshrl.u32 %v6207_v19, 16  ;;  %v8161_v59 = vld [vmem:[#allocation5_spill] sm:$0xff] }
 0x1cb   : > { %v2956_v53 = vpop.f32.mrf.mxu0  ;;  %v4160_v62 = vsel %vm6899_vm4, %v4155_v31, %v7790_v51  ;;  %v4427_v31 = vunpack.c.l.b16 %v4170_v14  ;;  %v6302_v14 = vld [vmem:[%s6755_s8 + $0x78] sm:$0xe] }
 0x1cc   : > { %3437 = vmatmul.bf16.gmra.mxu1 %v3325_v20  ;;  %3816 = vmatmul.bf16.gmra.mxu2 %v6479_v36  ;;  %v7803_v39 = vadd.f32 %v2953_v35, %v2247_v45  ;;  %v4828_v45 = vsel %vm6906_vm5, %v4826_v29, %v4827_v22  ;;  %v7819_v17 = vrot.slane %v4181_v18, 5  ;;  %v4187_v6 = vrot.slane %v4185_v54, 4  ;;  %v5950_v29 = vld [vmem:[%s6755_s8 + $0x6c] sm:$0xe]  ;;  %v5952_v22 = vld [vmem:[%s6755_s8 + $0x74] sm:$0x1] }
 0x1cd   : > { %4562 = vmatmul.bf16.gmra.mxu3 %v4450_v47  ;;  %v3178_v47 = vsel %vm6906_vm5, %v5981_v55, %v3177_v3  ;;  %v4174_v3 = vrot.slane %v4172_v56, 4  ;;  %v4949_v37 = vunpack.c.l.b16 %v4828_v45  ;;  %v4191_v18 = vshll.u32 %v6208_v48, 16 }
 0x1ce   : > { %5084 = vmatmul.bf16.gmra.mxu0 %v4972_v57  ;;  %v3181_v57 = vsel %vm6906_vm5, %v3179_v32, %v3180_v5  ;;  %v3301_v51 = vunpack.c.l.b16 %v3178_v47  ;;  %v5951_v32 = vld [vmem:[%s6755_s8 + $0x70] sm:$0xf]  ;;  %v4426_v5 = vunpack.c.l.b16 %v4160_v62  ;;  %v4188_v41 = vor.u32 %v4187_v6, %v7819_v17 }
 0x1cf   : > { %v1831_v42 = vpop.f32.mrf.mxu2  ;;  %v3302_v55 = vunpack.c.l.b16 %v3181_v57  ;;  %v4178_v56 = vor.u32 %v4177_v4, %v4174_v3  ;;  %v4831_v47 = vrot.slane %v6303_v7, 5  ;;  %v4193_v48 = vrot.slane %v4191_v18, 5 }
 0x1d0   : > { %v1869_v20 = vadd.f32 %v1831_v42, %v1344_v34  ;;  %v2210_v36 = vpop.f32.mrf.mxu3  ;;  %v3184_v42 = vrot.slane %v5951_v32, 5  ;;  %v4451_v62 = vpack.c.b16 %v4427_v31, %v4426_v5  ;;  %v3187_v32 = vrot.slane %v5952_v22, 5  ;;  %v8162_v5 = vld [vmem:[#allocation6_spill] sm:$0xff] }
 0x1d1   : > { %v1308_v35 = vpop.f32.mrf.mxu1  ;;  %v4179_v4 = vrot.slane %v4178_v56, 4  ;;  %v4189_v6 = vrot.slane %v4188_v41, 4 }
 0x1d2   : > { %v2248_v2 = vadd.f32 %v2210_v36, %v1869_v20  ;;  %v1345_v34 = vadd.f32 %v1308_v35, %v8161_v59  ;;  %v3326_v20 = vpack.c.b16 %v3302_v55, %v3301_v51  ;;  %v6480_v36 = vld [vmem:[%s6755_s8 + $0x6c] sm:$0xff]  ;;  %v6304_v35 = vld [vmem:[%s6755_s8 + $0x80] sm:$0x1]  ;;  %v5982_v59 = vrot.slane %v5950_v29, 9 }
 0x1d3   : > { %v2958_v0 = vpop.f32.mrf.mxu0  ;;  %v3186_v3 = vrot.slane %v3184_v42, 4  ;;  %v6334_v51 = vrot.slane %v6302_v14, 9  ;;  %v4833_v55 = vrot.slane %v4831_v47, 4  ;;  %v4834_v7 = vrot.slane %v6304_v35, 5 }
 0x1d4   : > { %v7823_v19 = vadd.f32 %v2956_v53, %v2248_v2  ;;  %v4973_v2 = vpack.c.b16 %v4949_v37, %v4948_v63  ;;  %v6209_v63 = vld [vmem:[%s6755_s8 + $0x84] sm:$0xf]  ;;  %v6210_v37 = vld [vmem:[%s6755_s8 + $0x88] sm:$0xf]  ;;  %v3185_v29 = vsel %vm6906_vm5, %v5982_v59, %v3184_v42  ;;  %v4184_v56 = vsel %vm6899_vm4, %v4179_v4, %v7819_v17  ;;  %v5954_v4 = vld [vmem:[%s6755_s8 + $0x7c] sm:$0xf] }
 0x1d5   : > { %v3188_v22 = vsel %vm6906_vm5, %v3186_v3, %v3187_v32  ;;  %v4194_v18 = vsel %vm6899_vm4, %v4189_v6, %v4193_v48  ;;  %v3303_v14 = vunpack.c.l.b16 %v3185_v29 }
 0x1d6   : > { %v3304_v35 = vunpack.c.l.b16 %v3188_v22  ;;  %v4429_v59 = vunpack.c.l.b16 %v4194_v18 }
 0x1d7   : > { %v1833_v46 = vpop.f32.mrf.mxu2 }
 0x1d8   : > { %v1870_v53 = vadd.f32 %v1833_v46, %v1345_v34  ;;  %v2212_v54 = vpop.f32.mrf.mxu3  ;;  %v3327_v22 = vpack.c.b16 %v3304_v35, %v3303_v14 }
 0x1d9   : > { %v1311_v57 = vpop.f32.mrf.mxu1 }
 0x1da   : > { %v2249_v40 = vadd.f32 %v2212_v54, %v1870_v53  ;;  %v1346_v31 = vadd.f32 %v1311_v57, %v8162_v5  ;;  %v4832_v53 = vsel %vm6906_vm5, %v6334_v51, %v4831_v47  ;;  %v4835_v54 = vsel %vm6906_vm5, %v4833_v55, %v4834_v7  ;;  %v8164_v7 = vld [vmem:[#allocation7_spill] sm:$0xff] }
 0x1db   : > { %v2961_v45 = vpop.f32.mrf.mxu0  ;;  %v4205_v57 = vshll.u32 %v6210_v37, 16  ;;  %v4950_v32 = vunpack.c.l.b16 %v4832_v53  ;;  %v4951_v47 = vunpack.c.l.b16 %v4835_v54  ;;  %v5953_v53 = vld [vmem:[%s6755_s8 + $0x78] sm:$0xe] }
 0x1dc   : > { %3442 = vmatmul.bf16.gmra.mxu1 %v3326_v20  ;;  %3821 = vmatmul.bf16.gmra.mxu2 %v6480_v36  ;;  %v7833_v34 = vadd.f32 %v2958_v0, %v2249_v40  ;;  %v4196_v20 = vshrl.u32 %v6209_v63, 16  ;;  %v4199_v36 = vshll.u32 %v6209_v63, 16  ;;  %v4428_v40 = vunpack.c.l.b16 %v4184_v56 }
 0x1dd   : > { %4567 = vmatmul.bf16.gmra.mxu3 %v4451_v62  ;;  %v4209_v62 = vshrl.u32 %v6210_v37, 16  ;;  %v7854_v51 = vrot.slane %v4205_v57, 5  ;;  %v6306_v37 = vld [vmem:[%s6755_s8 + $0x88] sm:$0xf]  ;;  %v4974_v18 = vpack.c.b16 %v4951_v47, %v4950_v32  ;;  %v5983_v14 = vrot.slane %v5953_v53, 9 }
 0x1de   : > { %5089 = vmatmul.bf16.gmra.mxu0 %v4973_v2  ;;  %v4198_v6 = vrot.slane %v4196_v20, 4  ;;  %v4201_v48 = vrot.slane %v4199_v36, 5  ;;  %v4452_v56 = vpack.c.b16 %v4429_v59, %v4428_v40  ;;  %v6212_v40 = vld [vmem:[%s6755_s8 + $0x90] sm:$0xf]  ;;  %v6213_v59 = vld [vmem:[%s6755_s8 + $0x94] sm:$0xf] }
 0x1df   : > { %v1836_v46 = vpop.f32.mrf.mxu2  ;;  %v4211_v55 = vrot.slane %v4209_v62, 4  ;;  %v5955_v62 = vld [vmem:[%s6755_s8 + $0x80] sm:$0x1]  ;;  %v4233_v53 = vshrl.u32 %v6213_v59, 16 }
 0x1e0   : > { %v1871_v41 = vadd.f32 %v1836_v46, %v1346_v31  ;;  %v2215_v0 = vpop.f32.mrf.mxu3  ;;  %v6211_v31 = vld [vmem:[%s6755_s8 + $0x8c] sm:$0x1]  ;;  %v4202_v54 = vor.u32 %v4201_v48, %v4198_v6  ;;  %v3194_v32 = vrot.slane %v5955_v62, 5  ;;  %v5957_v62 = vld [vmem:[%s6755_s8 + $0x88] sm:$0xf] }
 0x1e1   : > { %v1313_v42 = vpop.f32.mrf.mxu1  ;;  %v4215_v20 = vshll.u32 %v6211_v31, 16 }
 0x1e2   : > { %v2250_v2 = vadd.f32 %v2215_v0, %v1871_v41  ;;  %v1347_v5 = vadd.f32 %v1313_v42, %v8164_v7  ;;  %v3191_v41 = vrot.slane %v5954_v4, 5  ;;  %v4212_v42 = vor.u32 %v4211_v55, %v7854_v51  ;;  %v6305_v7 = vld [vmem:[%s6755_s8 + $0x84] sm:$0xe] }
 0x1e3   : > { %v2963_v17 = vpop.f32.mrf.mxu0  ;;  %v4203_v47 = vrot.slane %v4202_v54, 4  ;;  %v4217_v48 = vrot.slane %v4215_v20, 5  ;;  %v6335_v31 = vrot.slane %v6305_v7, 9 }
 0x1e4   : > { %v7851_v3 = vadd.f32 %v2961_v45, %v2250_v2  ;;  %v6481_v45 = vld [vmem:[%s6755_s8 + $0x78] sm:$0xff]  ;;  %v4838_v2 = vrot.slane %v6306_v37, 5  ;;  %v3193_v35 = vrot.slane %v3191_v41, 4  ;;  %v4213_v6 = vrot.slane %v4212_v42, 4 }
 0x1e6   : > { %8163 = vst [vmem:[#allocation3_spill] sm:$0xff] %v7851_v3  ;;  %v4218_v54 = vsel %vm6899_vm4, %v4213_v6, %v4217_v48  ;;  %v4839_v42 = vsel %vm6906_vm5, %v6335_v31, %v4838_v2  ;;  %v6309_v48 = vld [vmem:[%s6755_s8 + $0x94] sm:$0xf]  ;;  %v3198_v31 = vrot.slane %v5957_v62, 5  ;;  %v6310_v62 = vld [vmem:[%s6755_s8 + $0x98] sm:$0x1] }
 0x1e7   : > { %v1838_v63 = vpop.f32.mrf.mxu2  ;;  %v4952_v6 = vunpack.c.l.b16 %v4839_v42 }
 0x1e8   : > { %v1872_v46 = vadd.f32 %v1838_v63, %v1347_v5  ;;  %v2217_v29 = vpop.f32.mrf.mxu3  ;;  %v6307_v5 = vld [vmem:[%s6755_s8 + $0x8c] sm:$0x1]  ;;  %v4840_v63 = vrot.slane %v4838_v2, 4 }
 0x1e9   : > { %v3408_v0 = vpop.f32.mrf.mxu1  ;;  %v4841_v37 = vrot.slane %v6307_v5, 5 }
 0x1ea   : > { %v2251_v36 = vadd.f32 %v2217_v29, %v1872_v46  ;;  %v3488_v55 = vadd.f32 %v3408_v0, %v7328_v49  ;;  %v4220_v29 = vshrl.u32 %v6212_v40, 16  ;;  %v4208_v0 = vsel %vm6899_vm4, %v4203_v47, %v7854_v51 }
 0x1eb   : > { %v5055_v57 = vpop.f32.mrf.mxu0  ;;  %v4842_v20 = vsel %vm6906_vm5, %v4840_v63, %v4841_v37  ;;  %v4431_v47 = vunpack.c.l.b16 %v4218_v54  ;;  %v5956_v37 = vld [vmem:[%s6755_s8 + $0x84] sm:$0xe] }
 0x1ec   : > { %3447 = vmatmul.bf16.gmra.mxu1 %v3327_v22  ;;  %3826 = vmatmul.bf16.gmra.mxu2 %v6481_v45  ;;  %v7867_v4 = vadd.f32 %v2963_v17, %v2251_v36  ;;  %v4223_v22 = vshll.u32 %v6212_v40, 16  ;;  %v4229_v45 = vshll.u32 %v6213_v59, 16  ;;  %v6214_v59 = vld [vmem:[%s6755_s8 + $0x98] sm:$0x1]  ;;  %v4953_v2 = vunpack.c.l.b16 %v4842_v20 }
 0x1ed   : > { %4572 = vmatmul.bf16.gmra.mxu3 %v4452_v56  ;;  %v3192_v56 = vsel %vm6906_vm5, %v5983_v14, %v3191_v41  ;;  %v4222_v41 = vrot.slane %v4220_v29, 4  ;;  %v4235_v14 = vrot.slane %v4233_v53, 4  ;;  %v7895_v53 = vld [vmem:[%s8146_s2] ss:$0 sm:$0xff] }
 0x1ee   : > { %8165 = vst [vmem:[#allocation4_spill] sm:$0xff] %v7867_v4  ;;  %5094 = vmatmul.bf16.gmra.mxu0 %v4974_v18  ;;  %v3195_v18 = vsel %vm6906_vm5, %v3193_v35, %v3194_v32  ;;  %v4225_v7 = vrot.slane %v4223_v22, 5  ;;  %v7884_v5 = vrot.slane %v4229_v45, 5  ;;  %v3305_v51 = vunpack.c.l.b16 %v3192_v56 }
 0x1ef   : > { %v3787_v46 = vpop.f32.mrf.mxu2  ;;  %v3306_v40 = vunpack.c.l.b16 %v3195_v18  ;;  %v4430_v32 = vunpack.c.l.b16 %v4208_v0  ;;  %v4239_v22 = vshll.u32 %v6214_v59, 16  ;;  %v6482_v0 = vld [vmem:[%s6755_s8 + $0x84] sm:$0xff]  ;;  %v4975_v20 = vpack.c.b16 %v4953_v2, %v4952_v6 }
 0x1f0   : > { %v3867_v3 = vadd.f32 %v3787_v46, %v3488_v55  ;;  %v4533_v17 = vpop.f32.mrf.mxu3  ;;  %v5958_v46 = vld [vmem:[%s6755_s8 + $0x8c] sm:$0x1]  ;;  %v4226_v29 = vor.u32 %v4225_v7, %v4222_v41 }
 0x1f1   : > { %v3410_v36 = vpop.f32.mrf.mxu1  ;;  %v3328_v18 = vpack.c.b16 %v3306_v40, %v3305_v51  ;;  %v4453_v42 = vpack.c.b16 %v4431_v47, %v4430_v32  ;;  %v4848_v47 = vrot.slane %v6310_v62, 5 }
 0x1f2   : > { %v4613_v35 = vadd.f32 %v4533_v17, %v3867_v3  ;;  %v3489_v55 = vadd.f32 %v3410_v36, %v7330_v21  ;;  %v4236_v3 = vor.u32 %v4235_v14, %v7884_v5  ;;  %v6308_v21 = vld [vmem:[%s6755_s8 + $0x90] sm:$0xe]  ;;  %v4845_v36 = vrot.slane %v6309_v48, 5 }
 0x1f3   : > { %v5057_v49 = vpop.f32.mrf.mxu0  ;;  %v5984_v14 = vrot.slane %v5956_v37, 9  ;;  %v4227_v59 = vrot.slane %v4226_v29, 4  ;;  %v6215_v37 = vld [vmem:[%s6755_s8 + $0x9c] sm:$0xf] }
 0x1f4   : > { %v5135_v45 = vadd.f32 %v5055_v57, %v4613_v35  ;;  %v3200_v57 = vrot.slane %v3198_v31, 4  ;;  %v3201_v35 = vrot.slane %v5958_v46, 5  ;;  %v4237_v4 = vrot.slane %v4236_v3, 4  ;;  %v6216_v46 = vld [vmem:[%s6755_s8 + $0xa0] sm:$0xf] }
 0x1f5   : > { %v4847_v32 = vrot.slane %v4845_v36, 4  ;;  %v3199_v48 = vsel %vm6906_vm5, %v5984_v14, %v3198_v31  ;;  %v4232_v3 = vsel %vm6899_vm4, %v4227_v59, %v7884_v5 }
 0x1f6   : > { %v5235_v51 = vadd.f32 %v7895_v53, %v5135_v45 }
 0x1f7   : > { %v3789_v63 = vpop.f32.mrf.mxu2 }
 0x1f8   : > { %v3868_v17 = vadd.f32 %v3789_v63, %v3489_v55  ;;  %v4535_v56 = vpop.f32.mrf.mxu3  ;;  %v4241_v55 = vrot.slane %v4239_v22, 5  ;;  %v6336_v63 = vrot.slane %v6308_v21, 9  ;;  %v4253_v21 = vshll.u32 %v6216_v46, 16 }
 0x1f9   : > { %v3413_v54 = vpop.f32.mrf.mxu1 }
 0x1fa   : > { %v4614_v41 = vadd.f32 %v4535_v56, %v3868_v17  ;;  %v3490_v2 = vadd.f32 %v3413_v54, %v7368_v60  ;;  %v4242_v22 = vsel %vm6899_vm4, %v4237_v4, %v4241_v55  ;;  %v4846_v45 = vsel %vm6906_vm5, %v6336_v63, %v4845_v36  ;;  %v5960_v55 = vld [vmem:[%s6755_s8 + $0x94] sm:$0xf] }
 0x1fb   : > { %v5060_v7 = vpop.f32.mrf.mxu0  ;;  %v5267_v60 = vmax.f32 %v5235_v51, 0.0  ;;  %v4247_v4 = vshll.u32 %v6215_v37, 16  ;;  %v4257_v54 = vshrl.u32 %v6216_v46, 16  ;;  %v6312_v46 = vld [vmem:[%s6755_s8 + $0xa0] sm:$0xf] }
 0x1fc   : > { %v5136_v40 = vadd.f32 %v5057_v49, %v4614_v41  ;;  %3452 = vmatmul.bf16.gmra.mxu1 %v3328_v18  ;;  %3831 = vmatmul.bf16.gmra.mxu2 %v6482_v0  ;;  %v3202_v49 = vsel %vm6906_vm5, %v3200_v57, %v3201_v35  ;;  %v4849_v18 = vsel %vm6906_vm5, %v4847_v32, %v4848_v47  ;;  %v4244_v0 = vshrl.u32 %v6215_v37, 16  ;;  %v8166_v47 = vld [vmem:[#allocation8_spill] sm:$0xff] }
 0x1fd   : > { %4577 = vmatmul.bf16.gmra.mxu3 %v4453_v42  ;;  %v3308_v62 = vunpack.c.l.b16 %v3202_v49  ;;  %v4432_v41 = vunpack.c.l.b16 %v4232_v3  ;;  %v4433_v57 = vunpack.c.l.b16 %v4242_v22  ;;  %v4954_v35 = vunpack.c.l.b16 %v4846_v45  ;;  %v6483_v22 = vld [vmem:[%s6755_s8 + $0x90] sm:$0xff] }
 0x1fe   : > { %5099 = vmatmul.bf16.gmra.mxu0 %v4975_v20  ;;  %v5236_v6 = vadd.f32 %v7895_v53, %v5136_v40  ;;  %v3307_v20 = vunpack.c.l.b16 %v3199_v48  ;;  %v4955_v59 = vunpack.c.l.b16 %v4849_v18  ;;  %v4246_v63 = vrot.slane %v4244_v0, 4  ;;  %v5961_v18 = vld [vmem:[%s6755_s8 + $0x98] sm:$0x1] }
 0x1ff   : > { %v3792_v29 = vpop.f32.mrf.mxu2  ;;  %v4249_v51 = vrot.slane %v4247_v4, 5  ;;  %v7926_v40 = vrot.slane %v4253_v21, 5  ;;  %v4259_v32 = vrot.slane %v4257_v54, 4  ;;  %v4454_v45 = vpack.c.b16 %v4433_v57, %v4432_v41 }
 0x200   : > { %v5268_v17 = vmax.f32 %v5236_v6, 0.0  ;;  %v3869_v56 = vadd.f32 %v3792_v29, %v3490_v2  ;;  %v4538_v31 = vpop.f32.mrf.mxu3  ;;  %v6217_v2 = vld [vmem:[%s6755_s8 + $0xa4] sm:$0x1]  ;;  %v3329_v37 = vpack.c.b16 %v3308_v62, %v3307_v20 }
 0x201   : > { %v3415_v5 = vpop.f32.mrf.mxu1  ;;  %v4250_v0 = vor.u32 %v4249_v51, %v4246_v63  ;;  %v4263_v4 = vshll.u32 %v6217_v2, 16  ;;  %v6313_v62 = vld [vmem:[%s6755_s8 + $0xa4] sm:$0x1] }
 0x202   : > { %v6516_v36 = vpack.c.bf16 %v5268_v17, %v5267_v60  ;;  %v4615_v14 = vadd.f32 %v4538_v31, %v3869_v56  ;;  %v3491_v6 = vadd.f32 %v3415_v5, %v8166_v47  ;;  %v5959_v60 = vld [vmem:[%s6755_s8 + $0x90] sm:$0xe]  ;;  %v3205_v17 = vrot.slane %v5960_v55, 5  ;;  %v6219_v55 = vld [vmem:[%s6755_s8 + $0xac] sm:$0xf] }
 0x203   : > { %v5062_v42 = vpop.f32.mrf.mxu0  ;;  %v4976_v31 = vpack.c.b16 %v4955_v59, %v4954_v35  ;;  %v4260_v5 = vor.u32 %v4259_v32, %v7926_v40  ;;  %v5985_v20 = vrot.slane %v5959_v60, 9  ;;  %v3208_v35 = vrot.slane %v5961_v18, 5  ;;  %v6218_v59 = vld [vmem:[%s6755_s8 + $0xa8] sm:$0xf] }
 0x204   : > { %6517 = vst [vmem:[%s7922_s9] sm:$0xff] %v6516_v36   ;;  %v5137_v29 = vadd.f32 %v5060_v7, %v4615_v14  ;;  %v6311_v7 = vld [vmem:[%s6755_s8 + $0x9c] sm:$0xe]  ;;  %v4852_v36 = vrot.slane %v6312_v46, 5  ;;  %v3207_v57 = vrot.slane %v3205_v17, 4  ;;  %v4251_v63 = vrot.slane %v4250_v0, 4 }
 0x205   : > { %v4261_v51 = vrot.slane %v4260_v5, 4  ;;  %v4265_v32 = vrot.slane %v4263_v4, 5  ;;  %v6337_v47 = vrot.slane %v6311_v7, 9  ;;  %v4855_v46 = vrot.slane %v6313_v62, 5 }
 0x206   : > { %v5237_v41 = vadd.f32 %v7895_v53, %v5137_v29  ;;  %v3206_v0 = vsel %vm6906_vm5, %v5985_v20, %v3205_v17  ;;  %v5963_v20 = vld [vmem:[%s6755_s8 + $0xa0] sm:$0xf] }
 0x207   : > { %v3794_v48 = vpop.f32.mrf.mxu2  ;;  %v4853_v7 = vsel %vm6906_vm5, %v6337_v47, %v4852_v36  ;;  %v6315_v47 = vld [vmem:[%s6755_s8 + $0xac] sm:$0xf] }
 0x208   : > { %v3870_v49 = vadd.f32 %v3794_v48, %v3491_v6  ;;  %v4540_v3 = vpop.f32.mrf.mxu3  ;;  %v4854_v48 = vrot.slane %v4852_v36, 4  ;;  %v4956_v36 = vunpack.c.l.b16 %v4853_v7 }
 0x209   : > { %v3418_v56 = vpop.f32.mrf.mxu1 }
 0x20a   : > { %v4616_v21 = vadd.f32 %v4540_v3, %v3870_v49  ;;  %v3492_v2 = vadd.f32 %v3418_v56, %v7417_v23  ;;  %v4277_v49 = vshll.u32 %v6219_v55, 16  ;;  %v4281_v3 = vshrl.u32 %v6219_v55, 16  ;;  %v6220_v55 = vld [vmem:[%s6755_s8 + $0xb0] sm:$0x1] }
 0x20b   : > { %v7935_v54 = vpop.f32.mrf.mxu0  ;;  %v3209_v23 = vsel %vm6906_vm5, %v3207_v57, %v3208_v35  ;;  %v4256_v56 = vsel %vm6899_vm4, %v4251_v63, %v7926_v40  ;;  %v4856_v17 = vsel %vm6906_vm5, %v4854_v48, %v4855_v46  ;;  %v3309_v35 = vunpack.c.l.b16 %v3206_v0  ;;  %v5962_v46 = vld [vmem:[%s6755_s8 + $0x9c] sm:$0xe]  ;;  %v6314_v0 = vld [vmem:[%s6755_s8 + $0xa8] sm:$0xe] }
 0x20c   : > { %v5138_v14 = vadd.f32 %v5062_v42, %v4616_v21  ;;  %3457 = vmatmul.bf16.gmra.mxu1 %v3329_v37  ;;  %3836 = vmatmul.bf16.gmra.mxu2 %v6483_v22  ;;  %v4268_v42 = vshrl.u32 %v6218_v59, 16  ;;  %v4271_v37 = vshll.u32 %v6218_v59, 16  ;;  %v5269_v22 = vmax.f32 %v5237_v41, 0.0 }
 0x20d   : > { %4582 = vmatmul.bf16.gmra.mxu3 %v4454_v45  ;;  %v4266_v21 = vsel %vm6899_vm4, %v4261_v51, %v4265_v32  ;;  %v4283_v40 = vrot.slane %v4281_v3, 4  ;;  %v3310_v59 = vunpack.c.l.b16 %v3209_v23  ;;  %v4434_v63 = vunpack.c.l.b16 %v4256_v56 }
 0x20e   : > { %5104 = vmatmul.bf16.gmra.mxu0 %v4976_v31  ;;  %v5238_v6 = vadd.f32 %v7895_v53, %v5138_v14  ;;  %v4270_v62 = vrot.slane %v4268_v42, 4  ;;  %v4273_v41 = vrot.slane %v4271_v37, 5  ;;  %v7958_v14 = vrot.slane %v4277_v49, 5 }
 0x20f   : > { %v3797_v29 = vpop.f32.mrf.mxu2  ;;  %v4435_v51 = vunpack.c.l.b16 %v4266_v21  ;;  %v4957_v32 = vunpack.c.l.b16 %v4856_v17  ;;  %v4287_v49 = vshll.u32 %v6220_v55, 16  ;;  %v4859_v23 = vrot.slane %v6315_v47, 5  ;;  %v6221_v47 = vld [vmem:[%s6755_s8 + $0xb4] sm:$0xf] }
 0x210   : > { %v5270_v60 = vmax.f32 %v5238_v6, 0.0  ;;  %v3871_v45 = vadd.f32 %v3797_v29, %v3492_v2  ;;  %v4543_v31 = vpop.f32.mrf.mxu3  ;;  %v3212_v2 = vrot.slane %v5963_v20, 5  ;;  %v5964_v29 = vld [vmem:[%s6755_s8 + $0xa4] sm:$0x1]  ;;  %v4274_v42 = vor.u32 %v4273_v41, %v4270_v62 }
 0x211   : > { %v3420_v18 = vpop.f32.mrf.mxu1  ;;  %v4284_v37 = vor.u32 %v4283_v40, %v7958_v14  ;;  %v5986_v17 = vrot.slane %v5962_v46, 9  ;;  %v3215_v62 = vrot.slane %v5964_v29, 5  ;;  %v4861_v55 = vrot.slane %v4859_v23, 4 }
 0x212   : > { %v6521_v5 = vpack.c.bf16 %v5270_v60, %v5269_v22  ;;  %v4617_v57 = vadd.f32 %v4543_v31, %v3871_v45  ;;  %v3493_v6 = vadd.f32 %v3420_v18, %v7419_v10  ;;  %v3330_v45 = vpack.c.b16 %v3310_v59, %v3309_v35  ;;  %v6484_v31 = vld [vmem:[%s6755_s8 + $0x9c] sm:$0xff]  ;;  %v6316_v18 = vld [vmem:[%s6755_s8 + $0xb0] sm:$0x1] }
 0x213   : > { %v5067_v4 = vpop.f32.mrf.mxu0  ;;  %v4977_v10 = vpack.c.b16 %v4957_v32, %v4956_v36  ;;  %v3214_v20 = vrot.slane %v3212_v2, 4  ;;  %v4275_v41 = vrot.slane %v4274_v42, 4  ;;  %v4285_v40 = vrot.slane %v4284_v37, 4 }
 0x214   : > { %6593 = vst [vmem:[%s7922_s9 + $0x8] sm:$0xff] %v6521_v5   ;;  %v5139_v3 = vadd.f32 %v7935_v54, %v4617_v57  ;;  %v4455_v5 = vpack.c.b16 %v4435_v51, %v4434_v63  ;;  %v4289_v54 = vrot.slane %v4287_v49, 5  ;;  %v6338_v57 = vrot.slane %v6314_v0, 9 }
 0x215   : > { %v4862_v63 = vrot.slane %v6316_v18, 5  ;;  %v3213_v32 = vsel %vm6906_vm5, %v5986_v17, %v3212_v2  ;;  %v3216_v46 = vsel %vm6906_vm5, %v3214_v20, %v3215_v62  ;;  %v5966_v62 = vld [vmem:[%s6755_s8 + $0xac] sm:$0xf] }
 0x216   : > { %v5239_v35 = vadd.f32 %v7895_v53, %v5139_v3  ;;  %v4290_v29 = vsel %vm6899_vm4, %v4285_v40, %v4289_v54  ;;  %v4860_v42 = vsel %vm6906_vm5, %v6338_v57, %v4859_v23 }
 0x217   : > { %v3799_v48 = vpop.f32.mrf.mxu2  ;;  %v4863_v3 = vsel %vm6906_vm5, %v4861_v55, %v4862_v63  ;;  %v4958_v17 = vunpack.c.l.b16 %v4860_v42  ;;  %v6223_v55 = vld [vmem:[%s6755_s8 + $0xbc] sm:$0x1] }
 0x218   : > { %v3872_v22 = vadd.f32 %v3799_v48, %v3493_v6  ;;  %v4545_v60 = vpop.f32.mrf.mxu3  ;;  %v6222_v6 = vld [vmem:[%s6755_s8 + $0xb8] sm:$0xf]  ;;  %v4959_v20 = vunpack.c.l.b16 %v4863_v3  ;;  %v4311_v3 = vshll.u32 %v6223_v55, 16 }
 0x219   : > { %v3423_v56 = vpop.f32.mrf.mxu1 }
 0x21a   : > { %v4618_v21 = vadd.f32 %v4545_v60, %v3872_v22  ;;  %v3494_v36 = vadd.f32 %v3423_v56, %v7456_v16  ;;  %v5271_v16 = vmax.f32 %v5239_v35, 0.0  ;;  %v4292_v60 = vshrl.u32 %v6221_v47, 16  ;;  %v8167_v35 = vld [vmem:[#allocation9_spill] sm:$0xff] }
 0x21b   : > { %v5070_v7 = vpop.f32.mrf.mxu0 }
 0x21c   : > { %v5140_v59 = vadd.f32 %v5067_v4, %v4618_v21  ;;  %3462 = vmatmul.bf16.gmra.mxu1 %v3330_v45  ;;  %3841 = vmatmul.bf16.gmra.mxu2 %v6484_v31  ;;  %v4280_v4 = vsel %vm6899_vm4, %v4275_v41, %v7958_v14  ;;  %v4295_v45 = vshll.u32 %v6221_v47, 16  ;;  %v4301_v31 = vshll.u32 %v6222_v6, 16 }
 0x21d   : > { %4587 = vmatmul.bf16.gmra.mxu3 %v4455_v5  ;;  %v4305_v14 = vshrl.u32 %v6222_v6, 16  ;;  %v3311_v5 = vunpack.c.l.b16 %v3213_v32  ;;  %v4436_v23 = vunpack.c.l.b16 %v4280_v4  ;;  %v4437_v21 = vunpack.c.l.b16 %v4290_v29  ;;  %v5965_v4 = vld [vmem:[%s6755_s8 + $0xa8] sm:$0xe] }
 0x21e   : > { %5109 = vmatmul.bf16.gmra.mxu0 %v4977_v10  ;;  %v5240_v51 = vadd.f32 %v7895_v53, %v5140_v59  ;;  %v3312_v10 = vunpack.c.l.b16 %v3216_v46  ;;  %v4294_v41 = vrot.slane %v4292_v60, 4  ;;  %v4297_v40 = vrot.slane %v4295_v45, 5 }
 0x21f   : > { %v3802_v48 = vpop.f32.mrf.mxu2  ;;  %v7991_v54 = vrot.slane %v4301_v31, 5  ;;  %v4307_v57 = vrot.slane %v4305_v14, 4  ;;  %v4456_v46 = vpack.c.b16 %v4437_v21, %v4436_v23  ;;  %v3219_v29 = vrot.slane %v5966_v62, 5  ;;  %v6319_v14 = vld [vmem:[%s6755_s8 + $0xbc] sm:$0x1] }
 0x220   : > { %v5272_v37 = vmax.f32 %v5240_v51, 0.0  ;;  %v3873_v2 = vadd.f32 %v3802_v48, %v3494_v36  ;;  %v4548_v49 = vpop.f32.mrf.mxu3  ;;  %v3331_v51 = vpack.c.b16 %v3312_v10, %v3311_v5  ;;  %v6318_v36 = vld [vmem:[%s6755_s8 + $0xb8] sm:$0xf]  ;;  %v6485_v48 = vld [vmem:[%s6755_s8 + $0xa8] sm:$0xff]  ;;  %v5987_v31 = vrot.slane %v5965_v4, 9 }
 0x221   : > { %v3425_v22 = vpop.f32.mrf.mxu1  ;;  %v4866_v45 = vrot.slane %v6318_v36, 5  ;;  %v3221_v10 = vrot.slane %v3219_v29, 4  ;;  %v6225_v21 = vld [vmem:[%s6755_s8 + $0xc4] sm:$0xf]  ;;  %v4313_v62 = vrot.slane %v4311_v3, 5 }
 0x222   : > { %v6526_v0 = vpack.c.bf16 %v5272_v37, %v5271_v16  ;;  %v4619_v18 = vadd.f32 %v4548_v49, %v3873_v2  ;;  %v3495_v59 = vadd.f32 %v3425_v22, %v8167_v35  ;;  %v4978_v16 = vpack.c.b16 %v4959_v20, %v4958_v17  ;;  %v5967_v37 = vld [vmem:[%s6755_s8 + $0xb0] sm:$0x1]  ;;  %v5969_v3 = vld [vmem:[%s6755_s8 + $0xb8] sm:$0xf] }
 0x223   : > { %v5072_v56 = vpop.f32.mrf.mxu0  ;;  %v4298_v2 = vor.u32 %v4297_v40, %v4294_v41  ;;  %v4308_v49 = vor.u32 %v4307_v57, %v7991_v54  ;;  %v3222_v23 = vrot.slane %v5967_v37, 5  ;;  %v4868_v35 = vrot.slane %v4866_v45, 4 }
 0x224   : > { %6594 = vst [vmem:[%s7922_s9 + $0x10] sm:$0xff] %v6526_v0   ;;  %v5141_v32 = vadd.f32 %v5070_v7, %v4619_v18  ;;  %v6317_v7 = vld [vmem:[%s6755_s8 + $0xb4] sm:$0xe]  ;;  %v6224_v18 = vld [vmem:[%s6755_s8 + $0xc0] sm:$0xf]  ;;  %v4329_v36 = vshrl.u32 %v6225_v21, 16  ;;  %v3220_v4 = vsel %vm6906_vm5, %v5987_v31, %v3219_v29 }
 0x225   : > { %v4299_v17 = vrot.slane %v4298_v2, 4  ;;  %v4309_v20 = vrot.slane %v4308_v49, 4  ;;  %v6339_v41 = vrot.slane %v6317_v7, 9 }
 0x226   : > { %v5241_v0 = vadd.f32 %v7895_v53, %v5141_v32 }
 0x227   : > { %v3804_v63 = vpop.f32.mrf.mxu2  ;;  %v4314_v2 = vsel %vm6899_vm4, %v4309_v20, %v4313_v62  ;;  %v4867_v49 = vsel %vm6906_vm5, %v6339_v41, %v4866_v45  ;;  %v3226_v62 = vrot.slane %v5969_v3, 5 }
 0x228   : > { %v3874_v47 = vadd.f32 %v3804_v63, %v3495_v59  ;;  %v4550_v6 = vpop.f32.mrf.mxu3  ;;  %v4869_v59 = vrot.slane %v6319_v14, 5  ;;  %v4319_v63 = vshll.u32 %v6224_v18, 16  ;;  %v5273_v32 = vmax.f32 %v5241_v0, 0.0 }
 0x229   : > { %v3428_v42 = vpop.f32.mrf.mxu1  ;;  %v3313_v0 = vunpack.c.l.b16 %v3220_v4  ;;  %v4960_v45 = vunpack.c.l.b16 %v4867_v49 }
 0x22a   : > { %v4620_v22 = vadd.f32 %v4550_v6, %v3874_v47  ;;  %v3496_v57 = vadd.f32 %v3428_v42, %v7506_v24  ;;  %v3223_v24 = vsel %vm6906_vm5, %v3221_v10, %v3222_v23  ;;  %v4304_v42 = vsel %vm6899_vm4, %v4299_v17, %v7991_v54  ;;  %v6226_v10 = vld [vmem:[%s6755_s8 + $0xc8] sm:$0x1]  ;;  %v6321_v17 = vld [vmem:[%s6755_s8 + $0xc4] sm:$0xf] }
 0x22b   : > { %v8000_v60 = vpop.f32.mrf.mxu0  ;;  %v4870_v29 = vsel %vm6906_vm5, %v4868_v35, %v4869_v59  ;;  %v4321_v7 = vrot.slane %v4319_v63, 5  ;;  %v4331_v54 = vrot.slane %v4329_v36, 4  ;;  %v4438_v23 = vunpack.c.l.b16 %v4304_v42 }
 0x22c   : > { %v5142_v5 = vadd.f32 %v5072_v56, %v4620_v22  ;;  %3467 = vmatmul.bf16.gmra.mxu1 %v3331_v51  ;;  %3846 = vmatmul.bf16.gmra.mxu2 %v6485_v48  ;;  %v4316_v56 = vshrl.u32 %v6224_v18, 16  ;;  %v4325_v51 = vshll.u32 %v6225_v21, 16  ;;  %v4439_v18 = vunpack.c.l.b16 %v4314_v2 }
 0x22d   : > { %4592 = vmatmul.bf16.gmra.mxu3 %v4456_v46  ;;  %v4961_v21 = vunpack.c.l.b16 %v4870_v29  ;;  %v3228_v2 = vrot.slane %v3226_v62, 4 }
 0x22e   : > { %5114 = vmatmul.bf16.gmra.mxu0 %v4978_v16  ;;  %v5242_v40 = vadd.f32 %v7895_v53, %v5142_v5  ;;  %v4318_v22 = vrot.slane %v4316_v56, 4  ;;  %v8023_v31 = vrot.slane %v4325_v51, 5  ;;  %v3314_v5 = vunpack.c.l.b16 %v3223_v24 }
 0x22f   : > { %v3807_v55 = vpop.f32.mrf.mxu2  ;;  %v4457_v4 = vpack.c.b16 %v4439_v18, %v4438_v23  ;;  %v6227_v18 = vld [vmem:[%s6755_s8 + $0xcc] sm:$0xf] }
 0x230   : > { %v5274_v47 = vmax.f32 %v5242_v40, 0.0  ;;  %v3875_v6 = vadd.f32 %v3807_v55, %v3496_v57  ;;  %v4553_v48 = vpop.f32.mrf.mxu3  ;;  %v5968_v40 = vld [vmem:[%s6755_s8 + $0xb4] sm:$0xe]  ;;  %v5970_v57 = vld [vmem:[%s6755_s8 + $0xbc] sm:$0x1]  ;;  %v4322_v35 = vor.u32 %v4321_v7, %v4318_v22  ;;  %v4332_v59 = vor.u32 %v4331_v54, %v8023_v31 }
 0x231   : > { %v3430_v46 = vpop.f32.mrf.mxu1  ;;  %v4335_v55 = vshll.u32 %v6226_v10, 16  ;;  %v3332_v36 = vpack.c.b16 %v3314_v5, %v3313_v0  ;;  %v3229_v49 = vrot.slane %v5970_v57, 5 }
 0x232   : > { %v6531_v16 = vpack.c.bf16 %v5274_v47, %v5273_v32  ;;  %v4621_v14 = vadd.f32 %v4553_v48, %v3875_v6  ;;  %v3497_v20 = vadd.f32 %v3430_v46, %v7508_v44  ;;  %v6486_v32 = vld [vmem:[%s6755_s8 + $0xb4] sm:$0xff]  ;;  %v6320_v47 = vld [vmem:[%s6755_s8 + $0xc0] sm:$0xe]  ;;  %v4873_v6 = vrot.slane %v6321_v17, 5  ;;  %v6322_v46 = vld [vmem:[%s6755_s8 + $0xc8] sm:$0x1] }
 0x233   : > { %v5077_v37 = vpop.f32.mrf.mxu0  ;;  %v4979_v44 = vpack.c.b16 %v4961_v21, %v4960_v45  ;;  %v4323_v29 = vrot.slane %v4322_v35, 4  ;;  %v4333_v3 = vrot.slane %v4332_v59, 4  ;;  %v6340_v22 = vrot.slane %v6320_v47, 9  ;;  %v6228_v45 = vld [vmem:[%s6755_s8 + $0xd0] sm:$0xf] }
 0x234   : > { %6595 = vst [vmem:[%s7922_s9 + $0x18] sm:$0xff] %v6531_v16   ;;  %v5143_v56 = vadd.f32 %v8000_v60, %v4621_v14  ;;  %v5988_v16 = vrot.slane %v5968_v40, 9  ;;  %v4337_v60 = vrot.slane %v4335_v55, 5  ;;  %v4875_v14 = vrot.slane %v4873_v6, 4 }
 0x235   : > { %v4876_v0 = vrot.slane %v6322_v46, 5  ;;  %v3230_v17 = vsel %vm6906_vm5, %v3228_v2, %v3229_v49  ;;  %v4340_v55 = vshrl.u32 %v6227_v18, 16 }
 0x236   : > { %v5243_v7 = vadd.f32 %v7895_v53, %v5143_v56  ;;  %v3227_v23 = vsel %vm6906_vm5, %v5988_v16, %v3226_v62  ;;  %v4343_v56 = vshll.u32 %v6227_v18, 16  ;;  %v3316_v47 = vunpack.c.l.b16 %v3230_v17  ;;  %v5971_v18 = vld [vmem:[%s6755_s8 + $0xc0] sm:$0xe] }
 0x237   : > { %v3809_v41 = vpop.f32.mrf.mxu2  ;;  %v4877_v35 = vsel %vm6906_vm5, %v4875_v14, %v4876_v0  ;;  %v4342_v16 = vrot.slane %v4340_v55, 4 }
 0x238   : > { %v3876_v63 = vadd.f32 %v3809_v41, %v3497_v20  ;;  %v4555_v51 = vpop.f32.mrf.mxu3  ;;  %v4338_v20 = vsel %vm6899_vm4, %v4333_v3, %v4337_v60  ;;  %v4874_v41 = vsel %vm6906_vm5, %v6340_v22, %v4873_v6  ;;  %v4963_v46 = vunpack.c.l.b16 %v4877_v35  ;;  %v6229_v60 = vld [vmem:[%s6755_s8 + $0xd4] sm:$0x1] }
 0x239   : > { %v3433_v48 = vpop.f32.mrf.mxu1  ;;  %v4345_v2 = vrot.slane %v4343_v56, 5  ;;  %v5989_v35 = vrot.slane %v5971_v18, 9 }
 0x23a   : > { %v4622_v24 = vadd.f32 %v4555_v51, %v3876_v63  ;;  %v3498_v10 = vadd.f32 %v3433_v48, %v7533_v27  ;;  %v5275_v27 = vmax.f32 %v5243_v7, 0.0  ;;  %v4349_v63 = vshll.u32 %v6228_v45, 16 }
 0x23b   : > { %v5080_v42 = vpop.f32.mrf.mxu0 }
 0x23c   : > { %v5144_v54 = vadd.f32 %v5077_v37, %v4622_v24  ;;  %3472 = vmatmul.bf16.gmra.mxu1 %v3332_v36  ;;  %3851 = vmatmul.bf16.gmra.mxu2 %v6486_v32  ;;  %v4328_v37 = vsel %vm6899_vm4, %v4323_v29, %v8023_v31  ;;  %v4353_v31 = vshrl.u32 %v6228_v45, 16  ;;  %v3315_v32 = vunpack.c.l.b16 %v3227_v23  ;;  %v5972_v24 = vld [vmem:[%s6755_s8 + $0xc4] sm:$0xf] }
 0x23d   : > { %4597 = vmatmul.bf16.gmra.mxu3 %v4457_v4  ;;  %v4440_v6 = vunpack.c.l.b16 %v4328_v37  ;;  %v4441_v4 = vunpack.c.l.b16 %v4338_v20  ;;  %v4351_v49 = vrot.slane %v4349_v63, 5  ;;  %v3233_v45 = vrot.slane %v5972_v24, 5  ;;  %v5973_v37 = vld [vmem:[%s6755_s8 + $0xc8] sm:$0x1] }
 0x23e   : > { %5119 = vmatmul.bf16.gmra.mxu0 %v4979_v44  ;;  %v5244_v5 = vadd.f32 %v7895_v53, %v5144_v54  ;;  %v4962_v44 = vunpack.c.l.b16 %v4874_v41  ;;  %v4355_v29 = vrot.slane %v4353_v31, 4  ;;  %v3333_v7 = vpack.c.b16 %v3316_v47, %v3315_v32  ;;  %v6324_v54 = vld [vmem:[%s6755_s8 + $0xd0] sm:$0xf] }
 0x23f   : > { %v3812_v21 = vpop.f32.mrf.mxu2  ;;  %v4458_v23 = vpack.c.b16 %v4441_v4, %v4440_v6  ;;  %v4346_v20 = vor.u32 %v4345_v2, %v4342_v16  ;;  %v3235_v56 = vrot.slane %v3233_v45, 4  ;;  %v3236_v63 = vrot.slane %v5973_v37, 5 }
 0x240   : > { %v5276_v40 = vmax.f32 %v5244_v5, 0.0  ;;  %v3877_v62 = vadd.f32 %v3812_v21, %v3498_v10  ;;  %v4558_v57 = vpop.f32.mrf.mxu3  ;;  %v6487_v10 = vld [vmem:[%s6755_s8 + $0xc0] sm:$0xff]  ;;  %v4980_v17 = vpack.c.b16 %v4963_v46, %v4962_v44  ;;  %v4356_v41 = vor.u32 %v4355_v29, %v4351_v49 }
 0x241   : > { %v3435_v59 = vpop.f32.mrf.mxu1  ;;  %v4347_v31 = vrot.slane %v4346_v20, 4 }
 0x242   : > { %v6536_v51 = vpack.c.bf16 %v5276_v40, %v5275_v27  ;;  %v4623_v48 = vadd.f32 %v4558_v57, %v3877_v62  ;;  %v3499_v3 = vadd.f32 %v3435_v59, %v7546_v50  ;;  %v4359_v27 = vshll.u32 %v6229_v60, 16  ;;  %v6323_v62 = vld [vmem:[%s6755_s8 + $0xcc] sm:$0xe]  ;;  %v6325_v59 = vld [vmem:[%s6755_s8 + $0xd4] sm:$0x1] }
 0x243   : > { %v5082_v36 = vpop.f32.mrf.mxu0  ;;  %v4880_v57 = vrot.slane %v6324_v54, 5  ;;  %v6341_v47 = vrot.slane %v6323_v62, 9  ;;  %v4883_v44 = vrot.slane %v6325_v59, 5  ;;  %v3237_v60 = vsel %vm6906_vm5, %v3235_v56, %v3236_v63 }
 0x244   : > { %6596 = vst [vmem:[%s7922_s9 + $0x20] sm:$0xff] %v6536_v51   ;;  %v5145_v14 = vadd.f32 %v5080_v42, %v4623_v48  ;;  %v4357_v51 = vrot.slane %v4356_v41, 4  ;;  %v4361_v32 = vrot.slane %v4359_v27, 5 }
 0x245   : > { %v4882_v4 = vrot.slane %v4880_v57, 4 }
 0x246   : > { %v5245_v42 = vadd.f32 %v7895_v53, %v5145_v14  ;;  %v4362_v54 = vsel %vm6899_vm4, %v4357_v51, %v4361_v32  ;;  %v4881_v14 = vsel %vm6906_vm5, %v6341_v47, %v4880_v57 }
 0x247   : > { %v3814_v22 = vpop.f32.mrf.mxu2 }
 0x248   : > { %v3878_v0 = vadd.f32 %v3814_v22, %v3499_v3  ;;  %v4560_v5 = vpop.f32.mrf.mxu3  ;;  %v5277_v24 = vmax.f32 %v5245_v42, 0.0  ;;  %v3234_v3 = vsel %vm6906_vm5, %v5989_v35, %v3233_v45  ;;  %v4352_v22 = vsel %vm6899_vm4, %v4347_v31, %v4351_v49 }
 0x249   : > { %v3438_v21 = vpop.f32.mrf.mxu1  ;;  %v4442_v18 = vunpack.c.l.b16 %v4352_v22  ;;  %v4443_v45 = vunpack.c.l.b16 %v4362_v54 }
 0x24a   : > { %v4624_v50 = vadd.f32 %v4560_v5, %v3878_v0  ;;  %v3500_v48 = vadd.f32 %v3438_v21, %v7567_v58  ;;  %v4884_v0 = vsel %vm6906_vm5, %v4882_v4, %v4883_v44  ;;  %v4964_v21 = vunpack.c.l.b16 %v4881_v14 }
 0x24b   : > { %v5085_v40 = vpop.f32.mrf.mxu0  ;;  %v4965_v49 = vunpack.c.l.b16 %v4884_v0  ;;  %v4459_v38 = vpack.c.b16 %v4443_v45, %v4442_v18 }
 0x24c   : > { %v5146_v55 = vadd.f32 %v5082_v36, %v4624_v50  ;;  %3477 = vmatmul.bf16.gmra.mxu1 %v3333_v7  ;;  %3856 = vmatmul.bf16.gmra.mxu2 %v6487_v10  ;;  %v3317_v10 = vunpack.c.l.b16 %v3234_v3  ;;  %v6488_v50 = vld [vmem:[%s6755_s8 + $0xcc] sm:$0xff] }
 0x24d   : > { %4602 = vmatmul.bf16.gmra.mxu3 %v4458_v23  ;;  %v3318_v23 = vunpack.c.l.b16 %v3237_v60  ;;  %v4981_v57 = vpack.c.b16 %v4965_v49, %v4964_v21 }
 0x24e   : > { %5124 = vmatmul.bf16.gmra.mxu0 %v4980_v17  ;;  %v5246_v6 = vadd.f32 %v7895_v53, %v5146_v55 }
 0x24f   : > { %v3817_v46 = vpop.f32.mrf.mxu2  ;;  %v3334_v27 = vpack.c.b16 %v3318_v23, %v3317_v10 }
 0x250   : > { %v5278_v36 = vmax.f32 %v5246_v6, 0.0  ;;  %v3879_v16 = vadd.f32 %v3817_v46, %v3500_v48  ;;  %v4563_v2 = vpop.f32.mrf.mxu3 }
 0x251   : > { %v3440_v29 = vpop.f32.mrf.mxu1 }
 0x252   : > { %v6541_v7 = vpack.c.bf16 %v5278_v36, %v5277_v24  ;;  %v4625_v5 = vadd.f32 %v4563_v2, %v3879_v16  ;;  %v3501_v17 = vadd.f32 %v3440_v29, %v7577_v25 }
 0x253   : > { %v5087_v58 = vpop.f32.mrf.mxu0 }
 0x254   : > { %6597 = vst [vmem:[%s7922_s9 + $0x28] sm:$0xff] %v6541_v7   ;;  %v5147_v33 = vadd.f32 %v5085_v40, %v4625_v5 }
 0x256   : > { %v5247_v42 = vadd.f32 %v7895_v53, %v5147_v33 }
 0x257   : > { %v3819_v37 = vpop.f32.mrf.mxu2 }
 0x258   : > { %v3880_v20 = vadd.f32 %v3819_v37, %v3501_v17  ;;  %v4565_v41 = vpop.f32.mrf.mxu3  ;;  %v5279_v63 = vmax.f32 %v5247_v42, 0.0 }
 0x259   : > { %v3443_v62 = vpop.f32.mrf.mxu1 }
 0x25a   : > { %v4626_v35 = vadd.f32 %v4565_v41, %v3880_v20  ;;  %v3502_v40 = vadd.f32 %v3443_v62, %v7595_v15 }
 0x25b   : > { %v5090_v59 = vpop.f32.mrf.mxu0 }
 0x25c   : > { %v5148_v55 = vadd.f32 %v5087_v58, %v4626_v35  ;;  %3482 = vmatmul.bf16.gmra.mxu1 %v3334_v27  ;;  %3861 = vmatmul.bf16.gmra.mxu2 %v6488_v50 }
 0x25d   : > { %4607 = vmatmul.bf16.gmra.mxu3 %v4459_v38 }
 0x25e   : > { %5129 = vmatmul.bf16.gmra.mxu0 %v4981_v57  ;;  %v5248_v25 = vadd.f32 %v7895_v53, %v5148_v55 }
 0x25f   : > { %v3822_v56 = vpop.f32.mrf.mxu2 }
 0x260   : > { %v5280_v31 = vmax.f32 %v5248_v25, 0.0  ;;  %v3881_v51 = vadd.f32 %v3822_v56, %v3502_v40  ;;  %v4568_v32 = vpop.f32.mrf.mxu3 }
 0x261   : > { %v3445_v47 = vpop.f32.mrf.mxu1 }
 0x262   : > { %v6546_v6 = vpack.c.bf16 %v5280_v31, %v5279_v63  ;;  %v4627_v4 = vadd.f32 %v4568_v32, %v3881_v51  ;;  %v3503_v44 = vadd.f32 %v3445_v47, %v7611_v52 }
 0x263   : > { %v5092_v48 = vpop.f32.mrf.mxu0 }
 0x264   : > { %6598 = vst [vmem:[%s7922_s9 + $0x30] sm:$0xff] %v6546_v6   ;;  %v5149_v24 = vadd.f32 %v5090_v59, %v4627_v4 }
 0x266   : > { %v5249_v3 = vadd.f32 %v7895_v53, %v5149_v24 }
 0x267   : > { %v3824_v46 = vpop.f32.mrf.mxu2 }
 0x268   : > { %v3882_v36 = vadd.f32 %v3824_v46, %v3503_v44  ;;  %v4570_v16 = vpop.f32.mrf.mxu3  ;;  %v5281_v54 = vmax.f32 %v5249_v3, 0.0 }
 0x269   : > { %v3448_v2 = vpop.f32.mrf.mxu1 }
 0x26a   : > { %v4628_v29 = vadd.f32 %v4570_v16, %v3882_v36  ;;  %v3504_v7 = vadd.f32 %v3448_v2, %v7631_v11 }
 0x26b   : > { %v5095_v15 = vpop.f32.mrf.mxu0 }
 0x26c   : > { %v5150_v60 = vadd.f32 %v5092_v48, %v4628_v29 }
 0x26e   : > { %v5250_v22 = vadd.f32 %v7895_v53, %v5150_v60 }
 0x26f   : > { %v3827_v58 = vpop.f32.mrf.mxu2 }
 0x270   : > { %v5282_v14 = vmax.f32 %v5250_v22, 0.0  ;;  %v3883_v0 = vadd.f32 %v3827_v58, %v3504_v7  ;;  %v4573_v52 = vpop.f32.mrf.mxu3 }
 0x271   : > { %v3450_v5 = vpop.f32.mrf.mxu1 }
 0x272   : > { %v6551_v10 = vpack.c.bf16 %v5282_v14, %v5281_v54  ;;  %v4629_v18 = vadd.f32 %v4573_v52, %v3883_v0  ;;  %v3505_v45 = vadd.f32 %v3450_v5, %v7641_v12  ;;  %v8105_v52 = vld [vmem:[%s8146_s2] ss:$0 sm:$0xff] }
 0x273   : > { %v5097_v23 = vpop.f32.mrf.mxu0 }
 0x274   : > { %6599 = vst [vmem:[%s7922_s9 + $0x38] sm:$0xff] %v6551_v10   ;;  %v5151_v49 = vadd.f32 %v5095_v15, %v4629_v18 }
 0x276   : > { %v5251_v41 = vadd.f32 %v7895_v53, %v5151_v49 }
 0x277   : > { %v3829_v21 = vpop.f32.mrf.mxu2 }
 0x278   : > { %v3884_v17 = vadd.f32 %v3829_v21, %v3505_v45  ;;  %v4575_v37 = vpop.f32.mrf.mxu3  ;;  %v5283_v57 = vmax.f32 %v5251_v41, 0.0 }
 0x279   : > { %v3453_v33 = vpop.f32.mrf.mxu1 }
 0x27a   : > { %v4630_v20 = vadd.f32 %v4575_v37, %v3884_v17  ;;  %v3506_v62 = vadd.f32 %v3453_v33, %v7659_v28 }
 0x27b   : > { %v5100_v11 = vpop.f32.mrf.mxu0 }
 0x27c   : > { %v5152_v27 = vadd.f32 %v5097_v23, %v4630_v20 }
 0x27e   : > { %v5252_v50 = vadd.f32 %v7895_v53, %v5152_v27 }
 0x27f   : > { %v3832_v38 = vpop.f32.mrf.mxu2 }
 0x280   : > { %v5284_v35 = vmax.f32 %v5252_v50, 0.0  ;;  %v3885_v59 = vadd.f32 %v3832_v38, %v3506_v62  ;;  %v4578_v12 = vpop.f32.mrf.mxu3 }
 0x281   : > { %v3455_v42 = vpop.f32.mrf.mxu1 }
 0x282   : > { %v6556_v55 = vpack.c.bf16 %v5284_v35, %v5283_v57  ;;  %v4631_v40 = vadd.f32 %v4578_v12, %v3885_v59  ;;  %v3507_v56 = vadd.f32 %v3455_v42, %v7675_v13 }
 0x283   : > { %v5102_v25 = vpop.f32.mrf.mxu0 }
 0x284   : > { %6600 = vst [vmem:[%s7922_s9 + $0x40] sm:$0xff] %v6556_v55   ;;  %v5153_v31 = vadd.f32 %v5100_v11, %v4631_v40 }
 0x286   : > { %v5253_v48 = vadd.f32 %v7895_v53, %v5153_v31 }
 0x287   : > { %v3834_v63 = vpop.f32.mrf.mxu2 }
 0x288   : > { %v3886_v51 = vadd.f32 %v3834_v63, %v3507_v56  ;;  %v4580_v32 = vpop.f32.mrf.mxu3  ;;  %v5285_v36 = vmax.f32 %v5253_v48, 0.0 }
 0x289   : > { %v3458_v47 = vpop.f32.mrf.mxu1 }
 0x28a   : > { %v4632_v6 = vadd.f32 %v4580_v32, %v3886_v51  ;;  %v3508_v46 = vadd.f32 %v3458_v47, %v7695_v8 }
 0x28b   : > { %v5105_v28 = vpop.f32.mrf.mxu0 }
 0x28c   : > { %v5154_v4 = vadd.f32 %v5102_v25, %v4632_v6 }
 0x28e   : > { %v5254_v44 = vadd.f32 %v7895_v53, %v5154_v4 }
 0x28f   : > { %v3837_v24 = vpop.f32.mrf.mxu2 }
 0x290   : > { %v5286_v16 = vmax.f32 %v5254_v44, 0.0  ;;  %v3887_v2 = vadd.f32 %v3837_v24, %v3508_v46  ;;  %v4583_v13 = vpop.f32.mrf.mxu3 }
 0x291   : > { %v3460_v29 = vpop.f32.mrf.mxu1 }
 0x292   : > { %v6561_v15 = vpack.c.bf16 %v5286_v16, %v5285_v36  ;;  %v4633_v60 = vadd.f32 %v4583_v13, %v3887_v2  ;;  %v3509_v22 = vadd.f32 %v3460_v29, %v7705_v61 }
 0x293   : > { %v5107_v3 = vpop.f32.mrf.mxu0 }
 0x294   : > { %6601 = vst [vmem:[%s7922_s9 + $0x48] sm:$0xff] %v6561_v15   ;;  %v5155_v58 = vadd.f32 %v5105_v28, %v4633_v60 }
 0x296   : > { %v5255_v5 = vadd.f32 %v8105_v52, %v5155_v58 }
 0x297   : > { %v3839_v7 = vpop.f32.mrf.mxu2 }
 0x298   : > { %v3888_v54 = vadd.f32 %v3839_v7, %v3509_v22  ;;  %v4585_v14 = vpop.f32.mrf.mxu3  ;;  %v5287_v45 = vmax.f32 %v5255_v5, 0.0 }
 0x299   : > { %v3463_v0 = vpop.f32.mrf.mxu1 }
 0x29a   : > { %v4634_v53 = vadd.f32 %v4585_v14, %v3888_v54  ;;  %v3510_v61 = vadd.f32 %v3463_v0, %v7723_v30 }
 0x29b   : > { %v5110_v8 = vpop.f32.mrf.mxu0 }
 0x29c   : > { %v5156_v10 = vadd.f32 %v5107_v3, %v4634_v53 }
 0x29e   : > { %v5256_v23 = vadd.f32 %v8105_v52, %v5156_v10 }
 0x29f   : > { %v3842_v18 = vpop.f32.mrf.mxu2 }
 0x2a0   : > { %v5288_v21 = vmax.f32 %v5256_v23, 0.0  ;;  %v3889_v49 = vadd.f32 %v3842_v18, %v3510_v61  ;;  %v4588_v17 = vpop.f32.mrf.mxu3 }
 0x2a1   : > { %v3465_v37 = vpop.f32.mrf.mxu1 }
 0x2a2   : > { %v6566_v33 = vpack.c.bf16 %v5288_v21, %v5287_v45  ;;  %v4635_v11 = vadd.f32 %v4588_v17, %v3889_v49  ;;  %v3511_v41 = vadd.f32 %v3465_v37, %v7739_v9 }
 0x2a3   : > { %v5112_v20 = vpop.f32.mrf.mxu0 }
 0x2a4   : > { %6602 = vst [vmem:[%s7922_s9 + $0x50] sm:$0xff] %v6566_v33   ;;  %v5157_v50 = vadd.f32 %v5110_v8, %v4635_v11 }
 0x2a6   : > { %v5257_v59 = vadd.f32 %v8105_v52, %v5157_v50 }
 0x2a7   : > { %v3844_v27 = vpop.f32.mrf.mxu2 }
 0x2a8   : > { %v3890_v62 = vadd.f32 %v3844_v27, %v3511_v41  ;;  %v4590_v38 = vpop.f32.mrf.mxu3  ;;  %v5289_v40 = vmax.f32 %v5257_v59, 0.0 }
 0x2a9   : > { %v3468_v57 = vpop.f32.mrf.mxu1 }
 0x2aa   : > { %v4636_v35 = vadd.f32 %v4590_v38, %v3890_v62  ;;  %v3512_v55 = vadd.f32 %v3468_v57, %v7759_v43 }
 0x2ab   : > { %v5115_v30 = vpop.f32.mrf.mxu0 }
 0x2ac   : > { %v5158_v12 = vadd.f32 %v5112_v20, %v4636_v35 }
 0x2ae   : > { %v5258_v42 = vadd.f32 %v8105_v52, %v5158_v12 }
 0x2af   : > { %v3847_v25 = vpop.f32.mrf.mxu2 }
 0x2b0   : > { %v5290_v56 = vmax.f32 %v5258_v42, 0.0  ;;  %v3891_v63 = vadd.f32 %v3847_v25, %v3512_v55  ;;  %v4593_v9 = vpop.f32.mrf.mxu3  ;;  %v8168_v55 = vld [vmem:[#allocation3_spill] sm:$0xff] }
 0x2b1   : > { %v3470_v31 = vpop.f32.mrf.mxu1 }
 0x2b2   : > { %v6571_v51 = vpack.c.bf16 %v5290_v56, %v5289_v40  ;;  %v4637_v47 = vadd.f32 %v4593_v9, %v3891_v63  ;;  %v3513_v6 = vadd.f32 %v3470_v31, %v7769_v26 }
 0x2b3   : > { %v5117_v32 = vpop.f32.mrf.mxu0 }
 0x2b4   : > { %6603 = vst [vmem:[%s7922_s9 + $0x58] sm:$0xff] %v6571_v51   ;;  %v5159_v48 = vadd.f32 %v5115_v30, %v4637_v47 }
 0x2b6   : > { %v5259_v36 = vadd.f32 %v8105_v52, %v5159_v48 }
 0x2b7   : > { %v3849_v28 = vpop.f32.mrf.mxu2 }
 0x2b8   : > { %v3892_v4 = vadd.f32 %v3849_v28, %v3513_v6  ;;  %v4595_v44 = vpop.f32.mrf.mxu3  ;;  %v5291_v15 = vmax.f32 %v5259_v36, 0.0  ;;  %v8169_v6 = vld [vmem:[#allocation4_spill] sm:$0xff] }
 0x2b9   : > { %v3473_v46 = vpop.f32.mrf.mxu1 }
 0x2ba   : > { %v4638_v24 = vadd.f32 %v4595_v44, %v3892_v4  ;;  %v3514_v13 = vadd.f32 %v3473_v46, %v7787_v1 }
 0x2bb   : > { %v5120_v43 = vpop.f32.mrf.mxu0 }
 0x2bc   : > { %v5160_v16 = vadd.f32 %v5117_v32, %v4638_v24 }
 0x2be   : > { %v5260_v2 = vadd.f32 %v8105_v52, %v5160_v16 }
 0x2bf   : > { %v3852_v29 = vpop.f32.mrf.mxu2 }
 0x2c0   : > { %v5292_v3 = vmax.f32 %v5260_v2, 0.0  ;;  %v3893_v60 = vadd.f32 %v3852_v29, %v3514_v13  ;;  %v4598_v26 = vpop.f32.mrf.mxu3 }
 0x2c1   : > { %v3475_v22 = vpop.f32.mrf.mxu1 }
 0x2c2   : > { %v6576_v7 = vpack.c.bf16 %v5292_v3, %v5291_v15  ;;  %v4639_v54 = vadd.f32 %v4598_v26, %v3893_v60  ;;  %v3515_v14 = vadd.f32 %v3475_v22, %v7803_v39 }
 0x2c3   : > { %v5122_v58 = vpop.f32.mrf.mxu0 }
 0x2c4   : > { %6604 = vst [vmem:[%s7922_s9 + $0x60] sm:$0xff] %v6576_v7   ;;  %v5161_v53 = vadd.f32 %v5120_v43, %v4639_v54 }
 0x2c6   : > { %v5261_v1 = vadd.f32 %v8105_v52, %v5161_v53 }
 0x2c7   : > { %v3854_v0 = vpop.f32.mrf.mxu2 }
 0x2c8   : > { %v3894_v8 = vadd.f32 %v3854_v0, %v3515_v14  ;;  %v4600_v5 = vpop.f32.mrf.mxu3  ;;  %v5293_v17 = vmax.f32 %v5261_v1, 0.0 }
 0x2c9   : > { %v3478_v10 = vpop.f32.mrf.mxu1 }
 0x2ca   : > { %v4640_v23 = vadd.f32 %v4600_v5, %v3894_v8  ;;  %v3516_v21 = vadd.f32 %v3478_v10, %v7823_v19 }
 0x2cb   : > { %v5125_v18 = vpop.f32.mrf.mxu0 }
 0x2cc   : > { %v5162_v61 = vadd.f32 %v5122_v58, %v4640_v23 }
 0x2ce   : > { %v5262_v45 = vadd.f32 %v8105_v52, %v5162_v61 }
 0x2cf   : > { %v3857_v49 = vpop.f32.mrf.mxu2 }
 0x2d0   : > { %v5294_v37 = vmax.f32 %v5262_v45, 0.0  ;;  %v3895_v33 = vadd.f32 %v3857_v49, %v3516_v21  ;;  %v4603_v39 = vpop.f32.mrf.mxu3 }
 0x2d1   : > { %v3480_v20 = vpop.f32.mrf.mxu1 }
 0x2d2   : > { %v6581_v11 = vpack.c.bf16 %v5294_v37, %v5293_v17  ;;  %v4641_v41 = vadd.f32 %v4603_v39, %v3895_v33  ;;  %v3517_v27 = vadd.f32 %v3480_v20, %v7833_v34 }
 0x2d3   : > { %v5127_v50 = vpop.f32.mrf.mxu0 }
 0x2d4   : > { %6605 = vst [vmem:[%s7922_s9 + $0x68] sm:$0xff] %v6581_v11   ;;  %v5163_v38 = vadd.f32 %v5125_v18, %v4641_v41 }
 0x2d6   : > { %v5263_v19 = vadd.f32 %v8105_v52, %v5163_v38 }
 0x2d7   : > { %v3859_v62 = vpop.f32.mrf.mxu2 }
 0x2d8   : > { %v3896_v57 = vadd.f32 %v3859_v62, %v3517_v27  ;;  %v4605_v35 = vpop.f32.mrf.mxu3  ;;  %v5295_v56 = vmax.f32 %v5263_v19, 0.0 }
 0x2d9   : > { %v3483_v30 = vpop.f32.mrf.mxu1 }
 0x2da   : > { %v4642_v59 = vadd.f32 %v4605_v35, %v3896_v57  ;;  %v3518_v25 = vadd.f32 %v3483_v30, %v8168_v55 }
 0x2db   : > { %v5130_v31 = vpop.f32.mrf.mxu0 }
 0x2dc   : > { %v5164_v12 = vadd.f32 %v5127_v50, %v4642_v59 }
 0x2de   : > { %v5264_v42 = vadd.f32 %v8105_v52, %v5164_v12 }
 0x2df   : > { %v3862_v40 = vpop.f32.mrf.mxu2 }
 0x2e0   : > { %v5296_v63 = vmax.f32 %v5264_v42, 0.0  ;;  %v3897_v9 = vadd.f32 %v3862_v40, %v3518_v25  ;;  %v4608_v34 = vpop.f32.mrf.mxu3 }
 0x2e1   : > { %v3485_v32 = vpop.f32.mrf.mxu1 }
 0x2e2   : > { %v6586_v51 = vpack.c.bf16 %v5296_v63, %v5295_v56  ;;  %v4643_v47 = vadd.f32 %v4608_v34, %v3897_v9  ;;  %v3519_v28 = vadd.f32 %v3485_v32, %v8169_v6 }
 0x2e3   : > { %v5132_v43 = vpop.f32.mrf.mxu0 }
 0x2e4   : > { %6606 = vst [vmem:[%s7922_s9 + $0x70] sm:$0xff] %v6586_v51   ;;  %v5165_v4 = vadd.f32 %v5130_v31, %v4643_v47 }
 0x2e6   : > { %v5265_v36 = vadd.f32 %v8105_v52, %v5165_v4 }
 0x2e7   : > { %v3864_v48 = vpop.f32.mrf.mxu2 }
 0x2e8   : > { %v3898_v44 = vadd.f32 %v3864_v48, %v3519_v28  ;;  %v4610_v46 = vpop.f32.mrf.mxu3  ;;  %v5297_v13 = vmax.f32 %v5265_v36, 0.0 }
 0x2ea   : > { %v4644_v24 = vadd.f32 %v4610_v46, %v3898_v44 }
 0x2ec   : > { %v5166_v16 = vadd.f32 %v5132_v43, %v4644_v24 }
 0x2ee   : > { %v5266_v2 = vadd.f32 %v8105_v52, %v5166_v16 }
 0x2f0   : > { %v5298_v29 = vmax.f32 %v5266_v2, 0.0 }
 0x2f2   : > { %v6591_v15 = vpack.c.bf16 %v5298_v29, %v5297_v13 }
 0x2f4   : > { %6607 = vst [vmem:[%s7922_s9 + $0x78] sm:$0xff] %v6591_v15  }
 0x2f5 PF: > { %s13_s14 = sadd.s32 1, %s6681_s14   ;;  %s8170_s12 = smov %s6677_s13 }
 0x2f6   : > { %p10_p5 = scmp.ge.s32.totalorder %s13_s14, 4   ;;  %s8171_s13 = smov %s8173_s15 }
 0x2f8   :  { %12 = sbr.rel (!%p10_p5) target bundleno = 2 (0x2), region = 78 }

</bundles_post_ra>
